<compile_context>
chip_gen: v7x
topology: tpu7x:2x2x1
jax: 0.10.0
libtpu: 0.0.40
codegen_flags: <defaults>
</compile_context>

<pallas_src>
import functools

import jax
import jax.numpy as jnp
from jax.experimental import pallas as pl
from jax.experimental.pallas import tpu as pltpu

LANE = 128


def _round_up(x, m):
    return (x + m - 1) // m * m


def _pad2(a, rows, cols):
    return jnp.pad(a, ((0, rows - a.shape[0]), (0, cols - a.shape[1])))


def _linear_block_kernel(
    alphas_ref,                       # SMEM (4,)  PReLU slopes for lin2..lin5
    x_ref,                            # (TB, F)    activation tile (unpadded lanes)
    w1_ref, c1_ref,                   # lin1 (BN folded into W1): (F,HP),(1,HP)
    s2_ref, b2_ref, w2_ref,           # lin2: (1,HP),(1,HP),(HP,HP)  (c2 folded into b3)
    s3_ref, b3_ref, w3_ref, c3_ref,   # lin3
    s4_ref, b4_ref, w4_ref, c4_ref,   # lin4
    s5_ref, b5_ref, w5_ref, c5_ref,   # lin5: (1,HP),(1,HP),(HP,F),(1,F)
    out_ref,                          # (TB, F)
    res_ref,                          # VMEM scratch (TB, HP) f32 — residual stash
    *, matmul_dtype,
):
    f32 = jnp.float32

    def mm(z, w_ref):
        # MXU matmul: operands in matmul_dtype (bf16 or f32), f32 accumulation.
        return jnp.dot(z.astype(matmul_dtype), w_ref[...],
                       preferred_element_type=f32)

    def bn_prelu(h, s_ref, b_ref, alpha):
        z = h * s_ref[...] + b_ref[...]          # folded BatchNorm affine (f32)
        return jnp.where(z > 0, z, alpha * z)    # PReLU (single slope)

    # lin1: BN affine pre-folded into w1/c1 in the wrapper; x feeds the MXU directly.
    # Stash h1 in VMEM scratch instead of keeping it live in vregs across 2 matmuls.
    res_ref[...] = mm(x_ref[...], w1_ref) + c1_ref[...]

    # x = (lin3(lin2(x)) + x) / 2      (lin2's Linear bias folded into b3)
    h2 = mm(bn_prelu(res_ref[...], s2_ref, b2_ref, alphas_ref[0]), w2_ref)
    h3 = mm(bn_prelu(h2, s3_ref, b3_ref, alphas_ref[1]), w3_ref) + c3_ref[...]
    res_ref[...] = (h3 + res_ref[...]) * 0.5     # x2 replaces h1 in scratch

    # x = (lin4(x) + x) / 2
    h4 = mm(bn_prelu(res_ref[...], s4_ref, b4_ref, alphas_ref[2]), w4_ref) + c4_ref[...]
    x3 = (h4 + res_ref[...]) * 0.5

    # x = lin5(x)
    out = mm(bn_prelu(x3, s5_ref, b5_ref, alphas_ref[3]), w5_ref) + c5_ref[...]
    out_ref[...] = out.astype(out_ref.dtype)


def linear_block_forward(x, params, *, tb=256, matmul_dtype=jnp.bfloat16,
                         stream_dtype=None):
    """x: (B, n_feats) float32.  params: dict of folded BN + Linear params.

    tb:           batch tile (rows per grid step).  Pick so BP//tb >= 2 on v7x
                  for large batches; it is clamped for small batches.
    matmul_dtype: MXU operand dtype (bf16 fast path, f32 for exact checks).
    stream_dtype: optional dtype for the streamed activations (e.g. bf16 when
                  matmul_dtype is bf16) to halve the activation HBM traffic.
    """
    f32 = jnp.float32
    B, F = x.shape
    HID = params["w1"].shape[1]                 # 6 * n_feats
    HP = _round_up(HID, LANE)                   # lane-dense hidden dim (192 -> 256)
    tb_eff = min(tb, _round_up(B, 128))         # don't over-pad tiny batches
    BP = _round_up(B, tb_eff)                   # batch padded to the batch tile

    # lin1's BN affine folded into the Linear weight/bias (exact, done in f32):
    #   (x*s1 + b1) @ W1 + c1  ==  x @ (s1[:,None]*W1) + (b1 @ W1 + c1)
    w1f = params["w1"] * params["s1"][0][:, None]
    c1f = params["b1"] @ params["w1"] + params["c1"]
    # lin2's Linear bias folded into lin3's folded-BN shift:
    #   (h2 + c2) * s3 + b3  ==  h2 * s3 + (s3 * c2 + b3)
    b3f = params["b3"] + params["s3"] * params["c2"]

    # Streamed activations: only the batch dim is padded; lanes stay at F.
    x_io = x if stream_dtype is None else x.astype(stream_dtype)
    x_io = jnp.pad(x_io, ((0, BP - B), (0, 0)))

    # Zero-padding of the hidden dim keeps padded lanes exactly zero through every
    # layer (affine 0, PReLU(0)=0, zero weight rows/cols, zero bias pad), so the
    # residual adds stay correct.
    tensors = [
        x_io,
        # lin1 (BN folded into weight)
        _pad2(w1f, F, HP).astype(matmul_dtype), _pad2(c1f, 1, HP),
        # lin2 (Linear bias folded into b3)
        _pad2(params["s2"], 1, HP), _pad2(params["b2"], 1, HP),
        _pad2(params["w2"], HP, HP).astype(matmul_dtype),
        # lin3
        _pad2(params["s3"], 1, HP), _pad2(b3f, 1, HP),
        _pad2(params["w3"], HP, HP).astype(matmul_dtype), _pad2(params["c3"], 1, HP),
        # lin4
        _pad2(params["s4"], 1, HP), _pad2(params["b4"], 1, HP),
        _pad2(params["w4"], HP, HP).astype(matmul_dtype), _pad2(params["c4"], 1, HP),
        # lin5
        _pad2(params["s5"], 1, HP), _pad2(params["b5"], 1, HP),
        _pad2(params["w5"], HP, F).astype(matmul_dtype), _pad2(params["c5"], 1, F),
    ]

    def resident(shape):
        # Whole array, constant block index -> DMA'd once, VMEM-resident across steps.
        return pl.BlockSpec(shape, lambda i, alphas: (0,) * len(shape))

    in_specs = [pl.BlockSpec((tb_eff, F), lambda i, alphas: (i, 0))]   # x tile
    in_specs += [resident(t.shape) for t in tensors[1:]]               # params
    out_spec = pl.BlockSpec((tb_eff, F), lambda i, alphas: (i, 0))

    # Advisory cost estimate (per whole call).
    flops = int(2 * BP * HP * (2 * F + 3 * HP))
    bytes_accessed = int(sum(t.size * t.dtype.itemsize for t in tensors)
                         + BP * F * jnp.dtype(x.dtype).itemsize)

    grid_spec = pltpu.PrefetchScalarGridSpec(
        num_scalar_prefetch=1,                  # PReLU slopes land in SMEM
        grid=(BP // tb_eff,),
        in_specs=in_specs,
        out_specs=out_spec,
        scratch_shapes=[pltpu.VMEM((tb_eff, HP), f32)],   # residual stash (h1 / x2)
    )

    out = pl.pallas_call(
        functools.partial(_linear_block_kernel, matmul_dtype=matmul_dtype),
        out_shape=jax.ShapeDtypeStruct((BP, F), x.dtype),
        grid_spec=grid_spec,
        compiler_params=pltpu.CompilerParams(
            # Megacore sharding of the batch grid on v7x.  If profiling shows one
            # TC idle there, switch to pltpu.CORE_PARALLEL for this axis.
            dimension_semantics=("parallel",),
        ),
        cost_estimate=pl.CostEstimate(
            flops=flops, transcendentals=0, bytes_accessed=bytes_accessed),
    )(params["alphas"], *tensors)

    return out[:B]


def linear_block_reference(x, params, matmul_dtype=jnp.float32, folded=False):
    """Pure-JAX reference.

    folded=False: the PyTorch-spec math (ground truth).
    folded=True:  mirrors the kernel's algebra (lin1 BN fold + lin2-bias fold)
                  for a matched-precision bf16 comparison.
    """
    md = matmul_dtype

    def mm(z, w):
        return jnp.dot(z.astype(md), w.astype(md),
                       preferred_element_type=jnp.float32)

    def bn_prelu(h, i):
        z = h * params[f"s{i}"] + params[f"b{i}"]
        return jnp.where(z > 0, z, params["alphas"][i - 2] * z)

    if folded:
        w1f = params["w1"] * params["s1"][0][:, None]
        c1f = params["b1"] @ params["w1"] + params["c1"]
        b3f = params["b3"] + params["s3"] * params["c2"]
        h1 = mm(x, w1f) + c1f
        h2 = mm(bn_prelu(h1, 2), params["w2"])
        z3 = h2 * params["s3"] + b3f
        z3 = jnp.where(z3 > 0, z3, params["alphas"][1] * z3)
        h3 = mm(z3, params["w3"]) + params["c3"]
        x2 = (h3 + h1) * 0.5
        h4 = mm(bn_prelu(x2, 4), params["w4"]) + params["c4"]
        x3 = (h4 + x2) * 0.5
        return mm(bn_prelu(x3, 5), params["w5"]) + params["c5"]

    h1 = mm(x * params["s1"] + params["b1"], params["w1"]) + params["c1"]
    h2 = mm(bn_prelu(h1, 2), params["w2"]) + params["c2"]
    h3 = mm(bn_prelu(h2, 3), params["w3"]) + params["c3"]
    x2 = (h3 + h1) / 2
    h4 = mm(bn_prelu(x2, 4), params["w4"]) + params["c4"]
    x3 = (h4 + x2) / 2
    return mm(bn_prelu(x3, 5), params["w5"]) + params["c5"]


def _fold_bn(gamma, beta, running_mean, running_var, eps=1e-5):
    scale = gamma / jnp.sqrt(running_var + eps)
    shift = beta - running_mean * scale
    return scale[None, :], shift[None, :]


def make_params(key, n_feats):
    snd = 6 * n_feats
    dims_in = [n_feats, snd, snd, snd, snd]
    dims_out = [snd, snd, snd, snd, n_feats]
    params = {}
    keys = jax.random.split(key, 5 * 6)
    ki = 0
    for i in range(1, 6):
        di, do = dims_in[i - 1], dims_out[i - 1]
        gamma = 1.0 + 0.1 * jax.random.normal(keys[ki], (di,), jnp.float32); ki += 1
        beta = 0.1 * jax.random.normal(keys[ki], (di,), jnp.float32); ki += 1
        rmean = 0.05 * jax.random.normal(keys[ki], (di,), jnp.float32); ki += 1
        rvar = jnp.abs(jax.random.normal(keys[ki], (di,), jnp.float32)) + 0.5; ki += 1
        s, b = _fold_bn(gamma, beta, rmean, rvar)
        params[f"s{i}"] = s
        params[f"b{i}"] = b
        # Linear weight stored as (in, out); PyTorch's (out, in) transposed.
        params[f"w{i}"] = (
            jax.random.normal(keys[ki], (di, do), jnp.float32) / jnp.sqrt(di)
        ); ki += 1
        params[f"c{i}"] = 0.01 * jax.random.normal(keys[ki], (1, do), jnp.float32); ki += 1
    # PReLU slopes for lin2..lin5 (PyTorch default init 0.25).
    params["alphas"] = jnp.full((4,), 0.25, jnp.float32)
    return params


if __name__ == "__main__":
    n_feats = 32
    key = jax.random.PRNGKey(0)
    k_x, k_p, k_xb = jax.random.split(key, 3)
    params = make_params(k_p, n_feats)

    # Small batch (pads to one 128-row batch tile -> grid of 1).
    x = jax.random.normal(k_x, (8, n_feats), jnp.float32)

    # 1) f32 matmuls: check against the pure-JAX f32 spec reference
    #    (the lin1 / lin2-bias folds are algebraic identities; only fp reorder).
    out_f32 = jax.block_until_ready(
        linear_block_forward(x, params, matmul_dtype=jnp.float32))
    ref_f32 = linear_block_reference(x, params, matmul_dtype=jnp.float32)
    assert out_f32.shape == (8, n_feats)
    assert jnp.allclose(out_f32, ref_f32, atol=1e-3, rtol=1e-3), "f32 mismatch"

    # 2) bf16 matmuls + bf16-streamed activations (MXU fast path, halved activation
    #    DMA): check against a matched-precision folded reference.
    out_bf = jax.block_until_ready(
        linear_block_forward(x, params, matmul_dtype=jnp.bfloat16,
                             stream_dtype=jnp.bfloat16))
    ref_bf = linear_block_reference(x, params, matmul_dtype=jnp.bfloat16, folded=True)
    assert jnp.allclose(out_bf, ref_bf, atol=2e-2, rtol=2e-2), "bf16 mismatch"

    # 3) Multi-tile batch (grid of 3 at tb=256): exercises the batch grid,
    #    ragged padding, and the larger batch tile.
    xb = jax.random.normal(k_xb, (600, n_feats), jnp.float32)
    out_b = jax.block_until_ready(
        linear_block_forward(xb, params, matmul_dtype=jnp.float32, tb=256))
    ref_b = linear_block_reference(xb, params, matmul_dtype=jnp.float32)
    assert out_b.shape == (600, n_feats)
    assert jnp.allclose(out_b, ref_b, atol=1e-3, rtol=1e-3), "tiled-batch mismatch"

    print("KERNEL_OK")
</pallas_src>

<mosaic_0001>
module attributes {stable_mosaic.version = 11 : i64} {
  func.func @_linear_block_kernel(%arg0: i32, %arg1: memref<4xf32, #tpu.memory_space<smem>>, %arg2: memref<128x32xf32, #tpu.memory_space<vmem>>, %arg3: memref<32x256xf32, #tpu.memory_space<vmem>>, %arg4: memref<1x256xf32, #tpu.memory_space<vmem>>, %arg5: memref<1x256xf32, #tpu.memory_space<vmem>>, %arg6: memref<1x256xf32, #tpu.memory_space<vmem>>, %arg7: memref<256x256xf32, #tpu.memory_space<vmem>>, %arg8: memref<1x256xf32, #tpu.memory_space<vmem>>, %arg9: memref<1x256xf32, #tpu.memory_space<vmem>>, %arg10: memref<256x256xf32, #tpu.memory_space<vmem>>, %arg11: memref<1x256xf32, #tpu.memory_space<vmem>>, %arg12: memref<1x256xf32, #tpu.memory_space<vmem>>, %arg13: memref<1x256xf32, #tpu.memory_space<vmem>>, %arg14: memref<256x256xf32, #tpu.memory_space<vmem>>, %arg15: memref<1x256xf32, #tpu.memory_space<vmem>>, %arg16: memref<1x256xf32, #tpu.memory_space<vmem>>, %arg17: memref<1x256xf32, #tpu.memory_space<vmem>>, %arg18: memref<256x32xf32, #tpu.memory_space<vmem>>, %arg19: memref<1x32xf32, #tpu.memory_space<vmem>>, %arg20: memref<128x32xf32, #tpu.memory_space<vmem>>, %arg21: memref<128x256xf32, #tpu.memory_space<vmem>>) attributes {dimension_semantics = [#tpu.dimension_semantics<parallel>], iteration_bounds = array<i64: 1>, scalar_prefetch = 1 : i64, scratch_operands = 1 : i64, tpu.core_type = #tpu.core_type<tc>, window_params = [{transform_indices = @transform_0, window_bounds = array<i64: 128, 32>}, {pipeline_mode = #tpu.pipeline_mode<synchronous>, transform_indices = @transform_1, window_bounds = array<i64: 32, 256>}, {pipeline_mode = #tpu.pipeline_mode<synchronous>, transform_indices = @transform_2, window_bounds = array<i64: 1, 256>}, {pipeline_mode = #tpu.pipeline_mode<synchronous>, transform_indices = @transform_3, window_bounds = array<i64: 1, 256>}, {pipeline_mode = #tpu.pipeline_mode<synchronous>, transform_indices = @transform_4, window_bounds = array<i64: 1, 256>}, {pipeline_mode = #tpu.pipeline_mode<synchronous>, transform_indices = @transform_5, window_bounds = array<i64: 256, 256>}, {pipeline_mode = #tpu.pipeline_mode<synchronous>, transform_indices = @transform_6, window_bounds = array<i64: 1, 256>}, {pipeline_mode = #tpu.pipeline_mode<synchronous>, transform_indices = @transform_7, window_bounds = array<i64: 1, 256>}, {pipeline_mode = #tpu.pipeline_mode<synchronous>, transform_indices = @transform_8, window_bounds = array<i64: 256, 256>}, {pipeline_mode = #tpu.pipeline_mode<synchronous>, transform_indices = @transform_9, window_bounds = array<i64: 1, 256>}, {pipeline_mode = #tpu.pipeline_mode<synchronous>, transform_indices = @transform_10, window_bounds = array<i64: 1, 256>}, {pipeline_mode = #tpu.pipeline_mode<synchronous>, transform_indices = @transform_11, window_bounds = array<i64: 1, 256>}, {pipeline_mode = #tpu.pipeline_mode<synchronous>, transform_indices = @transform_12, window_bounds = array<i64: 256, 256>}, {pipeline_mode = #tpu.pipeline_mode<synchronous>, transform_indices = @transform_13, window_bounds = array<i64: 1, 256>}, {pipeline_mode = #tpu.pipeline_mode<synchronous>, transform_indices = @transform_14, window_bounds = array<i64: 1, 256>}, {pipeline_mode = #tpu.pipeline_mode<synchronous>, transform_indices = @transform_15, window_bounds = array<i64: 1, 256>}, {pipeline_mode = #tpu.pipeline_mode<synchronous>, transform_indices = @transform_16, window_bounds = array<i64: 256, 32>}, {pipeline_mode = #tpu.pipeline_mode<synchronous>, transform_indices = @transform_17, window_bounds = array<i64: 1, 32>}, {transform_indices = @transform_18, window_bounds = array<i64: 128, 32>}]} {
    %c0 = arith.constant 0 : index
    %c0_0 = arith.constant 0 : index
    %0 = vector.load %arg2[%c0, %c0_0] : memref<128x32xf32, #tpu.memory_space<vmem>>, vector<128x32xf32>
    %c0_1 = arith.constant 0 : index
    %c0_2 = arith.constant 0 : index
    %1 = vector.load %arg3[%c0_1, %c0_2] : memref<32x256xf32, #tpu.memory_space<vmem>>, vector<32x256xf32>
    %cst = arith.constant dense<0.000000e+00> : vector<128x256xf32>
    %2 = tpu.matmul %0, %1, %cst {dimension_numbers = #tpu.dot_dimension_numbers<[1], [0], [0], [1], [0, 0, 1, 1], [], []>} : vector<128x32xf32>, vector<32x256xf32>, vector<128x256xf32> -> vector<128x256xf32>
    %c0_3 = arith.constant 0 : index
    %c0_4 = arith.constant 0 : index
    %3 = vector.load %arg4[%c0_3, %c0_4] : memref<1x256xf32, #tpu.memory_space<vmem>>, vector<1x256xf32>
    %4 = vector.broadcast %3 : vector<1x256xf32> to vector<128x256xf32>
    %5 = arith.addf %2, %4 : vector<128x256xf32>
    %c0_5 = arith.constant 0 : index
    %c0_6 = arith.constant 0 : index
    %6 = vector.load %arg21[%c0_5, %c0_6] : memref<128x256xf32, #tpu.memory_space<vmem>>, vector<128x256xf32>
    tpu.vector_store %arg21[%c0_5, %c0_6], %5 {strides = array<i32>} : memref<128x256xf32, #tpu.memory_space<vmem>>, vector<128x256xf32>,
    %c0_7 = arith.constant 0 : index
    %c0_8 = arith.constant 0 : index
    %7 = vector.load %arg21[%c0_7, %c0_8] : memref<128x256xf32, #tpu.memory_space<vmem>>, vector<128x256xf32>
    %c0_9 = arith.constant 0 : index
    %8 = memref.load %arg1[%c0_9] : memref<4xf32, #tpu.memory_space<smem>>
    %c0_10 = arith.constant 0 : index
    %c0_11 = arith.constant 0 : index
    %9 = vector.load %arg5[%c0_10, %c0_11] : memref<1x256xf32, #tpu.memory_space<vmem>>, vector<1x256xf32>
    %10 = vector.broadcast %9 : vector<1x256xf32> to vector<128x256xf32>
    %11 = arith.mulf %7, %10 : vector<128x256xf32>
    %c0_12 = arith.constant 0 : index
    %c0_13 = arith.constant 0 : index
    %12 = vector.load %arg6[%c0_12, %c0_13] : memref<1x256xf32, #tpu.memory_space<vmem>>, vector<1x256xf32>
    %13 = vector.broadcast %12 : vector<1x256xf32> to vector<128x256xf32>
    %14 = arith.addf %11, %13 : vector<128x256xf32>
    %cst_14 = arith.constant 0.000000e+00 : f32
    %15 = vector.broadcast %cst_14 : f32 to vector<128x256xf32>
    %16 = arith.cmpf ogt, %14, %15 : vector<128x256xf32>
    %17 = vector.broadcast %8 : f32 to vector<128x256xf32>
    %18 = arith.mulf %17, %14 : vector<128x256xf32>
    %19 = arith.select %16, %14, %18 : vector<128x256xi1>, vector<128x256xf32>
    %c0_15 = arith.constant 0 : index
    %c0_16 = arith.constant 0 : index
    %20 = vector.load %arg7[%c0_15, %c0_16] : memref<256x256xf32, #tpu.memory_space<vmem>>, vector<256x256xf32>
    %cst_17 = arith.constant dense<0.000000e+00> : vector<128x256xf32>
    %21 = tpu.matmul %19, %20, %cst_17 {dimension_numbers = #tpu.dot_dimension_numbers<[1], [0], [0], [1], [0, 0, 1, 1], [], []>} : vector<128x256xf32>, vector<256x256xf32>, vector<128x256xf32> -> vector<128x256xf32>
    %c1 = arith.constant 1 : index
    %22 = memref.load %arg1[%c1] : memref<4xf32, #tpu.memory_space<smem>>
    %c0_18 = arith.constant 0 : index
    %c0_19 = arith.constant 0 : index
    %23 = vector.load %arg8[%c0_18, %c0_19] : memref<1x256xf32, #tpu.memory_space<vmem>>, vector<1x256xf32>
    %24 = vector.broadcast %23 : vector<1x256xf32> to vector<128x256xf32>
    %25 = arith.mulf %21, %24 : vector<128x256xf32>
    %c0_20 = arith.constant 0 : index
    %c0_21 = arith.constant 0 : index
    %26 = vector.load %arg9[%c0_20, %c0_21] : memref<1x256xf32, #tpu.memory_space<vmem>>, vector<1x256xf32>
    %27 = vector.broadcast %26 : vector<1x256xf32> to vector<128x256xf32>
    %28 = arith.addf %25, %27 : vector<128x256xf32>
    %cst_22 = arith.constant 0.000000e+00 : f32
    %29 = vector.broadcast %cst_22 : f32 to vector<128x256xf32>
    %30 = arith.cmpf ogt, %28, %29 : vector<128x256xf32>
    %31 = vector.broadcast %22 : f32 to vector<128x256xf32>
    %32 = arith.mulf %31, %28 : vector<128x256xf32>
    %33 = arith.select %30, %28, %32 : vector<128x256xi1>, vector<128x256xf32>
    %c0_23 = arith.constant 0 : index
    %c0_24 = arith.constant 0 : index
    %34 = vector.load %arg10[%c0_23, %c0_24] : memref<256x256xf32, #tpu.memory_space<vmem>>, vector<256x256xf32>
    %cst_25 = arith.constant dense<0.000000e+00> : vector<128x256xf32>
    %35 = tpu.matmul %33, %34, %cst_25 {dimension_numbers = #tpu.dot_dimension_numbers<[1], [0], [0], [1], [0, 0, 1, 1], [], []>} : vector<128x256xf32>, vector<256x256xf32>, vector<128x256xf32> -> vector<128x256xf32>
    %c0_26 = arith.constant 0 : index
    %c0_27 = arith.constant 0 : index
    %36 = vector.load %arg11[%c0_26, %c0_27] : memref<1x256xf32, #tpu.memory_space<vmem>>, vector<1x256xf32>
    %37 = vector.broadcast %36 : vector<1x256xf32> to vector<128x256xf32>
    %38 = arith.addf %35, %37 : vector<128x256xf32>
    %c0_28 = arith.constant 0 : index
    %c0_29 = arith.constant 0 : index
    %39 = vector.load %arg21[%c0_28, %c0_29] : memref<128x256xf32, #tpu.memory_space<vmem>>, vector<128x256xf32>
    %40 = arith.addf %38, %39 : vector<128x256xf32>
    %cst_30 = arith.constant 5.000000e-01 : f32
    %41 = vector.broadcast %cst_30 : f32 to vector<128x256xf32>
    %42 = arith.mulf %40, %41 : vector<128x256xf32>
    %c0_31 = arith.constant 0 : index
    %c0_32 = arith.constant 0 : index
    %43 = vector.load %arg21[%c0_31, %c0_32] : memref<128x256xf32, #tpu.memory_space<vmem>>, vector<128x256xf32>
    tpu.vector_store %arg21[%c0_31, %c0_32], %42 {strides = array<i32>} : memref<128x256xf32, #tpu.memory_space<vmem>>, vector<128x256xf32>,
    %c0_33 = arith.constant 0 : index
    %c0_34 = arith.constant 0 : index
    %44 = vector.load %arg21[%c0_33, %c0_34] : memref<128x256xf32, #tpu.memory_space<vmem>>, vector<128x256xf32>
    %c2 = arith.constant 2 : index
    %45 = memref.load %arg1[%c2] : memref<4xf32, #tpu.memory_space<smem>>
    %c0_35 = arith.constant 0 : index
    %c0_36 = arith.constant 0 : index
    %46 = vector.load %arg12[%c0_35, %c0_36] : memref<1x256xf32, #tpu.memory_space<vmem>>, vector<1x256xf32>
    %47 = vector.broadcast %46 : vector<1x256xf32> to vector<128x256xf32>
    %48 = arith.mulf %44, %47 : vector<128x256xf32>
    %c0_37 = arith.constant 0 : index
    %c0_38 = arith.constant 0 : index
    %49 = vector.load %arg13[%c0_37, %c0_38] : memref<1x256xf32, #tpu.memory_space<vmem>>, vector<1x256xf32>
    %50 = vector.broadcast %49 : vector<1x256xf32> to vector<128x256xf32>
    %51 = arith.addf %48, %50 : vector<128x256xf32>
    %cst_39 = arith.constant 0.000000e+00 : f32
    %52 = vector.broadcast %cst_39 : f32 to vector<128x256xf32>
    %53 = arith.cmpf ogt, %51, %52 : vector<128x256xf32>
    %54 = vector.broadcast %45 : f32 to vector<128x256xf32>
    %55 = arith.mulf %54, %51 : vector<128x256xf32>
    %56 = arith.select %53, %51, %55 : vector<128x256xi1>, vector<128x256xf32>
    %c0_40 = arith.constant 0 : index
    %c0_41 = arith.constant 0 : index
    %57 = vector.load %arg14[%c0_40, %c0_41] : memref<256x256xf32, #tpu.memory_space<vmem>>, vector<256x256xf32>
    %cst_42 = arith.constant dense<0.000000e+00> : vector<128x256xf32>
    %58 = tpu.matmul %56, %57, %cst_42 {dimension_numbers = #tpu.dot_dimension_numbers<[1], [0], [0], [1], [0, 0, 1, 1], [], []>} : vector<128x256xf32>, vector<256x256xf32>, vector<128x256xf32> -> vector<128x256xf32>
    %c0_43 = arith.constant 0 : index
    %c0_44 = arith.constant 0 : index
    %59 = vector.load %arg15[%c0_43, %c0_44] : memref<1x256xf32, #tpu.memory_space<vmem>>, vector<1x256xf32>
    %60 = vector.broadcast %59 : vector<1x256xf32> to vector<128x256xf32>
    %61 = arith.addf %58, %60 : vector<128x256xf32>
    %c0_45 = arith.constant 0 : index
    %c0_46 = arith.constant 0 : index
    %62 = vector.load %arg21[%c0_45, %c0_46] : memref<128x256xf32, #tpu.memory_space<vmem>>, vector<128x256xf32>
    %63 = arith.addf %61, %62 : vector<128x256xf32>
    %cst_47 = arith.constant 5.000000e-01 : f32
    %64 = vector.broadcast %cst_47 : f32 to vector<128x256xf32>
    %65 = arith.mulf %63, %64 : vector<128x256xf32>
    %c3 = arith.constant 3 : index
    %66 = memref.load %arg1[%c3] : memref<4xf32, #tpu.memory_space<smem>>
    %c0_48 = arith.constant 0 : index
    %c0_49 = arith.constant 0 : index
    %67 = vector.load %arg16[%c0_48, %c0_49] : memref<1x256xf32, #tpu.memory_space<vmem>>, vector<1x256xf32>
    %68 = vector.broadcast %67 : vector<1x256xf32> to vector<128x256xf32>
    %69 = arith.mulf %65, %68 : vector<128x256xf32>
    %c0_50 = arith.constant 0 : index
    %c0_51 = arith.constant 0 : index
    %70 = vector.load %arg17[%c0_50, %c0_51] : memref<1x256xf32, #tpu.memory_space<vmem>>, vector<1x256xf32>
    %71 = vector.broadcast %70 : vector<1x256xf32> to vector<128x256xf32>
    %72 = arith.addf %69, %71 : vector<128x256xf32>
    %cst_52 = arith.constant 0.000000e+00 : f32
    %73 = vector.broadcast %cst_52 : f32 to vector<128x256xf32>
    %74 = arith.cmpf ogt, %72, %73 : vector<128x256xf32>
    %75 = vector.broadcast %66 : f32 to vector<128x256xf32>
    %76 = arith.mulf %75, %72 : vector<128x256xf32>
    %77 = arith.select %74, %72, %76 : vector<128x256xi1>, vector<128x256xf32>
    %c0_53 = arith.constant 0 : index
    %c0_54 = arith.constant 0 : index
    %78 = vector.load %arg18[%c0_53, %c0_54] : memref<256x32xf32, #tpu.memory_space<vmem>>, vector<256x32xf32>
    %cst_55 = arith.constant dense<0.000000e+00> : vector<128x32xf32>
    %79 = tpu.matmul %77, %78, %cst_55 {dimension_numbers = #tpu.dot_dimension_numbers<[1], [0], [0], [1], [0, 0, 1, 1], [], []>} : vector<128x256xf32>, vector<256x32xf32>, vector<128x32xf32> -> vector<128x32xf32>
    %c0_56 = arith.constant 0 : index
    %c0_57 = arith.constant 0 : index
    %80 = vector.load %arg19[%c0_56, %c0_57] : memref<1x32xf32, #tpu.memory_space<vmem>>, vector<1x32xf32>
    %81 = vector.broadcast %80 : vector<1x32xf32> to vector<128x32xf32>
    %82 = arith.addf %79, %81 : vector<128x32xf32>
    %c0_58 = arith.constant 0 : index
    %c0_59 = arith.constant 0 : index
    %83 = vector.load %arg20[%c0_58, %c0_59] : memref<128x32xf32, #tpu.memory_space<vmem>>, vector<128x32xf32>
    tpu.vector_store %arg20[%c0_58, %c0_59], %82 {strides = array<i32>} : memref<128x32xf32, #tpu.memory_space<vmem>>, vector<128x32xf32>,
    return
  }
  func.func @transform_0(%arg0: i32, %arg1: memref<4xf32, #tpu.memory_space<smem>>) -> (i32, i32) {
    %c0_i32 = arith.constant 0 : i32
    %c0_i32_0 = arith.constant 0 : i32
    return %arg0, %c0_i32 : i32, i32
  }
  func.func @transform_1(%arg0: i32, %arg1: memref<4xf32, #tpu.memory_space<smem>>) -> (i32, i32) {
    %c0_i32 = arith.constant 0 : i32
    %c0_i32_0 = arith.constant 0 : i32
    %c0_i32_1 = arith.constant 0 : i32
    return %c0_i32, %c0_i32_0 : i32, i32
  }
  func.func @transform_2(%arg0: i32, %arg1: memref<4xf32, #tpu.memory_space<smem>>) -> (i32, i32) {
    %c0_i32 = arith.constant 0 : i32
    %c0_i32_0 = arith.constant 0 : i32
    %c0_i32_1 = arith.constant 0 : i32
    return %c0_i32, %c0_i32_0 : i32, i32
  }
  func.func @transform_3(%arg0: i32, %arg1: memref<4xf32, #tpu.memory_space<smem>>) -> (i32, i32) {
    %c0_i32 = arith.constant 0 : i32
    %c0_i32_0 = arith.constant 0 : i32
    %c0_i32_1 = arith.constant 0 : i32
    return %c0_i32, %c0_i32_0 : i32, i32
  }
  func.func @transform_4(%arg0: i32, %arg1: memref<4xf32, #tpu.memory_space<smem>>) -> (i32, i32) {
    %c0_i32 = arith.constant 0 : i32
    %c0_i32_0 = arith.constant 0 : i32
    %c0_i32_1 = arith.constant 0 : i32
    return %c0_i32, %c0_i32_0 : i32, i32
  }
  func.func @transform_5(%arg0: i32, %arg1: memref<4xf32, #tpu.memory_space<smem>>) -> (i32, i32) {
    %c0_i32 = arith.constant 0 : i32
    %c0_i32_0 = arith.constant 0 : i32
    %c0_i32_1 = arith.constant 0 : i32
    return %c0_i32, %c0_i32_0 : i32, i32
  }
  func.func @transform_6(%arg0: i32, %arg1: memref<4xf32, #tpu.memory_space<smem>>) -> (i32, i32) {
    %c0_i32 = arith.constant 0 : i32
    %c0_i32_0 = arith.constant 0 : i32
    %c0_i32_1 = arith.constant 0 : i32
    return %c0_i32, %c0_i32_0 : i32, i32
  }
  func.func @transform_7(%arg0: i32, %arg1: memref<4xf32, #tpu.memory_space<smem>>) -> (i32, i32) {
    %c0_i32 = arith.constant 0 : i32
    %c0_i32_0 = arith.constant 0 : i32
    %c0_i32_1 = arith.constant 0 : i32
    return %c0_i32, %c0_i32_0 : i32, i32
  }
  func.func @transform_8(%arg0: i32, %arg1: memref<4xf32, #tpu.memory_space<smem>>) -> (i32, i32) {
    %c0_i32 = arith.constant 0 : i32
    %c0_i32_0 = arith.constant 0 : i32
    %c0_i32_1 = arith.constant 0 : i32
    return %c0_i32, %c0_i32_0 : i32, i32
  }
  func.func @transform_9(%arg0: i32, %arg1: memref<4xf32, #tpu.memory_space<smem>>) -> (i32, i32) {
    %c0_i32 = arith.constant 0 : i32
    %c0_i32_0 = arith.constant 0 : i32
    %c0_i32_1 = arith.constant 0 : i32
    return %c0_i32, %c0_i32_0 : i32, i32
  }
  func.func @transform_10(%arg0: i32, %arg1: memref<4xf32, #tpu.memory_space<smem>>) -> (i32, i32) {
    %c0_i32 = arith.constant 0 : i32
    %c0_i32_0 = arith.constant 0 : i32
    %c0_i32_1 = arith.constant 0 : i32
    return %c0_i32, %c0_i32_0 : i32, i32
  }
  func.func @transform_11(%arg0: i32, %arg1: memref<4xf32, #tpu.memory_space<smem>>) -> (i32, i32) {
    %c0_i32 = arith.constant 0 : i32
    %c0_i32_0 = arith.constant 0 : i32
    %c0_i32_1 = arith.constant 0 : i32
    return %c0_i32, %c0_i32_0 : i32, i32
  }
  func.func @transform_12(%arg0: i32, %arg1: memref<4xf32, #tpu.memory_space<smem>>) -> (i32, i32) {
    %c0_i32 = arith.constant 0 : i32
    %c0_i32_0 = arith.constant 0 : i32
    %c0_i32_1 = arith.constant 0 : i32
    return %c0_i32, %c0_i32_0 : i32, i32
  }
  func.func @transform_13(%arg0: i32, %arg1: memref<4xf32, #tpu.memory_space<smem>>) -> (i32, i32) {
    %c0_i32 = arith.constant 0 : i32
    %c0_i32_0 = arith.constant 0 : i32
    %c0_i32_1 = arith.constant 0 : i32
    return %c0_i32, %c0_i32_0 : i32, i32
  }
  func.func @transform_14(%arg0: i32, %arg1: memref<4xf32, #tpu.memory_space<smem>>) -> (i32, i32) {
    %c0_i32 = arith.constant 0 : i32
    %c0_i32_0 = arith.constant 0 : i32
    %c0_i32_1 = arith.constant 0 : i32
    return %c0_i32, %c0_i32_0 : i32, i32
  }
  func.func @transform_15(%arg0: i32, %arg1: memref<4xf32, #tpu.memory_space<smem>>) -> (i32, i32) {
    %c0_i32 = arith.constant 0 : i32
    %c0_i32_0 = arith.constant 0 : i32
    %c0_i32_1 = arith.constant 0 : i32
    return %c0_i32, %c0_i32_0 : i32, i32
  }
  func.func @transform_16(%arg0: i32, %arg1: memref<4xf32, #tpu.memory_space<smem>>) -> (i32, i32) {
    %c0_i32 = arith.constant 0 : i32
    %c0_i32_0 = arith.constant 0 : i32
    %c0_i32_1 = arith.constant 0 : i32
    return %c0_i32, %c0_i32_0 : i32, i32
  }
  func.func @transform_17(%arg0: i32, %arg1: memref<4xf32, #tpu.memory_space<smem>>) -> (i32, i32) {
    %c0_i32 = arith.constant 0 : i32
    %c0_i32_0 = arith.constant 0 : i32
    %c0_i32_1 = arith.constant 0 : i32
    return %c0_i32, %c0_i32_0 : i32, i32
  }
  func.func @transform_18(%arg0: i32, %arg1: memref<4xf32, #tpu.memory_space<smem>>) -> (i32, i32) {
    %c0_i32 = arith.constant 0 : i32
    %c0_i32_0 = arith.constant 0 : i32
    return %arg0, %c0_i32 : i32, i32
  }
}

</mosaic_0001>

<bundles_post_ra>
// kernel: tpu_custom_call.1
= control target key start
LH: loop header
LB: loop body
LE: loop exit
PB: predicated region body
PF: predicated region fallthrough
CT: control target
= control target key end

     0   :  { %s4433_s0 = inlined_call_operand.hbm [shape: f32[4], index: 0, kind: input, shape index: {}]   ;;  %s4434_s1 = inlined_call_operand.vmem [shape: f32[128,32], index: 1, kind: input, shape index: {}]   ;;  %s4435_s2 = inlined_call_operand.hbm [shape: f32[32,256], index: 2, kind: input, shape index: {}]   ;;  %s4436_s3 = inlined_call_operand.vmem [shape: f32[1,256], index: 3, kind: input, shape index: {}]   ;;  %s4437_s4 = inlined_call_operand.hbm [shape: f32[1,256], index: 4, kind: input, shape index: {}]   ;;  %s4438_s5 = inlined_call_operand.hbm [shape: f32[1,256], index: 5, kind: input, shape index: {}]   ;;  %s4439_s6 = inlined_call_operand.hbm [shape: f32[256,256], index: 6, kind: input, shape index: {}]   ;;  %s4440_s7 = inlined_call_operand.hbm [shape: f32[1,256], index: 7, kind: input, shape index: {}]   ;;  %s4441_s8 = inlined_call_operand.hbm [shape: f32[1,256], index: 8, kind: input, shape index: {}]   ;;  %s4442_s9 = inlined_call_operand.vmem [shape: f32[256,256], index: 9, kind: input, shape index: {}]   ;;  %s4443_s10 = inlined_call_operand.vmem [shape: f32[1,256], index: 10, kind: input, shape index: {}]   ;;  %s4444_s11 = inlined_call_operand.hbm [shape: f32[1,256], index: 11, kind: input, shape index: {}]   ;;  %s4445_s12 = inlined_call_operand.vmem [shape: f32[1,256], index: 12, kind: input, shape index: {}]   ;;  %s4446_s13 = inlined_call_operand.hbm [shape: f32[256,256], index: 13, kind: input, shape index: {}]   ;;  %s4447_s14 = inlined_call_operand.vmem [shape: f32[1,256], index: 14, kind: input, shape index: {}]   ;;  %s4448_s15 = inlined_call_operand.vmem [shape: f32[1,256], index: 15, kind: input, shape index: {}]   ;;  %s4449_s16 = inlined_call_operand.vmem [shape: f32[1,256], index: 16, kind: input, shape index: {}]   ;;  %s4450_s17 = inlined_call_operand.vmem [shape: f32[256,32], index: 17, kind: input, shape index: {}]   ;;  %s4451_s18 = inlined_call_operand.vmem [shape: f32[1,32], index: 18, kind: input, shape index: {}]   ;;  %s4452_s19 = inlined_call_operand.vmem [shape: f32[128,32], index: 19, kind: output, shape index: {}]  }
   0x1   :  { %4464 = sst [smem:[#allocation30_spill]] %s4433_s0 }
   0x2   :  { %4465 = sst [smem:[#allocation31_spill]] %s4434_s1  ;;  %s4469_s20 = sld [smem:[#allocation30_spill]] }
   0x3   :  { %4466 = sst [smem:[#allocation32_spill]] %s4435_s2 }
   0x4   :  { %4467 = sst [smem:[#allocation33_spill]] %s4436_s3 }
   0x5   :  { %4468 = sst [smem:[#allocation34_spill]] %s4445_s12 }
   0x8   :  { %s2677_s12 = scalar_lea.hbm %s4469_s20, 16 }
   0x9   :  { %p2678_p0 = scmp.ne.s32.totalorder %s4469_s20, %s2677_s12  ;;  %p2681_p1 = scmp.lt.u32.totalorder %s2677_s12, %s4469_s20 }
   0xb   :  { %p2683_p2 = pnand %p2681_p1, %p2678_p0 }
   0xd   :  { %2686 = shalt.err (!%p2683_p2)  }
   0xe   :  { %s2875_s23 = smov [#allocation4]  }
   0xf   :  { %25 = dma.hbm_to_smem %s4469_s20, 16, %s2875_s23, [#allocation3] }
  0x10   :  { %2863 = dma.done.wait [#allocation3], 16 }
  0x11   :  { %2864 = vsyncadd [#allocation3], 4294967280 }
  0x12   :  { %27 = sfence }
  0x13   :  { %28 = vsyncpa [#allocation6], 0 }
  0x14   :  { %29 = vsyncpa [#allocation8], 0 }
  0x15   :  { %30 = vsyncpa [#allocation11], 0 }
  0x16   :  { %31 = vsyncpa [#allocation14], 0 }
  0x17   :  { %32 = vsyncpa [#allocation17], 0  ;;  %s2876_s3 = smov [#allocation7]   ;;  %s2687_s28 = scalar_lea.hbm %s4437_s4, 32 }
  0x18   :  { %s55_s26 = sshll.u32 %s2876_s3, 4  ;;  %p2688_p3 = scmp.ne.s32.totalorder %s4437_s4, %s2687_s28  ;;  %s56_s26 = int_to_ptr.vmem [resolvable:$true] %s55_s26 }
  0x19   :  { %p2691_p4 = scmp.lt.u32.totalorder %s2687_s28, %s4437_s4 }
  0x1b   :  { %p2693_p5 = pnand %p2691_p4, %p2688_p3 }
  0x1d   :  { %2696 = shalt.err (!%p2693_p5)
}
  0x1e   :  { %s2697_s21 = scalar_lea.vmem %s56_s26, 32  ;;  %p2702_p7 = scmp.lt.s32.totalorder %s56_s26, %s56_s26 }
  0x1f   :  { %p2698_p6 = scmp.ne.s32.totalorder %s56_s26, %s2697_s21  ;;  %p2703_p8 = scmp.lt.s32.totalorder %s2697_s21, %s2697_s21 }
  0x21   :  { %p2704_p9 = por %p2703_p8, %p2702_p7 }
  0x23   :  { %p2705_p10 = pnand %p2704_p9, %p2698_p6 }
  0x25   :  { %2708 = shalt.err (!%p2705_p10)
}
  0x26   :  { %58 = dma.hbm_to_vmem [thread:$0]  %s4437_s4, 32, %s56_s26, [#allocation8]  }
  0x27   :  { %s2877_s2 = smov [#allocation10]   ;;  %s2878_s24 = smov [#allocation13]  }
  0x28   :  { %s74_s23 = sshll.u32 %s2877_s2, 4  ;;  %s97_s25 = sshll.u32 %s2878_s24, 4  ;;  %s75_s23 = int_to_ptr.vmem [resolvable:$true] %s74_s23  ;;  %s98_s25 = int_to_ptr.vmem [resolvable:$true] %s97_s25 }
  0x29   :  { %s2709_s12 = scalar_lea.hbm %s4439_s6, 8192 }
  0x2a   :  { %p2710_p11 = scmp.ne.s32.totalorder %s4439_s6, %s2709_s12  ;;  %p2713_p12 = scmp.lt.u32.totalorder %s2709_s12, %s4439_s6 }
  0x2c   :  { %p2715_p13 = pnand %p2713_p12, %p2710_p11 }
  0x2e   :  { %2718 = shalt.err (!%p2715_p13)
}
  0x2f   :  { %s2719_s4 = scalar_lea.vmem %s75_s23, 8192  ;;  %p2724_p1 = scmp.lt.s32.totalorder %s75_s23, %s75_s23 }
  0x30   :  { %p2720_p0 = scmp.ne.s32.totalorder %s75_s23, %s2719_s4  ;;  %p2725_p2 = scmp.lt.s32.totalorder %s2719_s4, %s2719_s4 }
  0x32   :  { %p2726_p3 = por %p2725_p2, %p2724_p1 }
  0x34   :  { %p2727_p4 = pnand %p2726_p3, %p2720_p0 }
  0x36   :  { %2730 = shalt.err (!%p2727_p4)
}
  0x37   :  { %s2879_s26 = smov 256   ;;  %s2880_s20 = smov 16  }
  0x38   :  { %80 = dma.hbm_to_vmem [thread:$0]  %s4439_s6, 8192, %s75_s23, [#allocation11], %s2879_s26, %s2879_s26, %s2880_s20  }
  0x39   :  { %s2731_s24 = scalar_lea.hbm %s4441_s8, 32 }
  0x3a   :  { %p2732_p5 = scmp.ne.s32.totalorder %s4441_s8, %s2731_s24  ;;  %p2735_p6 = scmp.lt.u32.totalorder %s2731_s24, %s4441_s8 }
  0x3c   :  { %p2737_p7 = pnand %p2735_p6, %p2732_p5 }
  0x3e   :  { %2740 = shalt.err (!%p2737_p7)
}
  0x3f   :  { %s2741_s29 = scalar_lea.vmem %s98_s25, 32  ;;  %p2746_p9 = scmp.lt.s32.totalorder %s98_s25, %s98_s25 }
  0x40   :  { %p2742_p8 = scmp.ne.s32.totalorder %s98_s25, %s2741_s29  ;;  %p2747_p10 = scmp.lt.s32.totalorder %s2741_s29, %s2741_s29 }
  0x42   :  { %p2748_p11 = por %p2747_p10, %p2746_p9 }
  0x44   :  { %p2749_p12 = pnand %p2748_p11, %p2742_p8 }
  0x46   :  { %2752 = shalt.err (!%p2749_p12)
}
  0x47   :  { %100 = dma.hbm_to_vmem [thread:$0]  %s4441_s8, 32, %s98_s25, [#allocation14]  }
  0x48   :  { %s2881_s0 = smov [#allocation5]   ;;  %s2882_s4 = smov [#allocation9]  }
  0x49   :  { %s40_s30 = sshll.u32 %s2881_s0, 4  ;;  %s65_s21 = sshll.u32 %s2882_s4, 4  ;;  %s41_s30 = int_to_ptr.vmem [resolvable:$true] %s40_s30  ;;  %s66_s21 = int_to_ptr.vmem [resolvable:$true] %s65_s21 }
  0x4a   :  { %s4470_s2 = sld [smem:[#allocation32_spill]] }
  0x50   :  { %s2753_s24 = scalar_lea.hbm %s4470_s2, 1024 }
  0x51   :  { %p2754_p13 = scmp.ne.s32.totalorder %s4470_s2, %s2753_s24  ;;  %p2757_p0 = scmp.lt.u32.totalorder %s2753_s24, %s4470_s2 }
  0x53   :  { %p2759_p1 = pnand %p2757_p0, %p2754_p13 }
  0x55   :  { %2762 = shalt.err (!%p2759_p1)
}
  0x56   :  { %s2763_s8 = scalar_lea.vmem %s41_s30, 1024  ;;  %p2768_p3 = scmp.lt.s32.totalorder %s41_s30, %s41_s30 }
  0x57   :  { %p2764_p2 = scmp.ne.s32.totalorder %s41_s30, %s2763_s8  ;;  %p2769_p4 = scmp.lt.s32.totalorder %s2763_s8, %s2763_s8 }
  0x59   :  { %p2770_p5 = por %p2769_p4, %p2768_p3 }
  0x5b   :  { %p2771_p6 = pnand %p2770_p5, %p2764_p2 }
  0x5d   :  { %2774 = shalt.err (!%p2771_p6)
}
  0x5e   :  { %46 = dma.hbm_to_vmem [thread:$0]  %s4470_s2, 1024, %s41_s30, [#allocation6], %s2879_s26, %s2879_s26, %s2880_s20  }
  0x5f   :  { %s2775_s0 = scalar_lea.hbm %s4438_s5, 32 }
  0x60   :  { %p2776_p7 = scmp.ne.s32.totalorder %s4438_s5, %s2775_s0  ;;  %p2779_p8 = scmp.lt.u32.totalorder %s2775_s0, %s4438_s5 }
  0x62   :  { %p2781_p9 = pnand %p2779_p8, %p2776_p7 }
  0x64   :  { %2784 = shalt.err (!%p2781_p9)
}
  0x65   :  { %s2785_s3 = scalar_lea.vmem %s66_s21, 32  ;;  %p2790_p11 = scmp.lt.s32.totalorder %s66_s21, %s66_s21 }
  0x66   :  { %p2786_p10 = scmp.ne.s32.totalorder %s66_s21, %s2785_s3  ;;  %p2791_p12 = scmp.lt.s32.totalorder %s2785_s3, %s2785_s3 }
  0x68   :  { %p2792_p13 = por %p2791_p12, %p2790_p11 }
  0x6a   :  { %p2793_p0 = pnand %p2792_p13, %p2786_p10 }
  0x6c   :  { %2796 = shalt.err (!%p2793_p0)
}
  0x6d   :  { %68 = dma.hbm_to_vmem [thread:$0]  %s4438_s5, 32, %s66_s21, [#allocation8]  }
  0x6e   :  { %s2883_s27 = smov [#allocation12]   ;;  %s2884_s28 = smov [#allocation15]  }
  0x6f   :  { %s87_s12 = sshll.u32 %s2883_s27, 4  ;;  %s111_s8 = sshll.u32 %s2884_s28, 4  ;;  %s88_s12 = int_to_ptr.vmem [resolvable:$true] %s87_s12  ;;  %s112_s8 = int_to_ptr.vmem [resolvable:$true] %s111_s8 }
  0x70   :  { %s2797_s6 = scalar_lea.hbm %s4440_s7, 32 }
  0x71   :  { %p2798_p1 = scmp.ne.s32.totalorder %s4440_s7, %s2797_s6  ;;  %p2801_p2 = scmp.lt.u32.totalorder %s2797_s6, %s4440_s7 }
  0x73   :  { %p2803_p3 = pnand %p2801_p2, %p2798_p1 }
  0x75   :  { %2806 = shalt.err (!%p2803_p3)
}
  0x76   :  { %s2807_s5 = scalar_lea.vmem %s88_s12, 32  ;;  %p2812_p5 = scmp.lt.s32.totalorder %s88_s12, %s88_s12 }
  0x77   :  { %p2808_p4 = scmp.ne.s32.totalorder %s88_s12, %s2807_s5  ;;  %p2813_p6 = scmp.lt.s32.totalorder %s2807_s5, %s2807_s5 }
  0x79   :  { %p2814_p7 = por %p2813_p6, %p2812_p5 }
  0x7b   :  { %p2815_p8 = pnand %p2814_p7, %p2808_p4 }
  0x7d   :  { %2818 = shalt.err (!%p2815_p8)
}
  0x7e   :  { %90 = dma.hbm_to_vmem [thread:$0]  %s4440_s7, 32, %s88_s12, [#allocation11]  }
  0x7f   :  { %s2819_s30 = scalar_lea.hbm %s4444_s11, 32 }
  0x80   :  { %p2820_p9 = scmp.ne.s32.totalorder %s4444_s11, %s2819_s30  ;;  %p2823_p10 = scmp.lt.u32.totalorder %s2819_s30, %s4444_s11 }
  0x82   :  { %p2825_p11 = pnand %p2823_p10, %p2820_p9 }
  0x84   :  { %2828 = shalt.err (!%p2825_p11)
}
  0x85   :  { %s2829_s29 = scalar_lea.vmem %s112_s8, 32  ;;  %p2834_p13 = scmp.lt.s32.totalorder %s112_s8, %s112_s8 }
  0x86   :  { %p2830_p12 = scmp.ne.s32.totalorder %s112_s8, %s2829_s29  ;;  %p2835_p0 = scmp.lt.s32.totalorder %s2829_s29, %s2829_s29 }
  0x88   :  { %p2836_p1 = por %p2835_p0, %p2834_p13 }
  0x8a   :  { %p2837_p2 = pnand %p2836_p1, %p2830_p12 }
  0x8c   :  { %2840 = shalt.err (!%p2837_p2)
}
  0x8d   :  { %114 = dma.hbm_to_vmem [thread:$0]  %s4444_s11, 32, %s112_s8, [#allocation14]  }
  0x8e   :  { %s2885_s6 = smov [#allocation16]   ;;  %s2841_s1 = scalar_lea.hbm %s4446_s13, 8192 }
  0x8f   :  { %s122_s23 = sshll.u32 %s2885_s6, 4  ;;  %p2842_p3 = scmp.ne.s32.totalorder %s4446_s13, %s2841_s1  ;;  %s123_s23 = int_to_ptr.vmem [resolvable:$true] %s122_s23 }
  0x90   :  { %p2845_p4 = scmp.lt.u32.totalorder %s2841_s1, %s4446_s13 }
  0x92   :  { %p2847_p5 = pnand %p2845_p4, %p2842_p3 }
  0x94   :  { %2850 = shalt.err (!%p2847_p5)
}
  0x95   :  { %s2851_s3 = scalar_lea.vmem %s123_s23, 8192  ;;  %p2856_p7 = scmp.lt.s32.totalorder %s123_s23, %s123_s23 }
  0x96   :  { %p2852_p6 = scmp.ne.s32.totalorder %s123_s23, %s2851_s3  ;;  %p2857_p8 = scmp.lt.s32.totalorder %s2851_s3, %s2851_s3 }
  0x98   :  { %p2858_p9 = por %p2857_p8, %p2856_p7 }
  0x9a   :  { %p2859_p10 = pnand %p2858_p9, %p2852_p6 }
  0x9c   :  { %2862 = shalt.err (!%p2859_p10)
}
  0x9d   :  { %128 = dma.hbm_to_vmem [thread:$0]  %s4446_s13, 8192, %s123_s23, [#allocation17], %s2879_s26, %s2879_s26, %s2880_s20  }
  0x9e   :  { %2865 = dma.done.wait [#allocation6], 1024  }
  0x9f   :  { %2866 = vsyncadd [#allocation6], 4294966272 }
  0xa0   :  { %2867 = dma.done.wait [#allocation8], 64  }
  0xa1   :  { %2868 = vsyncadd [#allocation8], 4294967232 }
  0xa2   :  { %2869 = dma.done.wait [#allocation11], 8224  }
  0xa3   :  { %2870 = vsyncadd [#allocation11], 4294959072 }
  0xa4   :  { %2871 = dma.done.wait [#allocation14], 64  }
  0xa5   :  { %2872 = vsyncadd [#allocation14], 4294967232 }
  0xa6   :  { %2873 = dma.done.wait [#allocation17], 8192  }
  0xa7   :  { %2874 = vsyncadd [#allocation17], 4294959104  ;;  %v2886_v0 = vmov 0.0   ;;  %v180_v1 = vld [vmem:[#allocation5 + $0x8] sm:$0xff]  ;;  %v182_v2 = vld [vmem:[#allocation5 + $0x18] sm:$0xff]  ;;  %s4471_s20 = sld [smem:[#allocation31_spill]] }
  0xa8   :  { %312 = vmatprep.mubr.f32.mxu0 %v2886_v0  ;;  %v179_v3 = vld [vmem:[#allocation5] sm:$0xff]  ;;  %v2417_v4 = vpack.c.bf16 %v182_v2, %v180_v1  ;;  %v181_v5 = vld [vmem:[#allocation5 + $0x10] sm:$0xff]  ;;  %v184_v6 = vld [vmem:[#allocation5 + $0x28] sm:$0xff]  ;;  %vm199_vm0 = vcmask 261120   ;;  %s4473_s12 = sld [smem:[#allocation33_spill]]  ;;  %s2334_s25 = sld [smem:[#allocation4 + $0x2]] }
  0xa9   :  { %v186_v7 = vld [vmem:[#allocation5 + $0x38] sm:$0xff]  ;;  %v2419_v8 = vpack.c.bf16 %v181_v5, %v179_v3  ;;  %v183_v10 = vld [vmem:[#allocation5 + $0x20] sm:$0xff]  ;;  %v185_v11 = vld [vmem:[#allocation5 + $0x30] sm:$0xff] }
  0xaa   :  { %v2421_v9 = vpack.c.bf16 %v186_v7, %v184_v6  ;;  %2418 = vmatprep.subr.bf16.mxu0 %v2417_v4  ;;  %v2423_v12 = vpack.c.bf16 %v185_v11, %v183_v10  ;;  %v660_v14 = vld [vmem:[#allocation10 + $0x8] sm:$0xff]  ;;  %v662_v15 = vld [vmem:[#allocation10 + $0x18] sm:$0xff]  ;;  %v659_v16 = vld [vmem:[#allocation10] sm:$0xff] }
  0xab   :  { %2420 = vmatpush1.bf16.msra.mxu0 %v2419_v8  ;;  %v2425_v17 = vpack.c.bf16 %v662_v15, %v660_v14  ;;  %v661_v18 = vld [vmem:[#allocation10 + $0x10] sm:$0xff]  ;;  %v664_v19 = vld [vmem:[#allocation10 + $0x28] sm:$0xff]  ;;  %v666_v20 = vld [vmem:[#allocation10 + $0x38] sm:$0xff] }
  0xac   :  { %2422 = vmatprep.subr.bf16.mxu0 %v2421_v9  ;;  %v2427_v21 = vpack.c.bf16 %v661_v18, %v659_v16  ;;  %v2429_v22 = vpack.c.bf16 %v666_v20, %v664_v19  ;;  %v663_v23 = vld [vmem:[#allocation10 + $0x20] sm:$0xff]  ;;  %v665_v24 = vld [vmem:[#allocation10 + $0x30] sm:$0xff]  ;;  %v668_v25 = vld [vmem:[#allocation10 + $0x48] sm:$0xff] }
  0xad   :  { %v163_v13 = vld [vmem:[%s4471_s20] sm:$0xff]  ;;  %2426 = vmatprep.subr.bf16.mxu1 %v2425_v17  ;;  %v164_v27 = vld [vmem:[%s4471_s20 + $0x8] sm:$0xff]  ;;  %v2431_v28 = vpack.c.bf16 %v665_v24, %v663_v23  ;;  %v669_v31 = vld [vmem:[#allocation10 + $0x50] sm:$0xff] }
  0xae   :  { %v670_v26 = vld [vmem:[#allocation10 + $0x58] sm:$0xff]  ;;  %2428 = vmatpush1.bf16.msra.mxu1 %v2427_v21  ;;  %v667_v30 = vld [vmem:[#allocation10 + $0x40] sm:$0xff]  ;;  %v672_v32 = vld [vmem:[#allocation10 + $0x68] sm:$0xff] }
  0xaf   :  { %2424 = vmatpush1.bf16.msra.mxu0 %v2423_v12  ;;  %2430 = vmatprep.subr.bf16.mxu1 %v2429_v22  ;;  %v2433_v29 = vpack.c.bf16 %v670_v26, %v668_v25  ;;  %v674_v33 = vld [vmem:[#allocation10 + $0x78] sm:$0xff]  ;;  %v165_v34 = vld [vmem:[%s4471_s20 + $0x10] sm:$0xff]  ;;  %v2435_v35 = vpack.c.bf16 %v669_v31, %v667_v30  ;;  %v671_v37 = vld [vmem:[#allocation10 + $0x60] sm:$0xff] }
  0xb0   :  { %v2437_v36 = vpack.c.bf16 %v674_v33, %v672_v32  ;;  %v673_v38 = vld [vmem:[#allocation10 + $0x70] sm:$0xff]  ;;  %v676_v39 = vld [vmem:[#allocation10 + $0x88] sm:$0xff]  ;;  %v678_v40 = vld [vmem:[#allocation10 + $0x98] sm:$0xff] }
  0xb1   :  { %v166_v41 = vld [vmem:[%s4471_s20 + $0x18] sm:$0xff]  ;;  %v2439_v42 = vpack.c.bf16 %v673_v38, %v671_v37  ;;  %v2441_v43 = vpack.c.bf16 %v678_v40, %v676_v39  ;;  %v675_v44 = vld [vmem:[#allocation10 + $0x80] sm:$0xff]  ;;  %v680_v46 = vld [vmem:[#allocation10 + $0xa8] sm:$0xff] }
  0xb2   :  { %2317 = vmatmul.mubr.msk.f32.vlgmr.msra.gmra.mrb[0].mxu0 %vm199_vm0, %v163_v13  ;;  %2432 = vmatpush1.bf16.msra.mxu1 %v2431_v28  ;;  %v677_v45 = vld [vmem:[#allocation10 + $0x90] sm:$0xff]  ;;  %v682_v47 = vld [vmem:[#allocation10 + $0xb8] sm:$0xff]  ;;  %v679_v51 = vld [vmem:[#allocation10 + $0xa0] sm:$0xff] }
  0xb3   :  { %318 = vmatprep.mubr.f32.mxu0 %v2886_v0  ;;  %2434 = vmatprep.subr.bf16.mxu1 %v2433_v29  ;;  %v167_v48 = vld [vmem:[%s4471_s20 + $0x20] sm:$0xff]  ;;  %v2443_v49 = vpack.c.bf16 %v677_v45, %v675_v44  ;;  %v2445_v50 = vpack.c.bf16 %v682_v47, %v680_v46  ;;  %v681_v52 = vld [vmem:[#allocation10 + $0xb0] sm:$0xff]  ;;  %v684_v53 = vld [vmem:[#allocation10 + $0xc8] sm:$0xff] }
  0xb4   :  { %v686_v54 = vld [vmem:[#allocation10 + $0xd8] sm:$0xff]  ;;  %v168_v55 = vld [vmem:[%s4471_s20 + $0x28] sm:$0xff]  ;;  %v2447_v56 = vpack.c.bf16 %v681_v52, %v679_v51  ;;  %v685_v59 = vld [vmem:[#allocation10 + $0xd0] sm:$0xff] }
  0xb5   :  { %v2449_v57 = vpack.c.bf16 %v686_v54, %v684_v53  ;;  %v683_v58 = vld [vmem:[#allocation10 + $0xc0] sm:$0xff]  ;;  %v688_v60 = vld [vmem:[#allocation10 + $0xe8] sm:$0xff]  ;;  %v690_v61 = vld [vmem:[#allocation10 + $0xf8] sm:$0xff] }
  0xb6   :  { %2318 = vmatmul.mubr.msk.f32.gmra.mrb[2].mxu0 %vm199_vm0, %v164_v27  ;;  %2436 = vmatpush1.bf16.msra.mxu1 %v2435_v35  ;;  %v169_v62 = vld [vmem:[%s4471_s20 + $0x30] sm:$0xff]  ;;  %v2451_v63 = vpack.c.bf16 %v685_v59, %v683_v58  ;;  %v2453_v1 = vpack.c.bf16 %v690_v61, %v688_v60  ;;  %v687_v2 = vld [vmem:[#allocation10 + $0xe0] sm:$0xff]  ;;  %v694_v5 = vld [vmem:[#allocation10 + $0x118] sm:$0xff] }
  0xb7   :  { %324 = vmatprep.mubr.f32.mxu0 %v2886_v0  ;;  %2438 = vmatprep.subr.bf16.mxu1 %v2437_v36  ;;  %v689_v3 = vld [vmem:[#allocation10 + $0xf0] sm:$0xff]  ;;  %v692_v4 = vld [vmem:[#allocation10 + $0x108] sm:$0xff]  ;;  %v691_v9 = vld [vmem:[#allocation10 + $0x100] sm:$0xff] }
  0xb8   :  { %v170_v6 = vld [vmem:[%s4471_s20 + $0x38] sm:$0xff]  ;;  %v2455_v7 = vpack.c.bf16 %v689_v3, %v687_v2  ;;  %v2457_v8 = vpack.c.bf16 %v694_v5, %v692_v4  ;;  %v696_v11 = vld [vmem:[#allocation10 + $0x128] sm:$0xff]  ;;  %v171_v13 = vld [vmem:[%s4471_s20 + $0x40] sm:$0xff] }
  0xb9   :  { %v693_v10 = vld [vmem:[#allocation10 + $0x110] sm:$0xff]  ;;  %v698_v12 = vld [vmem:[#allocation10 + $0x138] sm:$0xff]  ;;  %v695_v16 = vld [vmem:[#allocation10 + $0x120] sm:$0xff] }
  0xba   :  { %2319 = vmatmul.mubr.msk.f32.gmra.mrb[4].mxu0 %vm199_vm0, %v165_v34  ;;  %2440 = vmatpush1.bf16.msra.mxu1 %v2439_v42  ;;  %v2459_v14 = vpack.c.bf16 %v693_v10, %v691_v9  ;;  %v2461_v15 = vpack.c.bf16 %v698_v12, %v696_v11  ;;  %v697_v17 = vld [vmem:[#allocation10 + $0x130] sm:$0xff]  ;;  %v700_v18 = vld [vmem:[#allocation10 + $0x148] sm:$0xff]  ;;  %v702_v19 = vld [vmem:[#allocation10 + $0x158] sm:$0xff] }
  0xbb   :  { %330 = vmatprep.mubr.f32.mxu0 %v2886_v0  ;;  %2442 = vmatprep.subr.bf16.mxu1 %v2441_v43  ;;  %v172_v20 = vld [vmem:[%s4471_s20 + $0x48] sm:$0xff]  ;;  %v2463_v21 = vpack.c.bf16 %v697_v17, %v695_v16  ;;  %v2465_v22 = vpack.c.bf16 %v702_v19, %v700_v18  ;;  %v701_v24 = vld [vmem:[#allocation10 + $0x150] sm:$0xff]  ;;  %v706_v26 = vld [vmem:[#allocation10 + $0x178] sm:$0xff] }
  0xbc   :  { %v699_v23 = vld [vmem:[#allocation10 + $0x140] sm:$0xff]  ;;  %v704_v25 = vld [vmem:[#allocation10 + $0x168] sm:$0xff]  ;;  %v705_v31 = vld [vmem:[#allocation10 + $0x170] sm:$0xff] }
  0xbd   :  { %v173_v27 = vld [vmem:[%s4471_s20 + $0x50] sm:$0xff]  ;;  %v2467_v28 = vpack.c.bf16 %v701_v24, %v699_v23  ;;  %v2469_v29 = vpack.c.bf16 %v706_v26, %v704_v25  ;;  %v703_v30 = vld [vmem:[#allocation10 + $0x160] sm:$0xff]  ;;  %v710_v33 = vld [vmem:[#allocation10 + $0x198] sm:$0xff] }
  0xbe   :  { %2320 = vmatmul.mubr.msk.f32.gmra.mrb[6].mxu0 %vm199_vm0, %v166_v41  ;;  %2444 = vmatpush1.bf16.msra.mxu1 %v2443_v49  ;;  %v708_v32 = vld [vmem:[#allocation10 + $0x188] sm:$0xff]  ;;  %v174_v34 = vld [vmem:[%s4471_s20 + $0x58] sm:$0xff]  ;;  %v2471_v35 = vpack.c.bf16 %v705_v31, %v703_v30  ;;  %v707_v37 = vld [vmem:[#allocation10 + $0x180] sm:$0xff] }
  0xbf   :  { %336 = vmatprep.mubr.f32.mxu0 %v2886_v0  ;;  %2446 = vmatprep.subr.bf16.mxu1 %v2445_v50  ;;  %v2473_v36 = vpack.c.bf16 %v710_v33, %v708_v32  ;;  %v709_v38 = vld [vmem:[#allocation10 + $0x190] sm:$0xff]  ;;  %v175_v39 = vld [vmem:[%s4471_s20 + $0x60] sm:$0xff]  ;;  %v176_v41 = vld [vmem:[%s4471_s20 + $0x68] sm:$0xff] }
  0xc0   :  { %v2475_v40 = vpack.c.bf16 %v709_v38, %v707_v37  ;;  %v177_v42 = vld [vmem:[%s4471_s20 + $0x70] sm:$0xff]  ;;  %v178_v43 = vld [vmem:[%s4471_s20 + $0x78] sm:$0xff]  ;;  %v711_v47 = vld [vmem:[#allocation10 + $0x1a0] sm:$0xff]  ;;  %s473_s20 = sld [smem:[#allocation4]] }
  0xc1   :  { %v712_v44 = vld [vmem:[#allocation10 + $0x1a8] sm:$0xff]  ;;  %v714_v45 = vld [vmem:[#allocation10 + $0x1b8] sm:$0xff]  ;;  %v715_v53 = vld [vmem:[#allocation10 + $0x1c0] sm:$0xff] }
  0xc2   :  { %2321 = vmatmul.mubr.msk.f32.gmra.mrb[8].mxu0 %vm199_vm0, %v167_v48  ;;  %2448 = vmatpush1.bf16.msra.mxu1 %v2447_v56  ;;  %v2477_v46 = vpack.c.bf16 %v714_v45, %v712_v44  ;;  %v713_v48 = vld [vmem:[#allocation10 + $0x1b0] sm:$0xff]  ;;  %v716_v50 = vld [vmem:[#allocation10 + $0x1c8] sm:$0xff]  ;;  %v718_v51 = vld [vmem:[#allocation10 + $0x1d8] sm:$0xff] }
  0xc3   :  { %342 = vmatprep.mubr.f32.mxu0 %v2886_v0  ;;  %2450 = vmatprep.subr.bf16.mxu1 %v2449_v57  ;;  %v2479_v49 = vpack.c.bf16 %v713_v48, %v711_v47  ;;  %v2481_v52 = vpack.c.bf16 %v718_v51, %v716_v50  ;;  %v717_v54 = vld [vmem:[#allocation10 + $0x1d0] sm:$0xff]  ;;  %v722_v56 = vld [vmem:[#allocation10 + $0x1f8] sm:$0xff]  ;;  %v719_v58 = vld [vmem:[#allocation10 + $0x1e0] sm:$0xff] }
  0xc4   :  { %v721_v59 = vld [vmem:[#allocation10 + $0x1f0] sm:$0xff]  ;;  %v1071_v61 = vld [vmem:[%s4442_s9 + $0x8] sm:$0xff]  ;;  %v1082_v19 = vld [vmem:[%s4442_s9 + $0x60] sm:$0xff] }
  0xc5   :  { %v2487_v60 = vpack.c.bf16 %v721_v59, %v719_v58  ;;  %v1072_v2 = vld [vmem:[%s4442_s9 + $0x10] sm:$0xff]  ;;  %v1075_v3 = vld [vmem:[%s4442_s9 + $0x28] sm:$0xff]  ;;  %v1077_v4 = vld [vmem:[%s4442_s9 + $0x38] sm:$0xff] }
  0xc6   :  { %2322 = vmatmul.mubr.msk.f32.gmra.mrb[10].mxu0 %vm199_vm0, %v168_v55  ;;  %2452 = vmatpush1.bf16.msra.mxu1 %v2451_v63  ;;  %v720_v55 = vld [vmem:[#allocation10 + $0x1e8] sm:$0xff]  ;;  %v1070_v63 = vld [vmem:[%s4442_s9] sm:$0xff]  ;;  %v1081_v10 = vld [vmem:[%s4442_s9 + $0x58] sm:$0xff] }
  0xc7   :  { %348 = vmatprep.mubr.f32.mxu0 %v2886_v0  ;;  %2454 = vmatprep.subr.bf16.mxu1 %v2453_v1  ;;  %v2485_v57 = vpack.c.bf16 %v722_v56, %v720_v55  ;;  %v2491_v5 = vpack.c.bf16 %v1072_v2, %v1070_v63  ;;  %v1079_v9 = vld [vmem:[%s4442_s9 + $0x48] sm:$0xff]  ;;  %v1085_v16 = vld [vmem:[%s4442_s9 + $0x78] sm:$0xff]  ;;  %v1086_v25 = vld [vmem:[%s4442_s9 + $0x80] sm:$0xff]  ;;  %v189_v2 = vlaneseq }
  0xc8   :  { %v2497_v12 = vpack.c.bf16 %v1081_v10, %v1079_v9  ;;  %v1088_v26 = vld [vmem:[%s4442_s9 + $0x90] sm:$0xff]  ;;  %v1090_v31 = vld [vmem:[%s4442_s9 + $0xa0] sm:$0xff]  ;;  %v1095_v33 = vld [vmem:[%s4442_s9 + $0xc8] sm:$0xff] }
  0xc9   :  { %v1092_v32 = vld [vmem:[%s4442_s9 + $0xb0] sm:$0xff]  ;;  %v1094_v37 = vld [vmem:[%s4442_s9 + $0xc0] sm:$0xff]  ;;  %v1103_v45 = vld [vmem:[%s4442_s9 + $0x108] sm:$0xff]  ;;  %v190_v9 = vshrl.u32 %v189_v2, 7 }
  0xca   :  { %2323 = vmatmul.mubr.msk.f32.gmra.mrb[12].mxu0 %vm199_vm0, %v169_v62  ;;  %2456 = vmatpush1.bf16.msra.mxu1 %v2455_v7  ;;  %v1073_v62 = vld [vmem:[%s4442_s9 + $0x18] sm:$0xff]  ;;  %v1074_v7 = vld [vmem:[%s4442_s9 + $0x20] sm:$0xff]  ;;  %v1096_v38 = vld [vmem:[%s4442_s9 + $0xd0] sm:$0xff] }
  0xcb   :  { %354 = vmatprep.mubr.f32.mxu0 %v2886_v0  ;;  %2458 = vmatprep.subr.bf16.mxu1 %v2457_v8  ;;  %v2489_v1 = vpack.c.bf16 %v1073_v62, %v1071_v61  ;;  %v1076_v8 = vld [vmem:[%s4442_s9 + $0x30] sm:$0xff]  ;;  %v1107_v51 = vld [vmem:[%s4442_s9 + $0x128] sm:$0xff]  ;;  %v1117_v63 = vld [vmem:[%s4442_s9 + $0x178] sm:$0xff] }
  0xcc   :  { %v2495_v11 = vpack.c.bf16 %v1076_v8, %v1074_v7  ;;  %v1100_v44 = vld [vmem:[%s4442_s9 + $0xf0] sm:$0xff]  ;;  %v1111_v56 = vld [vmem:[%s4442_s9 + $0x148] sm:$0xff]  ;;  %v1121_v7 = vld [vmem:[%s4442_s9 + $0x198] sm:$0xff] }
  0xcd   :  { %2490 = vmatprep.subr.bf16.mxu0 %v2489_v1  ;;  %v1104_v50 = vld [vmem:[%s4442_s9 + $0x110] sm:$0xff]  ;;  %v1115_v62 = vld [vmem:[%s4442_s9 + $0x168] sm:$0xff] }
  0xce   :  { %2324 = vmatmul.mubr.msk.f32.gmra.mrb[14].mxu0 %vm199_vm0, %v170_v6  ;;  %2460 = vmatpush1.bf16.msra.mxu1 %v2459_v14  ;;  %v2493_v6 = vpack.c.bf16 %v1077_v4, %v1075_v3  ;;  %v1080_v14 = vld [vmem:[%s4442_s9 + $0x50] sm:$0xff]  ;;  %v2533_v3 = vpack.c.bf16 %v1117_v63, %v1115_v62  ;;  %v1114_v4 = vld [vmem:[%s4442_s9 + $0x160] sm:$0xff] }
  0xcf   :  { %360 = vmatprep.mubr.f32.mxu0 %v2886_v0  ;;  %2462 = vmatprep.subr.bf16.mxu1 %v2461_v15  ;;  %v1083_v15 = vld [vmem:[%s4442_s9 + $0x68] sm:$0xff]  ;;  %v1108_v55 = vld [vmem:[%s4442_s9 + $0x130] sm:$0xff] }
  0xd0   :  { %2492 = vmatpush1.bf16.msra.mxu0 %v2491_v5  ;;  %v2501_v18 = vpack.c.bf16 %v1085_v16, %v1083_v15  ;;  %v1112_v61 = vld [vmem:[%s4442_s9 + $0x150] sm:$0xff]  ;;  %v3346_v16 = vsub.s32 0, %v190_v9 }
  0xd1   :  { %2494 = vmatprep.subr.bf16.mxu0 %v2493_v6  ;;  %v1116_v5 = vld [vmem:[%s4442_s9 + $0x170] sm:$0xff]  ;;  %v1119_v6 = vld [vmem:[%s4442_s9 + $0x188] sm:$0xff] }
  0xd2   :  { %2325 = vmatmul.mubr.msk.f32.gmra.mrb[16].mxu0 %vm199_vm0, %v171_v13  ;;  %2464 = vmatpush1.bf16.msra.mxu1 %v2463_v21  ;;  %v1078_v13 = vld [vmem:[%s4442_s9 + $0x40] sm:$0xff]  ;;  %v1087_v21 = vld [vmem:[%s4442_s9 + $0x88] sm:$0xff]  ;;  %v2535_v8 = vpack.c.bf16 %v1116_v5, %v1114_v4  ;;  %v2537_v10 = vpack.c.bf16 %v1121_v7, %v1119_v6  ;;  %4472 = vst [vmem:[#allocation24_spill] sm:$0xff] %v3346_v16 }
  0xd3   :  { %366 = vmatprep.mubr.f32.mxu0 %v2886_v0  ;;  %2466 = vmatprep.subr.bf16.mxu1 %v2465_v22  ;;  %v2499_v17 = vpack.c.bf16 %v1080_v14, %v1078_v13  ;;  %v1089_v22 = vld [vmem:[%s4442_s9 + $0x98] sm:$0xff]  ;;  %v1123_v13 = vld [vmem:[%s4442_s9 + $0x1a8] sm:$0xff] }
  0xd4   :  { %2496 = vmatpush1.bf16.msra.mxu0 %v2495_v11  ;;  %v2505_v24 = vpack.c.bf16 %v1089_v22, %v1087_v21  ;;  %v1118_v11 = vld [vmem:[%s4442_s9 + $0x180] sm:$0xff]  ;;  %v1125_v14 = vld [vmem:[%s4442_s9 + $0x1b8] sm:$0xff]  ;;  %v3357_v21 = vsub.s32 1, %v190_v9 }
  0xd5   :  { %2498 = vmatprep.subr.bf16.mxu0 %v2497_v12  ;;  %v1120_v12 = vld [vmem:[%s4442_s9 + $0x190] sm:$0xff]  ;;  %v474_v22 = vld [vmem:[#allocation7] sm:$0x3] }
  0xd6   :  { %2326 = vmatmul.mubr.msk.f32.gmra.mrb[18].mxu0 %vm199_vm0, %v172_v20  ;;  %2468 = vmatpush1.bf16.msra.mxu1 %v2467_v28  ;;  %v1084_v20 = vld [vmem:[%s4442_s9 + $0x70] sm:$0xff]  ;;  %v1093_v28 = vld [vmem:[%s4442_s9 + $0xb8] sm:$0xff]  ;;  %v2539_v15 = vpack.c.bf16 %v1120_v12, %v1118_v11  ;;  %4474 = vst [vmem:[#allocation25_spill] sm:$0xff] %v3357_v21 }
  0xd7   :  { %372 = vmatprep.mubr.f32.mxu0 %v2886_v0  ;;  %2470 = vmatprep.subr.bf16.mxu1 %v2469_v29  ;;  %v2503_v23 = vpack.c.bf16 %v1084_v20, %v1082_v19  ;;  %v2507_v29 = vpack.c.bf16 %v1088_v26, %v1086_v25  ;;  %v1124_v19 = vld [vmem:[%s4442_s9 + $0x1b0] sm:$0xff]  ;;  %v187_v20 = vld [vmem:[%s4473_s12] sm:$0x3]  ;;  %v518_v25 = vld [vmem:[#allocation9] sm:$0x3]  ;;  %s4475_s12 = sld [smem:[#allocation34_spill]] }
  0xd8   :  { %2500 = vmatpush1.bf16.msra.mxu0 %v2499_v17  ;;  %v2541_v17 = vpack.c.bf16 %v1125_v14, %v1123_v13  ;;  %v3363_v26 = vrot.slane %v187_v20, %v3357_v21 }
  0xd9   :  { %2502 = vmatprep.subr.bf16.mxu0 %v2501_v18  ;;  %v1122_v18 = vld [vmem:[%s4442_s9 + $0x1a0] sm:$0xff] }
  0xda   :  { %2327 = vmatmul.mubr.msk.f32.gmra.mrb[20].mxu0 %vm199_vm0, %v173_v27  ;;  %2472 = vmatpush1.bf16.msra.mxu1 %v2471_v35  ;;  %v1091_v27 = vld [vmem:[%s4442_s9 + $0xa8] sm:$0xff]  ;;  %v2511_v35 = vpack.c.bf16 %v1092_v32, %v1090_v31  ;;  %v3375_v31 = vrot.slane %v518_v25, %v3346_v16 }
  0xdb   :  { %378 = vmatprep.mubr.f32.mxu0 %v2886_v0  ;;  %2474 = vmatprep.subr.bf16.mxu1 %v2473_v36  ;;  %v2509_v30 = vpack.c.bf16 %v1093_v28, %v1091_v27  ;;  %v3366_v27 = vrot.slane %v474_v22, %v3346_v16 }
  0xdc   :  { %2504 = vmatpush1.bf16.msra.mxu0 %v2503_v23  ;;  %v2543_v23 = vpack.c.bf16 %v1124_v19, %v1122_v18 }
  0xdd   :  { %2506 = vmatprep.subr.bf16.mxu0 %v2505_v24  ;;  %v3360_v24 = vrot.slane %v187_v20, %v3346_v16 }
  0xde   :  { %2328 = vmatmul.mubr.msk.f32.gmra.mrb[22].mxu0 %vm199_vm0, %v174_v34  ;;  %2476 = vmatpush1.bf16.msra.mxu1 %v2475_v40  ;;  %v1097_v34 = vld [vmem:[%s4442_s9 + $0xd8] sm:$0xff] }
  0xdf   :  { %384 = vmatprep.mubr.f32.mxu0 %v2886_v0  ;;  %2478 = vmatprep.subr.bf16.mxu1 %v2477_v46  ;;  %v2513_v36 = vpack.c.bf16 %v1097_v34, %v1095_v33  ;;  %v1101_v40 = vld [vmem:[%s4442_s9 + $0xf8] sm:$0xff]  ;;  %v3381_v34 = vrot.slane %v518_v25, %v3357_v21 }
  0xe0   :  { %2508 = vmatpush1.bf16.msra.mxu0 %v2507_v29  ;;  %v1105_v46 = vld [vmem:[%s4442_s9 + $0x118] sm:$0xff]  ;;  %v3369_v29 = vrot.slane %v474_v22, %v3357_v21 }
  0xe1   :  { %2510 = vmatprep.subr.bf16.mxu0 %v2509_v30  ;;  %v2521_v48 = vpack.c.bf16 %v1105_v46, %v1103_v45 }
  0xe2   :  { %2329 = vmatmul.mubr.msk.f32.gmra.mrb[24].mxu0 %vm199_vm0, %v175_v39  ;;  %2480 = vmatpush1.bf16.msra.mxu1 %v2479_v49  ;;  %v1099_v39 = vld [vmem:[%s4442_s9 + $0xe8] sm:$0xff]  ;;  %v1102_v49 = vld [vmem:[%s4442_s9 + $0x100] sm:$0xff] }
  0xe3   :  { %390 = vmatprep.mubr.f32.mxu0 %v2886_v0  ;;  %2482 = vmatprep.subr.bf16.mxu1 %v2481_v52  ;;  %v1109_v52 = vld [vmem:[%s4442_s9 + $0x138] sm:$0xff] }
  0xe4   :  { %2512 = vmatpush1.bf16.msra.mxu0 %v2511_v35 }
  0xe5   :  { %2514 = vmatprep.subr.bf16.mxu0 %v2513_v36 }
  0xe6   :  { %2330 = vmatmul.mubr.msk.f32.gmra.mrb[26].mxu0 %vm199_vm0, %v176_v41  ;;  %v2515_v41 = vpack.c.bf16 %v1096_v38, %v1094_v37  ;;  %v3387_v38 = vstv %s473_s20 }
  0xe7   :  { %396 = vmatprep.mubr.f32.mxu0 %v2886_v0 }
  0xe8   :  { %2516 = vmatpush1.bf16.msra.mxu0 %v2515_v41 }
  0xea   :  { %2331 = vmatmul.mubr.msk.f32.gmra.mrb[28].mxu0 %vm199_vm0, %v177_v42  ;;  %v2517_v42 = vpack.c.bf16 %v1101_v40, %v1099_v39 }
  0xeb   :  { %402 = vmatprep.mubr.f32.mxu0 %v2886_v0  ;;  %v2483_v0 = vpack.c.bf16 %v717_v54, %v715_v53  ;;  %v2523_v53 = vpack.c.bf16 %v1104_v50, %v1102_v49  ;;  %v2525_v54 = vpack.c.bf16 %v1109_v52, %v1107_v51 }
  0xec   :  { %2518 = vmatprep.subr.bf16.mxu0 %v2517_v42 }
  0xed   :  { %2484 = vmatpush1.bf16.msra.mxu1 %v2483_v0  ;;  %v1106_v0 = vld [vmem:[%s4442_s9 + $0x120] sm:$0xff] }
  0xee   :  { %2332 = vmatmul.mubr.msk.f32.gmra.mrb[30].mxu0 %vm199_vm0, %v178_v43  ;;  %2486 = vmatprep.subr.bf16.mxu1 %v2485_v57  ;;  %v1098_v43 = vld [vmem:[%s4442_s9 + $0xe0] sm:$0xff]  ;;  %v1113_v57 = vld [vmem:[%s4442_s9 + $0x158] sm:$0xff]  ;;  %v2527_v58 = vpack.c.bf16 %v1108_v55, %v1106_v0 }
  0xef   :  { %v2519_v47 = vpack.c.bf16 %v1100_v44, %v1098_v43  ;;  %v2529_v59 = vpack.c.bf16 %v1113_v57, %v1111_v56 }
  0xf1   :  { %2488 = vmatpush1.bf16.msra.mxu1 %v2487_v60  ;;  %2520 = vmatpush1.bf16.msra.mxu0 %v2519_v47  ;;  %v1110_v60 = vld [vmem:[%s4442_s9 + $0x140] sm:$0xff] }
  0xf2   :  { %2522 = vmatprep.subr.bf16.mxu0 %v2521_v48  ;;  %v2531_v1 = vpack.c.bf16 %v1112_v61, %v1110_v60 }
  0xf5   :  { %2524 = vmatpush1.bf16.msra.mxu0 %v2523_v53 }
  0xf6   :  { %2526 = vmatprep.subr.bf16.mxu0 %v2525_v54 }
  0xf9   :  { %2528 = vmatpush1.bf16.msra.mxu0 %v2527_v58 }
  0xfa   :  { %2530 = vmatprep.subr.bf16.mxu0 %v2529_v59 }
  0xfd   :  { %2532 = vmatpush1.bf16.msra.mxu0 %v2531_v1 }
  0xfe   :  { %2534 = vmatprep.subr.bf16.mxu0 %v2533_v3 }
 0x101   :  { %2536 = vmatpush1.bf16.msra.mxu0 %v2535_v8 }
 0x102   :  { %2538 = vmatprep.subr.bf16.mxu0 %v2537_v10 }
 0x105   :  { %2540 = vmatpush1.bf16.msra.mxu0 %v2539_v15 }
 0x106   :  { %2542 = vmatprep.subr.bf16.mxu0 %v2541_v17 }
 0x109   :  { %2544 = vmatpush1.bf16.msra.mxu0 %v2543_v23 }
 0x185   :  { %v314_v28 = vpop.f32.mrb[0].mxu0 }
 0x186   :  { %v3372_v30 = vadd.f32 %v314_v28, %v3360_v24  ;;  %v316_v32 = vpop.f32.mrb[1].mxu0 }
 0x187   :  { %v3378_v33 = vadd.f32 %v316_v32, %v3363_v26 }
 0x188   :  { %v486_v35 = vmul.f32 %v3366_v27, %v3372_v30 }
 0x189   :  { %v487_v36 = vmul.f32 %v3369_v29, %v3378_v33  ;;  %v320_v37 = vpop.f32.mrb[2].mxu0 }
 0x18a   :  { %v530_v39 = vadd.f32 %v3375_v31, %v486_v35  ;;  %v3391_v40 = vadd.f32 %v320_v37, %v3360_v24  ;;  %v322_v41 = vpop.f32.mrb[3].mxu0 }
 0x18b   :  { %v3394_v42 = vadd.f32 %v322_v41, %v3363_v26  ;;  %v531_v43 = vadd.f32 %v3381_v34, %v487_v36 }
 0x18c   :  { %v488_v44 = vmul.f32 %v3366_v27, %v3391_v40  ;;  %v595_v45 = vmul.f32 %v3387_v38, %v530_v39  ;;  %vm562_vm2 = vcmp.gt.f32.partialorder %v530_v39, 0.0 }
 0x18d   :  { %v489_v46 = vmul.f32 %v3369_v29, %v3394_v42  ;;  %v326_v47 = vpop.f32.mrb[4].mxu0  ;;  %vm563_vm1 = vcmp.gt.f32.partialorder %v531_v43, 0.0  ;;  %v596_v48 = vmul.f32 %v3387_v38, %v531_v43 }
 0x18e   :  { %v532_v49 = vadd.f32 %v3375_v31, %v488_v44  ;;  %v3405_v50 = vadd.f32 %v326_v47, %v3360_v24  ;;  %v328_v51 = vpop.f32.mrb[5].mxu0  ;;  %v627_v55 = vsel %vm562_vm2, %v530_v39, %v595_v45 }
 0x18f   :  { %v533_v52 = vadd.f32 %v3381_v34, %v489_v46  ;;  %v3409_v53 = vadd.f32 %v328_v51, %v3363_v26  ;;  %v628_v54 = vsel %vm563_vm1, %v531_v43, %v596_v48 }
 0x190   :  { %v490_v0 = vmul.f32 %v3366_v27, %v3405_v50  ;;  %787 = vmatprep.mubr.f32.mxu1 %v628_v54  ;;  %v597_v56 = vmul.f32 %v3387_v38, %v532_v49  ;;  %vm564_vm4 = vcmp.gt.f32.partialorder %v532_v49, 0.0 }
 0x191   :  { %v491_v57 = vmul.f32 %v3369_v29, %v3409_v53  ;;  %v332_v58 = vpop.f32.mrb[6].mxu0  ;;  %788 = vmatmul.mubr.f32.vlgmr.msra.gmra.mrb[0].mxu1 %v627_v55  ;;  %vm565_vm3 = vcmp.gt.f32.partialorder %v533_v52, 0.0  ;;  %v598_v59 = vmul.f32 %v3387_v38, %v533_v52 }
 0x192   :  { %v534_v60 = vadd.f32 %v3375_v31, %v490_v0  ;;  %v3419_v61 = vadd.f32 %v332_v58, %v3360_v24  ;;  %v334_v62 = vpop.f32.mrb[7].mxu0  ;;  %v629_v4 = vsel %vm564_vm4, %v532_v49, %v597_v56 }
 0x193   :  { %v535_v63 = vadd.f32 %v3381_v34, %v491_v57  ;;  %v3423_v1 = vadd.f32 %v334_v62, %v3363_v26  ;;  %v630_v2 = vsel %vm565_vm3, %v533_v52, %v598_v59 }
 0x194   :  { %v492_v3 = vmul.f32 %v3366_v27, %v3419_v61  ;;  %793 = vmatprep.mubr.f32.mxu1 %v630_v2  ;;  %v599_v5 = vmul.f32 %v3387_v38, %v534_v60  ;;  %vm566_vm6 = vcmp.gt.f32.partialorder %v534_v60, 0.0 }
 0x195   :  { %v493_v6 = vmul.f32 %v3369_v29, %v3423_v1  ;;  %v338_v7 = vpop.f32.mrb[8].mxu0  ;;  %794 = vmatmul.mubr.f32.gmra.mrb[2].mxu1 %v629_v4  ;;  %vm567_vm5 = vcmp.gt.f32.partialorder %v535_v63, 0.0  ;;  %v600_v8 = vmul.f32 %v3387_v38, %v535_v63 }
 0x196   :  { %v536_v9 = vadd.f32 %v3375_v31, %v492_v3  ;;  %v3433_v10 = vadd.f32 %v338_v7, %v3360_v24  ;;  %v340_v11 = vpop.f32.mrb[9].mxu0  ;;  %v631_v17 = vsel %vm566_vm6, %v534_v60, %v599_v5 }
 0x197   :  { %v537_v12 = vadd.f32 %v3381_v34, %v493_v6  ;;  %v3437_v13 = vadd.f32 %v340_v11, %v3363_v26  ;;  %v632_v14 = vsel %vm567_vm5, %v535_v63, %v600_v8 }
 0x198   :  { %v494_v15 = vmul.f32 %v3366_v27, %v3433_v10  ;;  %799 = vmatprep.mubr.f32.mxu1 %v632_v14  ;;  %v601_v18 = vmul.f32 %v3387_v38, %v536_v9  ;;  %vm568_vm8 = vcmp.gt.f32.partialorder %v536_v9, 0.0 }
 0x199   :  { %v495_v19 = vmul.f32 %v3369_v29, %v3437_v13  ;;  %v344_v20 = vpop.f32.mrb[10].mxu0  ;;  %800 = vmatmul.mubr.f32.gmra.mrb[4].mxu1 %v631_v17  ;;  %vm569_vm7 = vcmp.gt.f32.partialorder %v537_v12, 0.0  ;;  %v602_v22 = vmul.f32 %v3387_v38, %v537_v12 }
 0x19a   :  { %v538_v23 = vadd.f32 %v3375_v31, %v494_v15  ;;  %v3447_v25 = vadd.f32 %v344_v20, %v3360_v24  ;;  %v346_v28 = vpop.f32.mrb[11].mxu0  ;;  %v633_v39 = vsel %vm568_vm8, %v536_v9, %v601_v18 }
 0x19b   :  { %v539_v32 = vadd.f32 %v3381_v34, %v495_v19  ;;  %v3451_v35 = vadd.f32 %v346_v28, %v3363_v26  ;;  %v634_v36 = vsel %vm569_vm7, %v537_v12, %v602_v22 }
 0x19c   :  { %v496_v37 = vmul.f32 %v3366_v27, %v3447_v25  ;;  %805 = vmatprep.mubr.f32.mxu1 %v634_v36  ;;  %v603_v41 = vmul.f32 %v3387_v38, %v538_v23  ;;  %vm570_vm10 = vcmp.gt.f32.partialorder %v538_v23, 0.0 }
 0x19d   :  { %v497_v43 = vmul.f32 %v3369_v29, %v3451_v35  ;;  %v350_v44 = vpop.f32.mrb[12].mxu0  ;;  %806 = vmatmul.mubr.f32.gmra.mrb[6].mxu1 %v633_v39  ;;  %vm571_vm9 = vcmp.gt.f32.partialorder %v539_v32, 0.0  ;;  %v604_v45 = vmul.f32 %v3387_v38, %v539_v32 }
 0x19e   :  { %v540_v46 = vadd.f32 %v3375_v31, %v496_v37  ;;  %v3461_v47 = vadd.f32 %v350_v44, %v3360_v24  ;;  %v352_v48 = vpop.f32.mrb[13].mxu0  ;;  %v635_v0 = vsel %vm570_vm10, %v538_v23, %v603_v41 }
 0x19f   :  { %v541_v49 = vadd.f32 %v3381_v34, %v497_v43  ;;  %v3465_v51 = vadd.f32 %v352_v48, %v3363_v26  ;;  %v636_v52 = vsel %vm571_vm9, %v539_v32, %v604_v45 }
 0x1a0   :  { %v498_v54 = vmul.f32 %v3366_v27, %v3461_v47  ;;  %811 = vmatprep.mubr.f32.mxu1 %v636_v52  ;;  %v605_v55 = vmul.f32 %v3387_v38, %v540_v46  ;;  %vm572_vm12 = vcmp.gt.f32.partialorder %v540_v46, 0.0 }
 0x1a1   :  { %v499_v56 = vmul.f32 %v3369_v29, %v3465_v51  ;;  %v356_v57 = vpop.f32.mrb[14].mxu0  ;;  %812 = vmatmul.mubr.f32.gmra.mrb[8].mxu1 %v635_v0  ;;  %vm573_vm11 = vcmp.gt.f32.partialorder %v541_v49, 0.0  ;;  %v606_v58 = vmul.f32 %v3387_v38, %v541_v49 }
 0x1a2   :  { %v542_v59 = vadd.f32 %v3375_v31, %v498_v54  ;;  %v3475_v60 = vadd.f32 %v356_v57, %v3360_v24  ;;  %v358_v62 = vpop.f32.mrb[15].mxu0  ;;  %v637_v5 = vsel %vm572_vm12, %v540_v46, %v605_v55 }
 0x1a3   :  { %v543_v63 = vadd.f32 %v3381_v34, %v499_v56  ;;  %v3479_v2 = vadd.f32 %v358_v62, %v3363_v26  ;;  %v638_v3 = vsel %vm573_vm11, %v541_v49, %v606_v58 }
 0x1a4   :  { %v500_v4 = vmul.f32 %v3366_v27, %v3475_v60  ;;  %817 = vmatprep.mubr.f32.mxu1 %v638_v3  ;;  %v607_v6 = vmul.f32 %v3387_v38, %v542_v59  ;;  %vm574_vm14 = vcmp.gt.f32.partialorder %v542_v59, 0.0 }
 0x1a5   :  { %v501_v7 = vmul.f32 %v3369_v29, %v3479_v2  ;;  %v362_v8 = vpop.f32.mrb[16].mxu0  ;;  %818 = vmatmul.mubr.f32.gmra.mrb[10].mxu1 %v637_v5  ;;  %vm575_vm13 = vcmp.gt.f32.partialorder %v543_v63, 0.0  ;;  %v608_v9 = vmul.f32 %v3387_v38, %v543_v63 }
 0x1a6   :  { %v544_v11 = vadd.f32 %v3375_v31, %v500_v4  ;;  %v3489_v12 = vadd.f32 %v362_v8, %v3360_v24  ;;  %v364_v14 = vpop.f32.mrb[17].mxu0  ;;  %v639_v20 = vsel %vm574_vm14, %v542_v59, %v607_v6 }
 0x1a7   :  { %v545_v15 = vadd.f32 %v3381_v34, %v501_v7  ;;  %v3493_v17 = vadd.f32 %v364_v14, %v3363_v26  ;;  %v640_v18 = vsel %vm575_vm13, %v543_v63, %v608_v9 }
 0x1a8   :  { %v502_v19 = vmul.f32 %v3366_v27, %v3489_v12  ;;  %823 = vmatprep.mubr.f32.mxu1 %v640_v18  ;;  %v609_v22 = vmul.f32 %v3387_v38, %v544_v11  ;;  %vm576_vm1 = vcmp.gt.f32.partialorder %v544_v11, 0.0 }
 0x1a9   :  { %v503_v23 = vmul.f32 %v3369_v29, %v3493_v17  ;;  %v368_v28 = vpop.f32.mrb[18].mxu0  ;;  %824 = vmatmul.mubr.f32.gmra.mrb[12].mxu1 %v639_v20  ;;  %vm577_vm15 = vcmp.gt.f32.partialorder %v545_v15, 0.0  ;;  %v610_v32 = vmul.f32 %v3387_v38, %v545_v15 }
 0x1aa   :  { %v546_v36 = vadd.f32 %v3375_v31, %v502_v19  ;;  %v3503_v37 = vadd.f32 %v368_v28, %v3360_v24  ;;  %v370_v39 = vpop.f32.mrb[19].mxu0  ;;  %v641_v46 = vsel %vm576_vm1, %v544_v11, %v609_v22 }
 0x1ab   :  { %v547_v41 = vadd.f32 %v3381_v34, %v503_v23  ;;  %v3507_v43 = vadd.f32 %v370_v39, %v3363_v26  ;;  %v642_v44 = vsel %vm577_vm15, %v545_v15, %v610_v32 }
 0x1ac   :  { %v504_v45 = vmul.f32 %v3366_v27, %v3503_v37  ;;  %829 = vmatprep.mubr.f32.mxu1 %v642_v44  ;;  %v611_v48 = vmul.f32 %v3387_v38, %v546_v36  ;;  %vm578_vm3 = vcmp.gt.f32.partialorder %v546_v36, 0.0 }
 0x1ad   :  { %v505_v49 = vmul.f32 %v3369_v29, %v3507_v43  ;;  %v374_v52 = vpop.f32.mrb[20].mxu0  ;;  %830 = vmatmul.mubr.f32.gmra.mrb[14].mxu1 %v641_v46  ;;  %vm579_vm2 = vcmp.gt.f32.partialorder %v547_v41, 0.0  ;;  %v612_v54 = vmul.f32 %v3387_v38, %v547_v41 }
 0x1ae   :  { %v548_v0 = vadd.f32 %v3375_v31, %v504_v45  ;;  %v3517_v55 = vadd.f32 %v374_v52, %v3360_v24  ;;  %v376_v56 = vpop.f32.mrb[21].mxu0  ;;  %v643_v63 = vsel %vm578_vm3, %v546_v36, %v611_v48 }
 0x1af   :  { %v549_v57 = vadd.f32 %v3381_v34, %v505_v49  ;;  %v3521_v58 = vadd.f32 %v376_v56, %v3363_v26  ;;  %v644_v59 = vsel %vm579_vm2, %v547_v41, %v612_v54 }
 0x1b0   :  { %v506_v62 = vmul.f32 %v3366_v27, %v3517_v55  ;;  %835 = vmatprep.mubr.f32.mxu1 %v644_v59  ;;  %v613_v3 = vmul.f32 %v3387_v38, %v548_v0  ;;  %vm580_vm5 = vcmp.gt.f32.partialorder %v548_v0, 0.0 }
 0x1b1   :  { %v507_v4 = vmul.f32 %v3369_v29, %v3521_v58  ;;  %v380_v5 = vpop.f32.mrb[22].mxu0  ;;  %836 = vmatmul.mubr.f32.gmra.mrb[16].mxu1 %v643_v63  ;;  %vm581_vm4 = vcmp.gt.f32.partialorder %v549_v57, 0.0  ;;  %v614_v6 = vmul.f32 %v3387_v38, %v549_v57 }
 0x1b2   :  { %v550_v7 = vadd.f32 %v3375_v31, %v506_v62  ;;  %v3531_v8 = vadd.f32 %v380_v5, %v3360_v24  ;;  %v382_v9 = vpop.f32.mrb[23].mxu0  ;;  %v645_v19 = vsel %vm580_vm5, %v548_v0, %v613_v3 }
 0x1b3   :  { %v551_v11 = vadd.f32 %v3381_v34, %v507_v4  ;;  %v3535_v14 = vadd.f32 %v382_v9, %v3363_v26  ;;  %v646_v15 = vsel %vm581_vm4, %v549_v57, %v614_v6 }
 0x1b4   :  { %v508_v18 = vmul.f32 %v3366_v27, %v3531_v8  ;;  %841 = vmatprep.mubr.f32.mxu1 %v646_v15  ;;  %v615_v20 = vmul.f32 %v3387_v38, %v550_v7  ;;  %vm582_vm7 = vcmp.gt.f32.partialorder %v550_v7, 0.0 }
 0x1b5   :  { %v509_v22 = vmul.f32 %v3369_v29, %v3535_v14  ;;  %v386_v23 = vpop.f32.mrb[24].mxu0  ;;  %842 = vmatmul.mubr.f32.gmra.mrb[18].mxu1 %v645_v19  ;;  %vm583_vm6 = vcmp.gt.f32.partialorder %v551_v11, 0.0  ;;  %v616_v28 = vmul.f32 %v3387_v38, %v551_v11 }
 0x1b6   :  { %v552_v32 = vadd.f32 %v3375_v31, %v508_v18  ;;  %v3545_v36 = vadd.f32 %v386_v23, %v3360_v24  ;;  %v388_v39 = vpop.f32.mrb[25].mxu0  ;;  %v647_v48 = vsel %vm582_vm7, %v550_v7, %v615_v20 }
 0x1b7   :  { %v553_v41 = vadd.f32 %v3381_v34, %v509_v22  ;;  %v3549_v44 = vadd.f32 %v388_v39, %v3363_v26  ;;  %v648_v45 = vsel %vm583_vm6, %v551_v11, %v616_v28 }
 0x1b8   :  { %v510_v46 = vmul.f32 %v3366_v27, %v3545_v36  ;;  %847 = vmatprep.mubr.f32.mxu1 %v648_v45  ;;  %v617_v49 = vmul.f32 %v3387_v38, %v552_v32  ;;  %vm584_vm9 = vcmp.gt.f32.partialorder %v552_v32, 0.0 }
 0x1b9   :  { %v511_v52 = vmul.f32 %v3369_v29, %v3549_v44  ;;  %v392_v54 = vpop.f32.mrb[26].mxu0  ;;  %848 = vmatmul.mubr.f32.gmra.mrb[20].mxu1 %v647_v48  ;;  %vm585_vm8 = vcmp.gt.f32.partialorder %v553_v41, 0.0  ;;  %v618_v0 = vmul.f32 %v3387_v38, %v553_v41 }
 0x1ba   :  { %v554_v56 = vadd.f32 %v3375_v31, %v510_v46  ;;  %v3559_v57 = vadd.f32 %v392_v54, %v3360_v24  ;;  %v394_v59 = vpop.f32.mrb[27].mxu0  ;;  %v649_v5 = vsel %vm584_vm9, %v552_v32, %v617_v49 }
 0x1bb   :  { %v555_v62 = vadd.f32 %v3381_v34, %v511_v52  ;;  %v3563_v63 = vadd.f32 %v394_v59, %v3363_v26  ;;  %v650_v3 = vsel %vm585_vm8, %v553_v41, %v618_v0 }
 0x1bc   :  { %v512_v4 = vmul.f32 %v3366_v27, %v3559_v57  ;;  %853 = vmatprep.mubr.f32.mxu1 %v650_v3  ;;  %v619_v6 = vmul.f32 %v3387_v38, %v554_v56  ;;  %vm586_vm11 = vcmp.gt.f32.partialorder %v554_v56, 0.0 }
 0x1bd   :  { %v513_v7 = vmul.f32 %v3369_v29, %v3563_v63  ;;  %v398_v9 = vpop.f32.mrb[28].mxu0  ;;  %854 = vmatmul.mubr.f32.gmra.mrb[22].mxu1 %v649_v5  ;;  %vm587_vm10 = vcmp.gt.f32.partialorder %v555_v62, 0.0  ;;  %v620_v11 = vmul.f32 %v3387_v38, %v555_v62 }
 0x1be   :  { %v556_v15 = vadd.f32 %v3375_v31, %v512_v4  ;;  %v3573_v18 = vadd.f32 %v398_v9, %v3360_v24  ;;  %v400_v19 = vpop.f32.mrb[29].mxu0  ;;  %v651_v32 = vsel %vm586_vm11, %v554_v56, %v619_v6 }
 0x1bf   :  { %v557_v20 = vadd.f32 %v3381_v34, %v513_v7  ;;  %v3577_v22 = vadd.f32 %v400_v19, %v3363_v26  ;;  %v652_v23 = vsel %vm587_vm10, %v555_v62, %v620_v11  ;;  %v1126_v19 = vld [vmem:[%s4442_s9 + $0x1c0] sm:$0xff] }
 0x1c0   :  { %v514_v28 = vmul.f32 %v3366_v27, %v3573_v18  ;;  %859 = vmatprep.mubr.f32.mxu1 %v652_v23  ;;  %v621_v39 = vmul.f32 %v3387_v38, %v556_v15  ;;  %vm588_vm13 = vcmp.gt.f32.partialorder %v556_v15, 0.0  ;;  %v1131_v23 = vld [vmem:[%s4442_s9 + $0x1e8] sm:$0xff] }
 0x1c1   :  { %v515_v41 = vmul.f32 %v3369_v29, %v3577_v22  ;;  %v404_v45 = vpop.f32.mrb[30].mxu0  ;;  %860 = vmatmul.mubr.f32.gmra.mrb[24].mxu1 %v651_v32  ;;  %vm589_vm12 = vcmp.gt.f32.partialorder %v557_v20, 0.0  ;;  %v622_v46 = vmul.f32 %v3387_v38, %v557_v20 }
 0x1c2   :  { %v558_v48 = vadd.f32 %v3375_v31, %v514_v28  ;;  %v3587_v49 = vadd.f32 %v404_v45, %v3360_v24  ;;  %v406_v52 = vpop.f32.mrb[31].mxu0  ;;  %v653_v62 = vsel %vm588_vm13, %v556_v15, %v621_v39  ;;  %v1133_v28 = vld [vmem:[%s4442_s9 + $0x1f8] sm:$0xff]  ;;  %v1130_v39 = vld [vmem:[%s4442_s9 + $0x1e0] sm:$0xff] }
 0x1c3   :  { %v559_v54 = vadd.f32 %v3381_v34, %v515_v41  ;;  %v3591_v0 = vadd.f32 %v406_v52, %v3363_v26  ;;  %v654_v56 = vsel %vm589_vm12, %v557_v20, %v622_v46  ;;  %v2549_v32 = vpack.c.bf16 %v1133_v28, %v1131_v23  ;;  %v1132_v41 = vld [vmem:[%s4442_s9 + $0x1f0] sm:$0xff]  ;;  %v1640_v23 = vld [vmem:[#allocation16 + $0x98] sm:$0xff] }
 0x1c4   :  { %v516_v59 = vmul.f32 %v3366_v27, %v3587_v49  ;;  %865 = vmatprep.mubr.f32.mxu1 %v654_v56  ;;  %v623_v3 = vmul.f32 %v3387_v38, %v558_v48  ;;  %vm590_vm15 = vcmp.gt.f32.partialorder %v558_v48, 0.0  ;;  %v2551_v45 = vpack.c.bf16 %v1132_v41, %v1130_v39  ;;  %v1622_v46 = vld [vmem:[#allocation16 + $0x8] sm:$0xff]  ;;  %v1621_v52 = vld [vmem:[#allocation16] sm:$0xff]  ;;  %v1623_v56 = vld [vmem:[#allocation16 + $0x10] sm:$0xff] }
 0x1c5   :  { %v517_v4 = vmul.f32 %v3369_v29, %v3591_v0  ;;  %866 = vmatmul.mubr.f32.gmra.mrb[26].mxu1 %v653_v62  ;;  %vm591_vm14 = vcmp.gt.f32.partialorder %v559_v54, 0.0  ;;  %v624_v24 = vmul.f32 %v3387_v38, %v559_v54  ;;  %v1628_v62 = vld [vmem:[#allocation16 + $0x38] sm:$0xff]  ;;  %v1637_v39 = vld [vmem:[#allocation16 + $0x80] sm:$0xff]  ;;  %v1639_v41 = vld [vmem:[#allocation16 + $0x90] sm:$0xff] }
 0x1c6   :  { %v560_v5 = vadd.f32 %v3375_v31, %v516_v59  ;;  %v655_v7 = vsel %vm590_vm15, %v558_v48, %v623_v3  ;;  %v1127_v31 = vld [vmem:[%s4442_s9 + $0x1c8] sm:$0xff]  ;;  %v1626_v59 = vld [vmem:[#allocation16 + $0x28] sm:$0xff]  ;;  %v2555_v3 = vpack.c.bf16 %v1623_v56, %v1621_v52  ;;  %v1643_v56 = vld [vmem:[#allocation16 + $0xb0] sm:$0xff] }
 0x1c7   :  { %v561_v26 = vadd.f32 %v3381_v34, %v517_v4  ;;  %v656_v6 = vsel %vm591_vm14, %v559_v54, %v624_v24  ;;  %v1129_v34 = vld [vmem:[%s4442_s9 + $0x1d8] sm:$0xff]  ;;  %v1624_v48 = vld [vmem:[#allocation16 + $0x18] sm:$0xff]  ;;  %v2557_v4 = vpack.c.bf16 %v1628_v62, %v1626_v59  ;;  %v1625_v24 = vld [vmem:[#allocation16 + $0x20] sm:$0xff] }
 0x1c8   :  { %871 = vmatprep.mubr.f32.mxu1 %v656_v6  ;;  %v625_v27 = vmul.f32 %v3387_v38, %v560_v5  ;;  %vm592_vm2 = vcmp.gt.f32.partialorder %v560_v5, 0.0  ;;  %v2545_v15 = vpack.c.bf16 %v1129_v34, %v1127_v31  ;;  %v2553_v54 = vpack.c.bf16 %v1624_v48, %v1622_v46  ;;  %v1632_v6 = vld [vmem:[#allocation16 + $0x58] sm:$0xff]  ;;  %v1646_v59 = vld [vmem:[#allocation16 + $0xc8] sm:$0xff] }
 0x1c9   :  { %872 = vmatmul.mubr.f32.gmra.mrb[28].mxu1 %v655_v7  ;;  %vm593_vm1 = vcmp.gt.f32.partialorder %v561_v26, 0.0  ;;  %v626_v9 = vmul.f32 %v3387_v38, %v561_v26  ;;  %v1128_v38 = vld [vmem:[%s4442_s9 + $0x1d0] sm:$0xff]  ;;  %v1636_v31 = vld [vmem:[#allocation16 + $0x78] sm:$0xff]  ;;  %v2571_v48 = vpack.c.bf16 %v1639_v41, %v1637_v39  ;;  %v1659_v41 = vld [vmem:[#allocation16 + $0x130] sm:$0xff]  ;;  %s2333_s9 = sld [smem:[#allocation4 + $0x1]] }
 0x1ca   :  { %v657_v11 = vsel %vm592_vm2, %v560_v5, %v625_v27  ;;  %v2547_v20 = vpack.c.bf16 %v1128_v38, %v1126_v19  ;;  %2546 = vmatprep.subr.bf16.mxu0 %v2545_v15  ;;  %v1627_v5 = vld [vmem:[#allocation16 + $0x30] sm:$0xff]  ;;  %2554 = vmatprep.subr.bf16.mxu1 %v2553_v54  ;;  %v1633_v19 = vld [vmem:[#allocation16 + $0x60] sm:$0xff]  ;;  %v1644_v46 = vld [vmem:[#allocation16 + $0xb8] sm:$0xff] }
 0x1cb   :  { %v658_v29 = vsel %vm593_vm1, %v561_v26, %v626_v9  ;;  %v1630_v26 = vld [vmem:[#allocation16 + $0x48] sm:$0xff]  ;;  %2556 = vmatpush1.bf16.msra.mxu1 %v2555_v3  ;;  %v2559_v7 = vpack.c.bf16 %v1627_v5, %v1625_v24  ;;  %v1629_v9 = vld [vmem:[#allocation16 + $0x40] sm:$0xff]  ;;  %v1635_v38 = vld [vmem:[#allocation16 + $0x70] sm:$0xff] }
 0x1cc   :  { %877 = vmatprep.mubr.f32.mxu1 %v658_v29  ;;  %2548 = vmatpush1.bf16.msra.mxu0 %v2547_v20  ;;  %v2561_v27 = vpack.c.bf16 %v1632_v6, %v1630_v26  ;;  %v1631_v29 = vld [vmem:[#allocation16 + $0x50] sm:$0xff]  ;;  %v1638_v20 = vld [vmem:[#allocation16 + $0x88] sm:$0xff]  ;;  %v2567_v28 = vpack.c.bf16 %v1635_v38, %v1633_v19  ;;  %v1641_v54 = vld [vmem:[#allocation16 + $0xa0] sm:$0xff] }
 0x1cd   :  { %878 = vmatmul.mubr.f32.gmra.mrb[30].mxu1 %v657_v11  ;;  %2550 = vmatprep.subr.bf16.mxu0 %v2549_v32  ;;  %v1634_v11 = vld [vmem:[#allocation16 + $0x68] sm:$0xff]  ;;  %v2563_v34 = vpack.c.bf16 %v1631_v29, %v1629_v9  ;;  %v2569_v32 = vpack.c.bf16 %v1640_v23, %v1638_v20  ;;  %v1648_v62 = vld [vmem:[#allocation16 + $0xd8] sm:$0xff]  ;;  %v2575_v3 = vpack.c.bf16 %v1643_v56, %v1641_v54  ;;  %v1645_v24 = vld [vmem:[#allocation16 + $0xc0] sm:$0xff] }
 0x1ce   :  { %2558 = vmatprep.subr.bf16.mxu1 %v2557_v4  ;;  %v2565_v15 = vpack.c.bf16 %v1636_v31, %v1634_v11  ;;  %v2577_v4 = vpack.c.bf16 %v1648_v62, %v1646_v59  ;;  %v1647_v5 = vld [vmem:[#allocation16 + $0xd0] sm:$0xff]  ;;  %v1650_v26 = vld [vmem:[#allocation16 + $0xe8] sm:$0xff]  ;;  %v1652_v6 = vld [vmem:[#allocation16 + $0xf8] sm:$0xff] }
 0x1cf   :  { %2560 = vmatpush1.bf16.msra.mxu1 %v2559_v7  ;;  %v2579_v7 = vpack.c.bf16 %v1647_v5, %v1645_v24  ;;  %v1649_v9 = vld [vmem:[#allocation16 + $0xe0] sm:$0xff]  ;;  %v1651_v29 = vld [vmem:[#allocation16 + $0xf0] sm:$0xff]  ;;  %v1654_v11 = vld [vmem:[#allocation16 + $0x108] sm:$0xff] }
 0x1d0   :  { %2552 = vmatpush1.bf16.msra.mxu0 %v2551_v45  ;;  %2562 = vmatprep.subr.bf16.mxu1 %v2561_v27  ;;  %v1642_v45 = vld [vmem:[#allocation16 + $0xa8] sm:$0xff]  ;;  %v2581_v27 = vpack.c.bf16 %v1652_v6, %v1650_v26  ;;  %v1656_v31 = vld [vmem:[#allocation16 + $0x118] sm:$0xff]  ;;  %v1653_v19 = vld [vmem:[#allocation16 + $0x100] sm:$0xff] }
 0x1d1   :  { %v2573_v52 = vpack.c.bf16 %v1644_v46, %v1642_v45  ;;  %v1655_v38 = vld [vmem:[#allocation16 + $0x110] sm:$0xff]  ;;  %v1658_v20 = vld [vmem:[#allocation16 + $0x128] sm:$0xff]  ;;  %v1660_v23 = vld [vmem:[#allocation16 + $0x138] sm:$0xff] }
 0x1d2   :  { %v1657_v39 = vld [vmem:[#allocation16 + $0x120] sm:$0xff]  ;;  %v1662_v45 = vld [vmem:[#allocation16 + $0x148] sm:$0xff]  ;;  %v1664_v46 = vld [vmem:[#allocation16 + $0x158] sm:$0xff] }
 0x1d3   :  { %2564 = vmatpush1.bf16.msra.mxu1 %v2563_v34  ;;  %v2583_v34 = vpack.c.bf16 %v1651_v29, %v1649_v9  ;;  %v1661_v54 = vld [vmem:[#allocation16 + $0x140] sm:$0xff]  ;;  %v1663_v56 = vld [vmem:[#allocation16 + $0x150] sm:$0xff]  ;;  %v1666_v59 = vld [vmem:[#allocation16 + $0x168] sm:$0xff] }
 0x1d4   :  { %2566 = vmatprep.subr.bf16.mxu1 %v2565_v15  ;;  %v2585_v15 = vpack.c.bf16 %v1656_v31, %v1654_v11  ;;  %v1668_v62 = vld [vmem:[#allocation16 + $0x178] sm:$0xff]  ;;  %v1665_v24 = vld [vmem:[#allocation16 + $0x160] sm:$0xff]  ;;  %v1667_v5 = vld [vmem:[#allocation16 + $0x170] sm:$0xff] }
 0x1d5   :  { %v1670_v26 = vld [vmem:[#allocation16 + $0x188] sm:$0xff]  ;;  %v1672_v6 = vld [vmem:[#allocation16 + $0x198] sm:$0xff] }
 0x1d6   :  { %v885_v9 = vld [vmem:[#allocation12] sm:$0x3]  ;;  %v929_v29 = vld [vmem:[#allocation13] sm:$0x3] }
 0x1d7   :  { %2568 = vmatpush1.bf16.msra.mxu1 %v2567_v28  ;;  %v2587_v28 = vpack.c.bf16 %v1655_v38, %v1653_v19  ;;  %v3628_v11 = vrot.slane %v885_v9, %v3346_v16  ;;  %v3631_v31 = vrot.slane %v885_v9, %v3357_v21  ;;  %v3637_v19 = vrot.slane %v929_v29, %v3357_v21 }
 0x1d8   :  { %2570 = vmatprep.subr.bf16.mxu1 %v2569_v32  ;;  %v2589_v32 = vpack.c.bf16 %v1660_v23, %v1658_v20  ;;  %v3640_v23 = vstv %s2333_s9 }
 0x1db   :  { %2572 = vmatpush1.bf16.msra.mxu1 %v2571_v48  ;;  %v2591_v48 = vpack.c.bf16 %v1659_v41, %v1657_v39 }
 0x1dc   :  { %2574 = vmatprep.subr.bf16.mxu1 %v2573_v52  ;;  %v2593_v52 = vpack.c.bf16 %v1664_v46, %v1662_v45 }
 0x1df   :  { %2576 = vmatpush1.bf16.msra.mxu1 %v2575_v3  ;;  %v2595_v3 = vpack.c.bf16 %v1663_v56, %v1661_v54 }
 0x1e0   :  { %2578 = vmatprep.subr.bf16.mxu1 %v2577_v4  ;;  %v2597_v4 = vpack.c.bf16 %v1668_v62, %v1666_v59 }
 0x1e3   :  { %2580 = vmatpush1.bf16.msra.mxu1 %v2579_v7  ;;  %v2599_v7 = vpack.c.bf16 %v1667_v5, %v1665_v24 }
 0x1e4   :  { %2582 = vmatprep.subr.bf16.mxu1 %v2581_v27  ;;  %v2601_v27 = vpack.c.bf16 %v1672_v6, %v1670_v26 }
 0x1e7   :  { %2584 = vmatpush1.bf16.msra.mxu1 %v2583_v34  ;;  %v3634_v34 = vrot.slane %v929_v29, %v3346_v16 }
 0x1e8   :  { %2586 = vmatprep.subr.bf16.mxu1 %v2585_v15 }
 0x1eb   :  { %2588 = vmatpush1.bf16.msra.mxu1 %v2587_v28 }
 0x1ec   :  { %2590 = vmatprep.subr.bf16.mxu1 %v2589_v32 }
 0x1ef   :  { %2592 = vmatpush1.bf16.msra.mxu1 %v2591_v48 }
 0x1f0   :  { %2594 = vmatprep.subr.bf16.mxu1 %v2593_v52 }
 0x1f3   :  { %2596 = vmatpush1.bf16.msra.mxu1 %v2595_v3 }
 0x1f4   :  { %2598 = vmatprep.subr.bf16.mxu1 %v2597_v4 }
 0x1f7   :  { %2600 = vmatpush1.bf16.msra.mxu1 %v2599_v7 }
 0x1f8   :  { %2602 = vmatprep.subr.bf16.mxu1 %v2601_v27 }
 0x264   :  { %v789_v15 = vpop.f32.mrb[0].mxu1 }
 0x265   :  { %v897_v38 = vmul.f32 %v3628_v11, %v789_v15  ;;  %v791_v20 = vpop.f32.mrb[1].mxu1 }
 0x266   :  { %v898_v28 = vmul.f32 %v3631_v31, %v791_v20 }
 0x267   :  { %v941_v32 = vadd.f32 %v3634_v34, %v897_v38 }
 0x268   :  { %v942_v39 = vadd.f32 %v3637_v19, %v898_v28  ;;  %v795_v41 = vpop.f32.mrb[2].mxu1 }
 0x269   :  { %v1006_v45 = vmul.f32 %v3640_v23, %v941_v32  ;;  %v899_v46 = vmul.f32 %v3628_v11, %v795_v41  ;;  %v797_v48 = vpop.f32.mrb[3].mxu1  ;;  %vm973_vm3 = vcmp.gt.f32.partialorder %v941_v32, 0.0 }
 0x26a   :  { %v900_v52 = vmul.f32 %v3631_v31, %v797_v48  ;;  %vm974_vm4 = vcmp.gt.f32.partialorder %v942_v39, 0.0  ;;  %v1007_v54 = vmul.f32 %v3640_v23, %v942_v39 }
 0x26b   :  { %v943_v56 = vadd.f32 %v3634_v34, %v899_v46  ;;  %v1038_v5 = vsel %vm973_vm3, %v941_v32, %v1006_v45 }
 0x26c   :  { %v944_v59 = vadd.f32 %v3637_v19, %v900_v52  ;;  %v801_v62 = vpop.f32.mrb[4].mxu1  ;;  %v1039_v3 = vsel %vm974_vm4, %v942_v39, %v1007_v54 }
 0x26d   :  { %v901_v4 = vmul.f32 %v3628_v11, %v801_v62  ;;  %v803_v24 = vpop.f32.mrb[5].mxu1  ;;  %1210 = vmatprep.mubr.f32.mxu0 %v1039_v3  ;;  %v1008_v26 = vmul.f32 %v3640_v23, %v943_v56  ;;  %vm975_vm6 = vcmp.gt.f32.partialorder %v943_v56, 0.0 }
 0x26e   :  { %v902_v6 = vmul.f32 %v3631_v31, %v803_v24  ;;  %1211 = vmatmul.mubr.f32.vlgmr.msra.gmra.mrb[32].mxu0 %v1038_v5  ;;  %vm976_vm5 = vcmp.gt.f32.partialorder %v944_v59, 0.0  ;;  %v1009_v7 = vmul.f32 %v3640_v23, %v944_v59 }
 0x26f   :  { %v945_v27 = vadd.f32 %v3634_v34, %v901_v4  ;;  %v1040_v28 = vsel %vm975_vm6, %v943_v56, %v1008_v26 }
 0x270   :  { %v946_v9 = vadd.f32 %v3637_v19, %v902_v6  ;;  %v807_v29 = vpop.f32.mrb[6].mxu1  ;;  %v1041_v15 = vsel %vm976_vm5, %v944_v59, %v1009_v7 }
 0x271   :  { %v903_v38 = vmul.f32 %v3628_v11, %v807_v29  ;;  %v809_v20 = vpop.f32.mrb[7].mxu1  ;;  %1216 = vmatprep.mubr.f32.mxu0 %v1041_v15  ;;  %v1010_v32 = vmul.f32 %v3640_v23, %v945_v27  ;;  %vm977_vm8 = vcmp.gt.f32.partialorder %v945_v27, 0.0 }
 0x272   :  { %v904_v39 = vmul.f32 %v3631_v31, %v809_v20  ;;  %1217 = vmatmul.mubr.f32.gmra.mrb[34].mxu0 %v1040_v28  ;;  %vm978_vm7 = vcmp.gt.f32.partialorder %v946_v9, 0.0  ;;  %v1011_v41 = vmul.f32 %v3640_v23, %v946_v9 }
 0x273   :  { %v947_v45 = vadd.f32 %v3634_v34, %v903_v38  ;;  %v1042_v56 = vsel %vm977_vm8, %v945_v27, %v1010_v32 }
 0x274   :  { %v948_v46 = vadd.f32 %v3637_v19, %v904_v39  ;;  %v813_v48 = vpop.f32.mrb[8].mxu1  ;;  %v1043_v52 = vsel %vm978_vm7, %v946_v9, %v1011_v41 }
 0x275   :  { %v905_v54 = vmul.f32 %v3628_v11, %v813_v48  ;;  %v815_v59 = vpop.f32.mrb[9].mxu1  ;;  %1222 = vmatprep.mubr.f32.mxu0 %v1043_v52  ;;  %v1012_v62 = vmul.f32 %v3640_v23, %v947_v45  ;;  %vm979_vm10 = vcmp.gt.f32.partialorder %v947_v45, 0.0 }
 0x276   :  { %v906_v3 = vmul.f32 %v3631_v31, %v815_v59  ;;  %1223 = vmatmul.mubr.f32.gmra.mrb[36].mxu0 %v1042_v56  ;;  %vm980_vm9 = vcmp.gt.f32.partialorder %v948_v46, 0.0  ;;  %v1013_v4 = vmul.f32 %v3640_v23, %v948_v46 }
 0x277   :  { %v949_v24 = vadd.f32 %v3634_v34, %v905_v54  ;;  %v1044_v27 = vsel %vm979_vm10, %v947_v45, %v1012_v62 }
 0x278   :  { %v950_v5 = vadd.f32 %v3637_v19, %v906_v3  ;;  %v819_v26 = vpop.f32.mrb[10].mxu1  ;;  %v1045_v6 = vsel %vm980_vm9, %v948_v46, %v1013_v4 }
 0x279   :  { %v907_v7 = vmul.f32 %v3628_v11, %v819_v26  ;;  %v821_v9 = vpop.f32.mrb[11].mxu1  ;;  %1228 = vmatprep.mubr.f32.mxu0 %v1045_v6  ;;  %v1014_v29 = vmul.f32 %v3640_v23, %v949_v24  ;;  %vm981_vm12 = vcmp.gt.f32.partialorder %v949_v24, 0.0 }
 0x27a   :  { %v908_v15 = vmul.f32 %v3631_v31, %v821_v9  ;;  %1229 = vmatmul.mubr.f32.gmra.mrb[38].mxu0 %v1044_v27  ;;  %vm982_vm11 = vcmp.gt.f32.partialorder %v950_v5, 0.0  ;;  %v1015_v38 = vmul.f32 %v3640_v23, %v950_v5 }
 0x27b   :  { %v951_v20 = vadd.f32 %v3634_v34, %v907_v7  ;;  %v1046_v45 = vsel %vm981_vm12, %v949_v24, %v1014_v29 }
 0x27c   :  { %v952_v28 = vadd.f32 %v3637_v19, %v908_v15  ;;  %v825_v32 = vpop.f32.mrb[12].mxu1  ;;  %v1047_v39 = vsel %vm982_vm11, %v950_v5, %v1015_v38 }
 0x27d   :  { %v909_v41 = vmul.f32 %v3628_v11, %v825_v32  ;;  %v827_v46 = vpop.f32.mrb[13].mxu1  ;;  %1234 = vmatprep.mubr.f32.mxu0 %v1047_v39  ;;  %v1016_v48 = vmul.f32 %v3640_v23, %v951_v20  ;;  %vm983_vm14 = vcmp.gt.f32.partialorder %v951_v20, 0.0 }
 0x27e   :  { %v910_v52 = vmul.f32 %v3631_v31, %v827_v46  ;;  %1235 = vmatmul.mubr.f32.gmra.mrb[40].mxu0 %v1046_v45  ;;  %vm984_vm13 = vcmp.gt.f32.partialorder %v952_v28, 0.0  ;;  %v1017_v54 = vmul.f32 %v3640_v23, %v952_v28 }
 0x27f   :  { %v953_v59 = vadd.f32 %v3634_v34, %v909_v41  ;;  %v1048_v24 = vsel %vm983_vm14, %v951_v20, %v1016_v48 }
 0x280   :  { %v954_v56 = vadd.f32 %v3637_v19, %v910_v52  ;;  %v831_v62 = vpop.f32.mrb[14].mxu1  ;;  %v1049_v3 = vsel %vm984_vm13, %v952_v28, %v1017_v54 }
 0x281   :  { %v911_v4 = vmul.f32 %v3628_v11, %v831_v62  ;;  %v833_v5 = vpop.f32.mrb[15].mxu1  ;;  %1240 = vmatprep.mubr.f32.mxu0 %v1049_v3  ;;  %v1018_v26 = vmul.f32 %v3640_v23, %v953_v59  ;;  %vm985_vm1 = vcmp.gt.f32.partialorder %v953_v59, 0.0 }
 0x282   :  { %v912_v6 = vmul.f32 %v3631_v31, %v833_v5  ;;  %1241 = vmatmul.mubr.f32.gmra.mrb[42].mxu0 %v1048_v24  ;;  %vm986_vm15 = vcmp.gt.f32.partialorder %v954_v56, 0.0  ;;  %v1019_v7 = vmul.f32 %v3640_v23, %v954_v56 }
 0x283   :  { %v955_v9 = vadd.f32 %v3634_v34, %v911_v4  ;;  %v1050_v20 = vsel %vm985_vm1, %v953_v59, %v1018_v26 }
 0x284   :  { %v956_v27 = vadd.f32 %v3637_v19, %v912_v6  ;;  %v837_v29 = vpop.f32.mrb[16].mxu1  ;;  %v1051_v15 = vsel %vm986_vm15, %v954_v56, %v1019_v7 }
 0x285   :  { %v913_v38 = vmul.f32 %v3628_v11, %v837_v29  ;;  %v839_v28 = vpop.f32.mrb[17].mxu1  ;;  %1246 = vmatprep.mubr.f32.mxu0 %v1051_v15  ;;  %v1020_v32 = vmul.f32 %v3640_v23, %v955_v9  ;;  %vm987_vm3 = vcmp.gt.f32.partialorder %v955_v9, 0.0 }
 0x286   :  { %v914_v39 = vmul.f32 %v3631_v31, %v839_v28  ;;  %1247 = vmatmul.mubr.f32.gmra.mrb[44].mxu0 %v1050_v20  ;;  %vm988_vm2 = vcmp.gt.f32.partialorder %v956_v27, 0.0  ;;  %v1021_v41 = vmul.f32 %v3640_v23, %v956_v27 }
 0x287   :  { %v957_v46 = vadd.f32 %v3634_v34, %v913_v38  ;;  %v1052_v59 = vsel %vm987_vm3, %v955_v9, %v1020_v32 }
 0x288   :  { %v958_v45 = vadd.f32 %v3637_v19, %v914_v39  ;;  %v843_v48 = vpop.f32.mrb[18].mxu1  ;;  %v1053_v52 = vsel %vm988_vm2, %v956_v27, %v1021_v41 }
 0x289   :  { %v915_v54 = vmul.f32 %v3628_v11, %v843_v48  ;;  %v845_v56 = vpop.f32.mrb[19].mxu1  ;;  %1252 = vmatprep.mubr.f32.mxu0 %v1053_v52  ;;  %v1022_v62 = vmul.f32 %v3640_v23, %v957_v46  ;;  %vm989_vm5 = vcmp.gt.f32.partialorder %v957_v46, 0.0 }
 0x28a   :  { %v916_v3 = vmul.f32 %v3631_v31, %v845_v56  ;;  %1253 = vmatmul.mubr.f32.gmra.mrb[46].mxu0 %v1052_v59  ;;  %vm990_vm4 = vcmp.gt.f32.partialorder %v958_v45, 0.0  ;;  %v1023_v4 = vmul.f32 %v3640_v23, %v958_v45 }
 0x28b   :  { %v959_v5 = vadd.f32 %v3634_v34, %v915_v54  ;;  %v1054_v9 = vsel %vm989_vm5, %v957_v46, %v1022_v62 }
 0x28c   :  { %v960_v24 = vadd.f32 %v3637_v19, %v916_v3  ;;  %v849_v26 = vpop.f32.mrb[20].mxu1  ;;  %v1055_v6 = vsel %vm990_vm4, %v958_v45, %v1023_v4 }
 0x28d   :  { %v917_v7 = vmul.f32 %v3628_v11, %v849_v26  ;;  %v851_v27 = vpop.f32.mrb[21].mxu1  ;;  %1258 = vmatprep.mubr.f32.mxu0 %v1055_v6  ;;  %v1024_v29 = vmul.f32 %v3640_v23, %v959_v5  ;;  %vm991_vm7 = vcmp.gt.f32.partialorder %v959_v5, 0.0 }
 0x28e   :  { %v918_v15 = vmul.f32 %v3631_v31, %v851_v27  ;;  %1259 = vmatmul.mubr.f32.gmra.mrb[48].mxu0 %v1054_v9  ;;  %vm992_vm6 = vcmp.gt.f32.partialorder %v960_v24, 0.0  ;;  %v1025_v38 = vmul.f32 %v3640_v23, %v960_v24 }
 0x28f   :  { %v961_v28 = vadd.f32 %v3634_v34, %v917_v7  ;;  %v1056_v46 = vsel %vm991_vm7, %v959_v5, %v1024_v29 }
 0x290   :  { %v962_v20 = vadd.f32 %v3637_v19, %v918_v15  ;;  %v855_v32 = vpop.f32.mrb[22].mxu1  ;;  %v1057_v39 = vsel %vm992_vm6, %v960_v24, %v1025_v38 }
 0x291   :  { %v919_v41 = vmul.f32 %v3628_v11, %v855_v32  ;;  %v857_v45 = vpop.f32.mrb[23].mxu1  ;;  %1264 = vmatprep.mubr.f32.mxu0 %v1057_v39  ;;  %v1026_v48 = vmul.f32 %v3640_v23, %v961_v28  ;;  %vm993_vm9 = vcmp.gt.f32.partialorder %v961_v28, 0.0 }
 0x292   :  { %v920_v52 = vmul.f32 %v3631_v31, %v857_v45  ;;  %1265 = vmatmul.mubr.f32.gmra.mrb[50].mxu0 %v1056_v46  ;;  %vm994_vm8 = vcmp.gt.f32.partialorder %v962_v20, 0.0  ;;  %v1027_v54 = vmul.f32 %v3640_v23, %v962_v20 }
 0x293   :  { %v963_v56 = vadd.f32 %v3634_v34, %v919_v41  ;;  %v1058_v5 = vsel %vm993_vm9, %v961_v28, %v1026_v48 }
 0x294   :  { %v964_v59 = vadd.f32 %v3637_v19, %v920_v52  ;;  %v861_v62 = vpop.f32.mrb[24].mxu1  ;;  %v1059_v3 = vsel %vm994_vm8, %v962_v20, %v1027_v54 }
 0x295   :  { %v921_v4 = vmul.f32 %v3628_v11, %v861_v62  ;;  %v863_v24 = vpop.f32.mrb[25].mxu1  ;;  %1270 = vmatprep.mubr.f32.mxu0 %v1059_v3  ;;  %v1028_v26 = vmul.f32 %v3640_v23, %v963_v56  ;;  %vm995_vm11 = vcmp.gt.f32.partialorder %v963_v56, 0.0 }
 0x296   :  { %v922_v6 = vmul.f32 %v3631_v31, %v863_v24  ;;  %1271 = vmatmul.mubr.f32.gmra.mrb[52].mxu0 %v1058_v5  ;;  %vm996_vm10 = vcmp.gt.f32.partialorder %v964_v59, 0.0  ;;  %v1029_v7 = vmul.f32 %v3640_v23, %v964_v59 }
 0x297   :  { %v965_v27 = vadd.f32 %v3634_v34, %v921_v4  ;;  %v1060_v28 = vsel %vm995_vm11, %v963_v56, %v1028_v26 }
 0x298   :  { %v966_v9 = vadd.f32 %v3637_v19, %v922_v6  ;;  %v867_v29 = vpop.f32.mrb[26].mxu1  ;;  %v1061_v15 = vsel %vm996_vm10, %v964_v59, %v1029_v7 }
 0x299   :  { %v923_v38 = vmul.f32 %v3628_v11, %v867_v29  ;;  %v869_v20 = vpop.f32.mrb[27].mxu1  ;;  %1276 = vmatprep.mubr.f32.mxu0 %v1061_v15  ;;  %v1030_v32 = vmul.f32 %v3640_v23, %v965_v27  ;;  %vm997_vm13 = vcmp.gt.f32.partialorder %v965_v27, 0.0 }
 0x29a   :  { %v924_v39 = vmul.f32 %v3631_v31, %v869_v20  ;;  %1277 = vmatmul.mubr.f32.gmra.mrb[54].mxu0 %v1060_v28  ;;  %vm998_vm12 = vcmp.gt.f32.partialorder %v966_v9, 0.0  ;;  %v1031_v41 = vmul.f32 %v3640_v23, %v966_v9 }
 0x29b   :  { %v967_v45 = vadd.f32 %v3634_v34, %v923_v38  ;;  %v1062_v56 = vsel %vm997_vm13, %v965_v27, %v1030_v32 }
 0x29c   :  { %v968_v46 = vadd.f32 %v3637_v19, %v924_v39  ;;  %v873_v48 = vpop.f32.mrb[28].mxu1  ;;  %v1063_v52 = vsel %vm998_vm12, %v966_v9, %v1031_v41 }
 0x29d   :  { %v925_v54 = vmul.f32 %v3628_v11, %v873_v48  ;;  %v875_v59 = vpop.f32.mrb[29].mxu1  ;;  %1282 = vmatprep.mubr.f32.mxu0 %v1063_v52  ;;  %v1032_v62 = vmul.f32 %v3640_v23, %v967_v45  ;;  %vm999_vm15 = vcmp.gt.f32.partialorder %v967_v45, 0.0  ;;  %v1671_v48 = vld [vmem:[#allocation16 + $0x190] sm:$0xff] }
 0x29e   :  { %v926_v3 = vmul.f32 %v3631_v31, %v875_v59  ;;  %1283 = vmatmul.mubr.f32.gmra.mrb[56].mxu0 %v1062_v56  ;;  %vm1000_vm14 = vcmp.gt.f32.partialorder %v968_v46, 0.0  ;;  %v1033_v4 = vmul.f32 %v3640_v23, %v968_v46  ;;  %v1673_v59 = vld [vmem:[#allocation16 + $0x1a0] sm:$0xff]  ;;  %v1675_v56 = vld [vmem:[#allocation16 + $0x1b0] sm:$0xff] }
 0x29f   :  { %v969_v24 = vadd.f32 %v3634_v34, %v925_v54  ;;  %v1064_v27 = vsel %vm999_vm15, %v967_v45, %v1032_v62  ;;  %v2607_v62 = vpack.c.bf16 %v1675_v56, %v1673_v59  ;;  %v2112_v59 = vld [vmem:[%s4450_s17 + $0x20] sm:$0xff]  ;;  %v2113_v56 = vld [vmem:[%s4450_s17 + $0x28] sm:$0xff] }
 0x2a0   :  { %v970_v5 = vadd.f32 %v3637_v19, %v926_v3  ;;  %v879_v26 = vpop.f32.mrb[30].mxu1  ;;  %v1065_v6 = vsel %vm1000_vm14, %v968_v46, %v1033_v4  ;;  %v1669_v46 = vld [vmem:[#allocation16 + $0x180] sm:$0xff]  ;;  %v1678_v3 = vld [vmem:[#allocation16 + $0x1c8] sm:$0xff]  ;;  %v1680_v4 = vld [vmem:[#allocation16 + $0x1d8] sm:$0xff] }
 0x2a1   :  { %v927_v7 = vmul.f32 %v3628_v11, %v879_v26  ;;  %v881_v9 = vpop.f32.mrb[31].mxu1  ;;  %1288 = vmatprep.mubr.f32.mxu0 %v1065_v6  ;;  %v1034_v29 = vmul.f32 %v3640_v23, %v969_v24  ;;  %vm1001_vm2 = vcmp.gt.f32.partialorder %v969_v24, 0.0  ;;  %v2603_v52 = vpack.c.bf16 %v1671_v48, %v1669_v46  ;;  %v1682_v6 = vld [vmem:[#allocation16 + $0x1e8] sm:$0xff] }
 0x2a2   :  { %v928_v15 = vmul.f32 %v3631_v31, %v881_v9  ;;  %1289 = vmatmul.mubr.f32.gmra.mrb[58].mxu0 %v1064_v27  ;;  %vm1002_vm1 = vcmp.gt.f32.partialorder %v970_v5, 0.0  ;;  %v1035_v38 = vmul.f32 %v3640_v23, %v970_v5  ;;  %v1681_v27 = vld [vmem:[#allocation16 + $0x1e0] sm:$0xff]  ;;  %v2111_v48 = vld [vmem:[%s4450_s17 + $0x18] sm:$0xff] }
 0x2a3   :  { %v971_v20 = vadd.f32 %v3634_v34, %v927_v7  ;;  %v1066_v39 = vsel %vm1001_vm2, %v969_v24, %v1034_v29  ;;  %2604 = vmatpush1.bf16.msra.mxu1 %v2603_v52  ;;  %v1674_v34 = vld [vmem:[#allocation16 + $0x1a8] sm:$0xff]  ;;  %v1677_v24 = vld [vmem:[#allocation16 + $0x1c0] sm:$0xff]  ;;  %v1684_v7 = vld [vmem:[#allocation16 + $0x1f8] sm:$0xff] }
 0x2a4   :  { %v972_v28 = vadd.f32 %v3637_v19, %v928_v15  ;;  %v1067_v32 = vsel %vm1002_vm1, %v970_v5, %v1035_v38  ;;  %v1676_v19 = vld [vmem:[#allocation16 + $0x1b8] sm:$0xff]  ;;  %v1679_v5 = vld [vmem:[#allocation16 + $0x1d0] sm:$0xff]  ;;  %v2613_v9 = vpack.c.bf16 %v1684_v7, %v1682_v6  ;;  %v2110_v46 = vld [vmem:[%s4450_s17 + $0x10] sm:$0xff] }
 0x2a5   :  { %1294 = vmatprep.mubr.f32.mxu0 %v1067_v32  ;;  %v1036_v11 = vmul.f32 %v3640_v23, %v971_v20  ;;  %vm1003_vm4 = vcmp.gt.f32.partialorder %v971_v20, 0.0  ;;  %v2605_v54 = vpack.c.bf16 %v1676_v19, %v1674_v34  ;;  %v2611_v26 = vpack.c.bf16 %v1679_v5, %v1677_v24  ;;  %v1683_v29 = vld [vmem:[#allocation16 + $0x1f0] sm:$0xff]  ;;  %v2129_v34 = vld [vmem:[%s4450_s17 + $0xa8] sm:$0xff]  ;;  %v2114_v24 = vld [vmem:[%s4450_s17 + $0x30] sm:$0xff] }
 0x2a6   :  { %1295 = vmatmul.mubr.f32.gmra.mrb[60].mxu0 %v1066_v39  ;;  %vm1004_vm3 = vcmp.gt.f32.partialorder %v972_v28, 0.0  ;;  %v1037_v41 = vmul.f32 %v3640_v23, %v972_v28  ;;  %v2609_v23 = vpack.c.bf16 %v1680_v4, %v1678_v3  ;;  %v2615_v15 = vpack.c.bf16 %v1683_v29, %v1681_v27  ;;  %v2124_v38 = vld [vmem:[%s4450_s17 + $0x80] sm:$0xff]  ;;  %v2109_v39 = vld [vmem:[%s4450_s17 + $0x8] sm:$0xff]  ;;  %v2131_v3 = vld [vmem:[%s4450_s17 + $0xb8] sm:$0xff] }
 0x2a7   :  { %v1068_v45 = vsel %vm1003_vm4, %v971_v20, %v1036_v11  ;;  %2606 = vmatprep.subr.bf16.mxu1 %v2605_v54  ;;  %v2125_v20 = vld [vmem:[%s4450_s17 + $0x88] sm:$0xff]  ;;  %v2126_v11 = vld [vmem:[%s4450_s17 + $0x90] sm:$0xff]  ;;  %v2128_v52 = vld [vmem:[%s4450_s17 + $0xa0] sm:$0xff]  ;;  %v3772_v19 = vpack.c.bf16 %v2111_v48, %v2110_v46  ;;  %v3790_v4 = vpack.c.bf16 %v2113_v56, %v2112_v59 }
 0x2a8   :  { %v1069_v31 = vsel %vm1004_vm3, %v972_v28, %v1037_v41  ;;  %2608 = vmatpush1.bf16.msra.mxu1 %v2607_v62  ;;  %v2108_v28 = vld [vmem:[%s4450_s17] sm:$0xff]  ;;  %v2617_v32 = vpack.c.bf16 %v2125_v20, %v2124_v38  ;;  %v2127_v41 = vld [vmem:[%s4450_s17 + $0x98] sm:$0xff]  ;;  %v3775_v54 = vpack.c.bf16 %v2129_v34, %v2128_v52  ;;  %v2130_v62 = vld [vmem:[%s4450_s17 + $0xb0] sm:$0xff] }
 0x2a9   :  { %1300 = vmatprep.mubr.f32.mxu0 %v1069_v31  ;;  %2610 = vmatprep.subr.bf16.mxu1 %v2609_v23  ;;  %v3755_v31 = vpack.c.bf16 %v2109_v39, %v2108_v28  ;;  %v3793_v23 = vpack.c.bf16 %v2131_v3, %v2130_v62  ;;  %v2115_v5 = vld [vmem:[%s4450_s17 + $0x38] sm:$0xff]  ;;  %v2133_v6 = vld [vmem:[%s4450_s17 + $0xc8] sm:$0xff]  ;;  %v2116_v27 = vld [vmem:[%s4450_s17 + $0x40] sm:$0xff] }
 0x2aa   :  { %1301 = vmatmul.mubr.f32.gmra.mrb[62].mxu0 %v1068_v45  ;;  %v3757_v45 = vpack.c.bf16 %v2127_v41, %v2126_v11  ;;  %2618 = vmatprep.subr.bf16.mxu0 %v2617_v32  ;;  %v3808_v7 = vpack.c.bf16 %v2115_v5, %v2114_v24  ;;  %v2117_v29 = vld [vmem:[%s4450_s17 + $0x48] sm:$0xff]  ;;  %v2135_v38 = vld [vmem:[%s4450_s17 + $0xd8] sm:$0xff]  ;;  %v1134_v41 = vld [vmem:[%s4443_s10] sm:$0x3] }
 0x2ab   :  { %2620 = vmatpush3.bf16.msra.mxu0 %v3755_v31  ;;  %v3826_v20 = vpack.c.bf16 %v2117_v29, %v2116_v27  ;;  %v2119_v39 = vld [vmem:[%s4450_s17 + $0x58] sm:$0xff]  ;;  %v3846_v46 = vrot.slane %v1134_v41, %v3346_v16  ;;  %v3849_v48 = vrot.slane %v1134_v41, %v3357_v21  ;;  %v1436_v34 = vld [vmem:[#allocation15] sm:$0x3]  ;;  %v1480_v62 = vld [vmem:[%s4475_s12] sm:$0x3] }
 0x2ac   :  { %2612 = vmatpush1.bf16.msra.mxu1 %v2611_v26  ;;  %2622 = vmatprep.subr.bf16.mxu0 %v3757_v45  ;;  %v2132_v26 = vld [vmem:[%s4450_s17 + $0xc0] sm:$0xff]  ;;  %v3858_v5 = vrot.slane %v1436_v34, %v3346_v16  ;;  %v3874_v41 = vrot.slane %v1480_v62, %v3357_v21 }
 0x2ad   :  { %2614 = vmatprep.subr.bf16.mxu1 %v2613_v9  ;;  %v3811_v9 = vpack.c.bf16 %v2133_v6, %v2132_v26  ;;  %v3862_v6 = vrot.slane %v1436_v34, %v3357_v21 }
 0x2af   :  { %2624 = vmatpush3.bf16.msra.mxu0 %v3772_v19 }
 0x2b0   :  { %2616 = vmatpush1.bf16.msra.mxu1 %v2615_v15  ;;  %2626 = vmatprep.subr.bf16.mxu0 %v3775_v54  ;;  %v2134_v15 = vld [vmem:[%s4450_s17 + $0xd0] sm:$0xff] }
 0x2b1   :  { %2649 = vmatprep.subr.bf16.mxu1 %v2617_v32  ;;  %v3829_v28 = vpack.c.bf16 %v2135_v38, %v2134_v15  ;;  %v2118_v32 = vld [vmem:[%s4450_s17 + $0x50] sm:$0xff]  ;;  %v3867_v15 = vrot.slane %v1480_v62, %v3346_v16 }
 0x2b2   :  { %v3838_v11 = vpack.c.bf16 %v2119_v39, %v2118_v32 }
 0x2b3   :  { %2628 = vmatpush3.bf16.msra.mxu0 %v3790_v4 }
 0x2b4   :  { %2630 = vmatprep.subr.bf16.mxu0 %v3793_v23 }
 0x2b7   :  { %2632 = vmatpush3.bf16.msra.mxu0 %v3808_v7 }
 0x2b8   :  { %2634 = vmatprep.subr.bf16.mxu0 %v3811_v9 }
 0x2bb   :  { %2636 = vmatpush3.bf16.msra.mxu0 %v3826_v20 }
 0x2bc   :  { %2638 = vmatprep.subr.bf16.mxu0 %v3829_v28 }
 0x2bf   :  { %2640 = vmatpush3.bf16.msra.mxu0 %v3838_v11 }
 0x341   :  { %v1212_v52 = vpop.f32.mrb[32].mxu0 }
 0x342   :  { %v1213_v59 = vadd.f32 %v1212_v52, %v3846_v46  ;;  %v1214_v56 = vpop.f32.mrb[33].mxu0 }
 0x343   :  { %v1215_v3 = vadd.f32 %v1214_v56, %v3849_v48 }
 0x344   :  { %v1307_v24 = vadd.f32 %v1213_v59, %v3372_v30 }
 0x345   :  { %v1308_v26 = vadd.f32 %v1215_v3, %v3378_v33  ;;  %v1218_v27 = vpop.f32.mrb[34].mxu0  ;;  %v3882_v3 = vstv %s2334_s25 }
 0x346   :  { %v3864_v29 = vmul.f32 0.5, %v1307_v24  ;;  %v1219_v38 = vadd.f32 %v1218_v27, %v3846_v46  ;;  %v1220_v32 = vpop.f32.mrb[35].mxu0 }
 0x347   :  { %v3870_v39 = vmul.f32 0.5, %v1308_v26  ;;  %v1221_v30 = vadd.f32 %v1220_v32, %v3849_v48 }
 0x348   :  { %4476 = vst [vmem:[#allocation26_spill] sm:$0xff] %v3864_v29  ;;  %v1448_v33 = vmul.f32 %v3858_v5, %v3864_v29  ;;  %v1309_v52 = vadd.f32 %v1219_v38, %v3391_v40 }
 0x349   :  { %4477 = vst [vmem:[#allocation27_spill] sm:$0xff] %v3870_v39  ;;  %v1449_v34 = vmul.f32 %v3862_v6, %v3870_v39  ;;  %v1310_v59 = vadd.f32 %v1221_v30, %v3394_v42  ;;  %v1224_v56 = vpop.f32.mrb[36].mxu0 }
 0x34a   :  { %v1492_v24 = vadd.f32 %v3867_v15, %v1448_v33  ;;  %v3885_v26 = vmul.f32 0.5, %v1309_v52  ;;  %v1225_v62 = vadd.f32 %v1224_v56, %v3846_v46  ;;  %v1226_v27 = vpop.f32.mrb[37].mxu0 }
 0x34b   :  { %v3888_v32 = vmul.f32 0.5, %v1310_v59  ;;  %v1227_v29 = vadd.f32 %v1226_v27, %v3849_v48  ;;  %v1493_v40 = vadd.f32 %v3874_v41, %v1449_v34 }
 0x34c   :  { %4478 = vst [vmem:[#allocation28_spill] sm:$0xff] %v3885_v26  ;;  %v1450_v38 = vmul.f32 %v3858_v5, %v3885_v26  ;;  %v1311_v42 = vadd.f32 %v1225_v62, %v3405_v50  ;;  %vm1524_vm5 = vcmp.gt.f32.partialorder %v1492_v24, 0.0  ;;  %v1557_v30 = vmul.f32 %v3882_v3, %v1492_v24 }
 0x34d   :  { %4479 = vst [vmem:[#allocation29_spill] sm:$0xff] %v3888_v32  ;;  %v1451_v33 = vmul.f32 %v3862_v6, %v3888_v32  ;;  %v1312_v52 = vadd.f32 %v1227_v29, %v3409_v53  ;;  %v1230_v56 = vpop.f32.mrb[38].mxu0  ;;  %vm1525_vm6 = vcmp.gt.f32.partialorder %v1493_v40, 0.0  ;;  %v1558_v59 = vmul.f32 %v3882_v3, %v1493_v40 }
 0x34e   :  { %v3900_v27 = vmul.f32 0.5, %v1311_v42  ;;  %v1231_v34 = vadd.f32 %v1230_v56, %v3846_v46  ;;  %v1232_v39 = vpop.f32.mrb[39].mxu0  ;;  %v1589_v26 = vsel %vm1524_vm5, %v1492_v24, %v1557_v30  ;;  %v1494_v50 = vadd.f32 %v3867_v15, %v1450_v38 }
 0x34f   :  { %v3904_v62 = vmul.f32 0.5, %v1312_v52  ;;  %v1233_v21 = vadd.f32 %v1232_v39, %v3849_v48  ;;  %v1590_v16 = vsel %vm1525_vm6, %v1493_v40, %v1558_v59  ;;  %v1495_v32 = vadd.f32 %v3874_v41, %v1451_v33 }
 0x350   :  { %v1452_v53 = vmul.f32 %v3858_v5, %v3900_v27  ;;  %v1313_v29 = vadd.f32 %v1231_v34, %v3419_v61  ;;  %1761 = vmatprep.mubr.f32.mxu1 %v1590_v16  ;;  %vm1526_vm7 = vcmp.gt.f32.partialorder %v1494_v50, 0.0  ;;  %v1559_v42 = vmul.f32 %v3882_v3, %v1494_v50 }
 0x351   :  { %v1453_v24 = vmul.f32 %v3862_v6, %v3904_v62  ;;  %v1314_v38 = vadd.f32 %v1233_v21, %v3423_v1  ;;  %v1236_v30 = vpop.f32.mrb[40].mxu0  ;;  %1762 = vmatmul.mubr.f32.vlgmr.msra.gmra.mrb[32].mxu1 %v1589_v26  ;;  %vm1527_vm8 = vcmp.gt.f32.partialorder %v1495_v32, 0.0  ;;  %v1560_v39 = vmul.f32 %v3882_v3, %v1495_v32 }
 0x352   :  { %v3916_v40 = vmul.f32 0.5, %v1313_v29  ;;  %v1237_v33 = vadd.f32 %v1236_v30, %v3846_v46  ;;  %v1238_v52 = vpop.f32.mrb[41].mxu0  ;;  %v1591_v61 = vsel %vm1526_vm7, %v1494_v50, %v1559_v42  ;;  %v1496_v16 = vadd.f32 %v3867_v15, %v1452_v53  ;;  %2657 = vmatpush3.bf16.msra.mxu1 %v3755_v31 }
 0x353   :  { %v3921_v56 = vmul.f32 0.5, %v1314_v38  ;;  %v1239_v59 = vadd.f32 %v1238_v52, %v3849_v48  ;;  %v1592_v21 = vsel %vm1527_vm8, %v1495_v32, %v1560_v39  ;;  %v1497_v1 = vadd.f32 %v3874_v41, %v1453_v24  ;;  %2650 = vmatprep.subr.bf16.mxu1 %v3757_v45 }
 0x354   :  { %v1454_v26 = vmul.f32 %v3858_v5, %v3916_v40  ;;  %v1315_v34 = vadd.f32 %v1237_v33, %v3433_v10  ;;  %1767 = vmatprep.mubr.f32.mxu1 %v1592_v21  ;;  %vm1528_vm9 = vcmp.gt.f32.partialorder %v1496_v16, 0.0  ;;  %v1561_v50 = vmul.f32 %v3882_v3, %v1496_v16 }
 0x355   :  { %v1455_v31 = vmul.f32 %v3862_v6, %v3921_v56  ;;  %v1316_v53 = vadd.f32 %v1239_v59, %v3437_v13  ;;  %v1242_v29 = vpop.f32.mrb[42].mxu0  ;;  %1768 = vmatmul.mubr.f32.gmra.mrb[34].mxu1 %v1591_v61  ;;  %vm1529_vm10 = vcmp.gt.f32.partialorder %v1497_v1, 0.0  ;;  %v1562_v32 = vmul.f32 %v3882_v3, %v1497_v1 }
 0x356   :  { %v3934_v45 = vmul.f32 0.5, %v1315_v34  ;;  %v1243_v42 = vadd.f32 %v1242_v29, %v3846_v46  ;;  %v1244_v24 = vpop.f32.mrb[43].mxu0  ;;  %v1593_v10 = vsel %vm1528_vm9, %v1496_v16, %v1561_v50  ;;  %v1498_v38 = vadd.f32 %v3867_v15, %v1454_v26  ;;  %2658 = vmatpush3.bf16.msra.mxu1 %v3772_v19 }
 0x357   :  { %v3939_v30 = vmul.f32 0.5, %v1316_v53  ;;  %v1245_v39 = vadd.f32 %v1244_v24, %v3849_v48  ;;  %v1594_v13 = vsel %vm1529_vm10, %v1497_v1, %v1562_v32  ;;  %v1499_v33 = vadd.f32 %v3874_v41, %v1455_v31  ;;  %2651 = vmatprep.subr.bf16.mxu1 %v3775_v54 }
 0x358   :  { %v1456_v52 = vmul.f32 %v3858_v5, %v3934_v45  ;;  %v1317_v61 = vadd.f32 %v1243_v42, %v3447_v25  ;;  %1773 = vmatprep.mubr.f32.mxu1 %v1594_v13  ;;  %vm1530_vm11 = vcmp.gt.f32.partialorder %v1498_v38, 0.0  ;;  %v1563_v16 = vmul.f32 %v3882_v3, %v1498_v38 }
 0x359   :  { %v1457_v19 = vmul.f32 %v3862_v6, %v3939_v30  ;;  %v1318_v59 = vadd.f32 %v1245_v39, %v3451_v35  ;;  %v1248_v21 = vpop.f32.mrb[44].mxu0  ;;  %1774 = vmatmul.mubr.f32.gmra.mrb[36].mxu1 %v1593_v10  ;;  %vm1531_vm12 = vcmp.gt.f32.partialorder %v1499_v33, 0.0  ;;  %v1564_v1 = vmul.f32 %v3882_v3, %v1499_v33 }
 0x35a   :  { %v3952_v54 = vmul.f32 0.5, %v1317_v61  ;;  %v1249_v26 = vadd.f32 %v1248_v21, %v3846_v46  ;;  %v1250_v34 = vpop.f32.mrb[45].mxu0  ;;  %v1595_v25 = vsel %vm1530_vm11, %v1498_v38, %v1563_v16  ;;  %v1500_v50 = vadd.f32 %v3867_v15, %v1456_v52  ;;  %2659 = vmatpush3.bf16.msra.mxu1 %v3790_v4 }
 0x35b   :  { %v3957_v31 = vmul.f32 0.5, %v1318_v59  ;;  %v1251_v53 = vadd.f32 %v1250_v34, %v3849_v48  ;;  %v1596_v35 = vsel %vm1531_vm12, %v1499_v33, %v1564_v1  ;;  %v1501_v29 = vadd.f32 %v3874_v41, %v1457_v19  ;;  %2652 = vmatprep.subr.bf16.mxu1 %v3793_v23 }
 0x35c   :  { %v1458_v32 = vmul.f32 %v3858_v5, %v3952_v54  ;;  %v1319_v42 = vadd.f32 %v1249_v26, %v3461_v47  ;;  %1779 = vmatprep.mubr.f32.mxu1 %v1596_v35  ;;  %vm1532_vm13 = vcmp.gt.f32.partialorder %v1500_v50, 0.0  ;;  %v1565_v24 = vmul.f32 %v3882_v3, %v1500_v50 }
 0x35d   :  { %v1459_v4 = vmul.f32 %v3862_v6, %v3957_v31  ;;  %v1320_v10 = vadd.f32 %v1251_v53, %v3465_v51  ;;  %v1254_v38 = vpop.f32.mrb[46].mxu0  ;;  %1780 = vmatmul.mubr.f32.gmra.mrb[38].mxu1 %v1595_v25  ;;  %vm1533_vm14 = vcmp.gt.f32.partialorder %v1501_v29, 0.0  ;;  %v1566_v39 = vmul.f32 %v3882_v3, %v1501_v29 }
 0x35e   :  { %v3970_v23 = vmul.f32 0.5, %v1319_v42  ;;  %v1255_v13 = vadd.f32 %v1254_v38, %v3846_v46  ;;  %v1256_v33 = vpop.f32.mrb[47].mxu0  ;;  %v1597_v47 = vsel %vm1532_vm13, %v1500_v50, %v1565_v24  ;;  %v1502_v52 = vadd.f32 %v3867_v15, %v1458_v32  ;;  %2660 = vmatpush3.bf16.msra.mxu1 %v3808_v7 }
 0x35f   :  { %v3975_v61 = vmul.f32 0.5, %v1320_v10  ;;  %v1257_v16 = vadd.f32 %v1256_v33, %v3849_v48  ;;  %v1598_v51 = vsel %vm1533_vm14, %v1501_v29, %v1566_v39  ;;  %v1503_v19 = vadd.f32 %v3874_v41, %v1459_v4  ;;  %2653 = vmatprep.subr.bf16.mxu1 %v3811_v9 }
 0x360   :  { %v1460_v59 = vmul.f32 %v3858_v5, %v3970_v23  ;;  %v1321_v21 = vadd.f32 %v1255_v13, %v3475_v60  ;;  %1785 = vmatprep.mubr.f32.mxu1 %v1598_v51  ;;  %vm1534_vm15 = vcmp.gt.f32.partialorder %v1502_v52, 0.0  ;;  %v1567_v1 = vmul.f32 %v3882_v3, %v1502_v52 }
 0x361   :  { %v1461_v7 = vmul.f32 %v3862_v6, %v3975_v61  ;;  %v1322_v26 = vadd.f32 %v1257_v16, %v3479_v2  ;;  %v1260_v34 = vpop.f32.mrb[48].mxu0  ;;  %1786 = vmatmul.mubr.f32.gmra.mrb[40].mxu1 %v1597_v47  ;;  %vm1535_vm1 = vcmp.gt.f32.partialorder %v1503_v19, 0.0  ;;  %v1568_v25 = vmul.f32 %v3882_v3, %v1503_v19 }
 0x362   :  { %v3988_v9 = vmul.f32 0.5, %v1321_v21  ;;  %v1261_v50 = vadd.f32 %v1260_v34, %v3846_v46  ;;  %v1262_v53 = vpop.f32.mrb[49].mxu0  ;;  %v1599_v60 = vsel %vm1534_vm15, %v1502_v52, %v1567_v1  ;;  %v1504_v35 = vadd.f32 %v3867_v15, %v1460_v59  ;;  %2661 = vmatpush3.bf16.msra.mxu1 %v3826_v20 }
 0x363   :  { %v3993_v29 = vmul.f32 0.5, %v1322_v26  ;;  %v1263_v32 = vadd.f32 %v1262_v53, %v3849_v48  ;;  %v1600_v2 = vsel %vm1535_vm1, %v1503_v19, %v1568_v25  ;;  %v1505_v42 = vadd.f32 %v3874_v41, %v1461_v7  ;;  %2654 = vmatprep.subr.bf16.mxu1 %v3829_v28 }
 0x364   :  { %v1462_v24 = vmul.f32 %v3858_v5, %v3988_v9  ;;  %v1323_v4 = vadd.f32 %v1261_v50, %v3489_v12  ;;  %1791 = vmatprep.mubr.f32.mxu1 %v1600_v2  ;;  %vm1536_vm2 = vcmp.gt.f32.partialorder %v1504_v35, 0.0  ;;  %v1569_v10 = vmul.f32 %v3882_v3, %v1504_v35 }
 0x365   :  { %v1463_v20 = vmul.f32 %v3862_v6, %v3993_v29  ;;  %v1324_v38 = vadd.f32 %v1263_v32, %v3493_v17  ;;  %v1266_v39 = vpop.f32.mrb[50].mxu0  ;;  %1792 = vmatmul.mubr.f32.gmra.mrb[42].mxu1 %v1599_v60  ;;  %vm1537_vm3 = vcmp.gt.f32.partialorder %v1505_v42, 0.0  ;;  %v1570_v13 = vmul.f32 %v3882_v3, %v1505_v42 }
 0x366   :  { %v4006_v28 = vmul.f32 0.5, %v1323_v4  ;;  %v1267_v33 = vadd.f32 %v1266_v39, %v3846_v46  ;;  %v1268_v47 = vpop.f32.mrb[51].mxu0  ;;  %v1601_v12 = vsel %vm1536_vm2, %v1504_v35, %v1569_v10  ;;  %v1506_v52 = vadd.f32 %v3867_v15, %v1462_v24  ;;  %2662 = vmatpush3.bf16.msra.mxu1 %v3838_v11 }
 0x367   :  { %v4011_v16 = vmul.f32 0.5, %v1324_v38  ;;  %v1269_v51 = vadd.f32 %v1268_v47, %v3849_v48  ;;  %v1602_v17 = vsel %vm1537_vm3, %v1505_v42, %v1570_v13  ;;  %v1507_v19 = vadd.f32 %v3874_v41, %v1463_v20 }
 0x368   :  { %v1464_v59 = vmul.f32 %v3858_v5, %v4006_v28  ;;  %v1325_v21 = vadd.f32 %v1267_v33, %v3503_v37  ;;  %1797 = vmatprep.mubr.f32.mxu1 %v1602_v17  ;;  %vm1538_vm4 = vcmp.gt.f32.partialorder %v1506_v52, 0.0  ;;  %v1571_v1 = vmul.f32 %v3882_v3, %v1506_v52 }
 0x369   :  { %v1465_v7 = vmul.f32 %v3862_v6, %v4011_v16  ;;  %v1326_v11 = vadd.f32 %v1269_v51, %v3507_v43  ;;  %v1272_v26 = vpop.f32.mrb[52].mxu0  ;;  %1798 = vmatmul.mubr.f32.gmra.mrb[44].mxu1 %v1601_v12  ;;  %vm1539_vm5 = vcmp.gt.f32.partialorder %v1507_v19, 0.0  ;;  %v1572_v34 = vmul.f32 %v3882_v3, %v1507_v19 }
 0x36a   :  { %v4023_v25 = vmul.f32 0.5, %v1325_v21  ;;  %v1273_v50 = vadd.f32 %v1272_v26, %v3846_v46  ;;  %v1274_v53 = vpop.f32.mrb[53].mxu0  ;;  %v1603_v37 = vsel %vm1538_vm4, %v1506_v52, %v1571_v1  ;;  %v1508_v60 = vadd.f32 %v3867_v15, %v1464_v59 }
 0x36b   :  { %v4027_v35 = vmul.f32 0.5, %v1326_v11  ;;  %v1275_v32 = vadd.f32 %v1274_v53, %v3849_v48  ;;  %v1604_v2 = vsel %vm1539_vm5, %v1507_v19, %v1572_v34  ;;  %v1509_v43 = vadd.f32 %v3874_v41, %v1465_v7 }
 0x36c   :  { %v1466_v42 = vmul.f32 %v3858_v5, %v4023_v25  ;;  %v1327_v24 = vadd.f32 %v1273_v50, %v3517_v55  ;;  %1803 = vmatprep.mubr.f32.mxu1 %v1604_v2  ;;  %vm1540_vm6 = vcmp.gt.f32.partialorder %v1508_v60, 0.0  ;;  %v1573_v4 = vmul.f32 %v3882_v3, %v1508_v60 }
 0x36d   :  { %v1467_v10 = vmul.f32 %v3862_v6, %v4027_v35  ;;  %v1328_v20 = vadd.f32 %v1275_v32, %v3521_v58  ;;  %v1278_v38 = vpop.f32.mrb[54].mxu0  ;;  %1804 = vmatmul.mubr.f32.gmra.mrb[46].mxu1 %v1603_v37  ;;  %vm1541_vm7 = vcmp.gt.f32.partialorder %v1509_v43, 0.0  ;;  %v1574_v39 = vmul.f32 %v3882_v3, %v1509_v43 }
 0x36e   :  { %v4039_v13 = vmul.f32 0.5, %v1327_v24  ;;  %v1279_v33 = vadd.f32 %v1278_v38, %v3846_v46  ;;  %v1280_v47 = vpop.f32.mrb[55].mxu0  ;;  %v1605_v55 = vsel %vm1540_vm6, %v1508_v60, %v1573_v4  ;;  %v1510_v12 = vadd.f32 %v3867_v15, %v1466_v42 }
 0x36f   :  { %v4043_v52 = vmul.f32 0.5, %v1328_v20  ;;  %v1281_v51 = vadd.f32 %v1280_v47, %v3849_v48  ;;  %v1606_v17 = vsel %vm1541_vm7, %v1509_v43, %v1574_v39  ;;  %v1511_v58 = vadd.f32 %v3874_v41, %v1467_v10 }
 0x370   :  { %v1468_v19 = vmul.f32 %v3858_v5, %v4039_v13  ;;  %v1329_v59 = vadd.f32 %v1279_v33, %v3531_v8  ;;  %1809 = vmatprep.mubr.f32.mxu1 %v1606_v17  ;;  %vm1542_vm8 = vcmp.gt.f32.partialorder %v1510_v12, 0.0  ;;  %v1575_v21 = vmul.f32 %v3882_v3, %v1510_v12 }
 0x371   :  { %v1469_v1 = vmul.f32 %v3862_v6, %v4043_v52  ;;  %v1330_v7 = vadd.f32 %v1281_v51, %v3535_v14  ;;  %v1284_v11 = vpop.f32.mrb[56].mxu0  ;;  %1810 = vmatmul.mubr.f32.gmra.mrb[48].mxu1 %v1605_v55  ;;  %vm1543_vm9 = vcmp.gt.f32.partialorder %v1511_v58, 0.0  ;;  %v1576_v26 = vmul.f32 %v3882_v3, %v1511_v58 }
 0x372   :  { %v4055_v34 = vmul.f32 0.5, %v1329_v59  ;;  %v1285_v50 = vadd.f32 %v1284_v11, %v3846_v46  ;;  %v1286_v53 = vpop.f32.mrb[57].mxu0  ;;  %v1607_v8 = vsel %vm1542_vm8, %v1510_v12, %v1575_v21  ;;  %v1512_v37 = vadd.f32 %v3867_v15, %v1468_v19 }
 0x373   :  { %v4059_v60 = vmul.f32 0.5, %v1330_v7  ;;  %v1287_v32 = vadd.f32 %v1286_v53, %v3849_v48  ;;  %v1608_v2 = vsel %vm1543_vm9, %v1511_v58, %v1576_v26  ;;  %v1513_v14 = vadd.f32 %v3874_v41, %v1469_v1 }
 0x374   :  { %v1470_v43 = vmul.f32 %v3858_v5, %v4055_v34  ;;  %v1331_v42 = vadd.f32 %v1285_v50, %v3545_v36  ;;  %1815 = vmatprep.mubr.f32.mxu1 %v1608_v2  ;;  %vm1544_vm10 = vcmp.gt.f32.partialorder %v1512_v37, 0.0  ;;  %v1577_v24 = vmul.f32 %v3882_v3, %v1512_v37 }
 0x375   :  { %v1471_v4 = vmul.f32 %v3862_v6, %v4059_v60  ;;  %v1332_v10 = vadd.f32 %v1287_v32, %v3549_v44  ;;  %v1290_v20 = vpop.f32.mrb[58].mxu0  ;;  %1816 = vmatmul.mubr.f32.gmra.mrb[50].mxu1 %v1607_v8  ;;  %vm1545_vm11 = vcmp.gt.f32.partialorder %v1513_v14, 0.0  ;;  %v1578_v38 = vmul.f32 %v3882_v3, %v1513_v14 }
 0x376   :  { %v4071_v39 = vmul.f32 0.5, %v1331_v42  ;;  %v1291_v33 = vadd.f32 %v1290_v20, %v3846_v46  ;;  %v1292_v47 = vpop.f32.mrb[59].mxu0  ;;  %v1609_v36 = vsel %vm1544_vm10, %v1512_v37, %v1577_v24  ;;  %v1514_v55 = vadd.f32 %v3867_v15, %v1470_v43 }
 0x377   :  { %v4075_v12 = vmul.f32 0.5, %v1332_v10  ;;  %v1293_v51 = vadd.f32 %v1292_v47, %v3849_v48  ;;  %v1610_v17 = vsel %vm1545_vm11, %v1513_v14, %v1578_v38  ;;  %v1515_v44 = vadd.f32 %v3874_v41, %v1471_v4 }
 0x378   :  { %v1472_v58 = vmul.f32 %v3858_v5, %v4071_v39  ;;  %v1333_v19 = vadd.f32 %v1291_v33, %v3559_v57  ;;  %1821 = vmatprep.mubr.f32.mxu1 %v1610_v17  ;;  %vm1546_vm12 = vcmp.gt.f32.partialorder %v1514_v55, 0.0  ;;  %v1579_v59 = vmul.f32 %v3882_v3, %v1514_v55 }
 0x379   :  { %v1473_v21 = vmul.f32 %v3862_v6, %v4075_v12  ;;  %v1334_v1 = vadd.f32 %v1293_v51, %v3563_v63  ;;  %v1296_v7 = vpop.f32.mrb[60].mxu0  ;;  %1822 = vmatmul.mubr.f32.gmra.mrb[52].mxu1 %v1609_v36  ;;  %vm1547_vm13 = vcmp.gt.f32.partialorder %v1515_v44, 0.0  ;;  %v1580_v11 = vmul.f32 %v3882_v3, %v1515_v44 }
 0x37a   :  { %v4087_v26 = vmul.f32 0.5, %v1333_v19  ;;  %v1297_v50 = vadd.f32 %v1296_v7, %v3846_v46  ;;  %v1298_v53 = vpop.f32.mrb[61].mxu0  ;;  %v1611_v57 = vsel %vm1546_vm12, %v1514_v55, %v1579_v59  ;;  %v1516_v8 = vadd.f32 %v3867_v15, %v1472_v58 }
 0x37b   :  { %v4091_v37 = vmul.f32 0.5, %v1334_v1  ;;  %v1299_v32 = vadd.f32 %v1298_v53, %v3849_v48  ;;  %v1612_v2 = vsel %vm1547_vm13, %v1515_v44, %v1580_v11  ;;  %v1517_v63 = vadd.f32 %v3874_v41, %v1473_v21 }
 0x37c   :  { %v1474_v14 = vmul.f32 %v3858_v5, %v4087_v26  ;;  %v1335_v43 = vadd.f32 %v1297_v50, %v3573_v18  ;;  %1827 = vmatprep.mubr.f32.mxu1 %v1612_v2  ;;  %vm1548_vm14 = vcmp.gt.f32.partialorder %v1516_v8, 0.0  ;;  %v1581_v42 = vmul.f32 %v3882_v3, %v1516_v8 }
 0x37d   :  { %v1475_v24 = vmul.f32 %v3862_v6, %v4091_v37  ;;  %v1336_v4 = vadd.f32 %v1299_v32, %v3577_v22  ;;  %v1302_v10 = vpop.f32.mrb[62].mxu0  ;;  %1828 = vmatmul.mubr.f32.gmra.mrb[54].mxu1 %v1611_v57  ;;  %vm1549_vm15 = vcmp.gt.f32.partialorder %v1517_v63, 0.0  ;;  %v1582_v20 = vmul.f32 %v3882_v3, %v1517_v63 }
 0x37e   :  { %v4103_v38 = vmul.f32 0.5, %v1335_v43  ;;  %v1303_v33 = vadd.f32 %v1302_v10, %v3846_v46  ;;  %v1304_v47 = vpop.f32.mrb[63].mxu0  ;;  %v1613_v18 = vsel %vm1548_vm14, %v1516_v8, %v1581_v42  ;;  %v1518_v36 = vadd.f32 %v3867_v15, %v1474_v14 }
 0x37f   :  { %v4107_v55 = vmul.f32 0.5, %v1336_v4  ;;  %v1305_v51 = vadd.f32 %v1304_v47, %v3849_v48  ;;  %v1614_v17 = vsel %vm1549_vm15, %v1517_v63, %v1582_v20  ;;  %v1519_v22 = vadd.f32 %v3874_v41, %v1475_v24  ;;  %v2120_v4 = vld [vmem:[%s4450_s17 + $0x60] sm:$0xff]  ;;  %v2138_v20 = vld [vmem:[%s4450_s17 + $0xf0] sm:$0xff] }
 0x380   :  { %v1476_v44 = vmul.f32 %v3858_v5, %v4103_v38  ;;  %v1337_v58 = vadd.f32 %v1303_v33, %v3587_v49  ;;  %1833 = vmatprep.mubr.f32.mxu1 %v1614_v17  ;;  %vm1550_vm1 = vcmp.gt.f32.partialorder %v1518_v36, 0.0  ;;  %v1583_v46 = vmul.f32 %v3882_v3, %v1518_v36  ;;  %v2139_v33 = vld [vmem:[%s4450_s17 + $0xf8] sm:$0xff]  ;;  %v1685_v17 = vld [vmem:[%s4447_s14] sm:$0x3] }
 0x381   :  { %v1477_v19 = vmul.f32 %v3862_v6, %v4107_v55  ;;  %v1338_v59 = vadd.f32 %v1305_v51, %v3591_v0  ;;  %1834 = vmatmul.mubr.f32.gmra.mrb[56].mxu1 %v1613_v18  ;;  %vm1551_vm2 = vcmp.gt.f32.partialorder %v1519_v22, 0.0  ;;  %v1584_v48 = vmul.f32 %v3882_v3, %v1519_v22  ;;  %v2122_v18 = vld [vmem:[%s4450_s17 + $0x70] sm:$0xff] }
 0x382   :  { %v4119_v21 = vmul.f32 0.5, %v1337_v58  ;;  %v1520_v1 = vadd.f32 %v3867_v15, %v1476_v44  ;;  %v1615_v53 = vsel %vm1550_vm1, %v1518_v36, %v1583_v46  ;;  %v2645_v47 = vpack.c.bf16 %v2139_v33, %v2138_v20  ;;  %v2123_v36 = vld [vmem:[%s4450_s17 + $0x78] sm:$0xff] }
 0x383   :  { %v4122_v7 = vmul.f32 0.5, %v1338_v59  ;;  %v1616_v49 = vsel %vm1551_vm2, %v1519_v22, %v1584_v48  ;;  %v1521_v11 = vadd.f32 %v3874_v41, %v1477_v19  ;;  %v2647_v51 = vpack.c.bf16 %v2123_v36, %v2122_v18  ;;  %v4480_v22 = vld [vmem:[#allocation24_spill] sm:$0xff]  ;;  %v4481_v58 = vld [vmem:[#allocation25_spill] sm:$0xff]  ;;  %v1923_v59 = vld [vmem:[%s4448_s15] sm:$0x3] }
 0x384   :  { %v1478_v50 = vmul.f32 %v3858_v5, %v4119_v21  ;;  %1839 = vmatprep.mubr.f32.mxu1 %v1616_v49  ;;  %v1585_v0 = vmul.f32 %v3882_v3, %v1520_v1  ;;  %vm1552_vm4 = vcmp.gt.f32.partialorder %v1520_v1, 0.0  ;;  %v4163_v44 = vrot.slane %v1685_v17, %v4480_v22  ;;  %v1967_v49 = vld [vmem:[%s4449_s16] sm:$0x3] }
 0x385   :  { %v1479_v57 = vmul.f32 %v3862_v6, %v4122_v7  ;;  %1840 = vmatmul.mubr.f32.gmra.mrb[58].mxu1 %v1615_v53  ;;  %vm1553_vm3 = vcmp.gt.f32.partialorder %v1521_v11, 0.0  ;;  %v1586_v8 = vmul.f32 %v3882_v3, %v1521_v11  ;;  %v4166_v46 = vrot.slane %v1685_v17, %v4481_v58 }
 0x386   :  { %v1522_v32 = vadd.f32 %v3867_v15, %v1478_v50  ;;  %v1617_v14 = vsel %vm1552_vm4, %v1520_v1, %v1585_v0  ;;  %v2136_v15 = vld [vmem:[%s4450_s17 + $0xe0] sm:$0xff]  ;;  %v4178_v0 = vrot.slane %v1923_v59, %v4480_v22 }
 0x387   :  { %v1618_v2 = vsel %vm1553_vm3, %v1521_v11, %v1586_v8  ;;  %v1523_v63 = vadd.f32 %v3874_v41, %v1479_v57  ;;  %v2137_v41 = vld [vmem:[%s4450_s17 + $0xe8] sm:$0xff]  ;;  %v4482_v50 = vld [vmem:[#allocation26_spill] sm:$0xff] }
 0x388   :  { %1845 = vmatprep.mubr.f32.mxu1 %v1618_v2  ;;  %v1587_v5 = vmul.f32 %v3882_v3, %v1522_v32  ;;  %vm1554_vm6 = vcmp.gt.f32.partialorder %v1522_v32, 0.0  ;;  %v2641_v24 = vpack.c.bf16 %v2137_v41, %v2136_v15  ;;  %v4483_v57 = vld [vmem:[#allocation27_spill] sm:$0xff]  ;;  %v4190_v15 = vrot.slane %v1967_v49, %v4481_v58 }
 0x389   :  { %1846 = vmatmul.mubr.f32.gmra.mrb[60].mxu1 %v1617_v14  ;;  %vm1555_vm5 = vcmp.gt.f32.partialorder %v1523_v63, 0.0  ;;  %v1588_v43 = vmul.f32 %v3882_v3, %v1523_v63  ;;  %v2121_v3 = vld [vmem:[%s4450_s17 + $0x68] sm:$0xff]  ;;  %s2335_s17 = sld [smem:[#allocation4 + $0x3]]  ;;  %v4185_v14 = vrot.slane %v1967_v49, %v4480_v22 }
 0x38a   :  { %v1619_v42 = vsel %vm1554_vm6, %v1522_v32, %v1587_v5  ;;  %v2643_v10 = vpack.c.bf16 %v2121_v3, %v2120_v4  ;;  %2642 = vmatprep.subr.bf16.mxu0 %v2641_v24  ;;  %2655 = vmatprep.subr.bf16.mxu1 %v2641_v24  ;;  %v4182_v32 = vrot.slane %v1923_v59, %v4481_v58  ;;  %v4484_v24 = vld [vmem:[#allocation28_spill] sm:$0xff] }
 0x38b   :  { %v1620_v6 = vsel %vm1555_vm5, %v1523_v63, %v1588_v43 }
 0x38c   :  { %1851 = vmatprep.mubr.f32.mxu1 %v1620_v6  ;;  %2644 = vmatpush3.bf16.msra.mxu0 %v2643_v10 }
 0x38d   :  { %1852 = vmatmul.mubr.f32.gmra.mrb[62].mxu1 %v1619_v42  ;;  %2646 = vmatprep.subr.bf16.mxu0 %v2645_v47 }
 0x38e   :  { %2663 = vmatpush3.bf16.msra.mxu1 %v2643_v10  ;;  %v4485_v10 = vld [vmem:[#allocation29_spill] sm:$0xff] }
 0x38f   :  { %2656 = vmatprep.subr.bf16.mxu1 %v2645_v47  ;;  %v4196_v47 = vstv %s2335_s17 }
 0x390   :  { %2648 = vmatpush3.bf16.msra.mxu0 %v2647_v51 }
 0x392   :  { %2664 = vmatpush3.bf16.msra.mxu1 %v2647_v51 }
 0x424   :  { %v1763_v19 = vpop.f32.mrb[32].mxu1 }
 0x425   :  { %v1764_v48 = vadd.f32 %v1763_v19, %v4163_v44  ;;  %v1765_v1 = vpop.f32.mrb[33].mxu1 }
 0x426   :  { %v1766_v11 = vadd.f32 %v1765_v1, %v4166_v46 }
 0x427   :  { %v1858_v53 = vadd.f32 %v1764_v48, %v4482_v50 }
 0x428   :  { %v1859_v8 = vadd.f32 %v1766_v11, %v4483_v57  ;;  %v1769_v2 = vpop.f32.mrb[34].mxu1 }
 0x429   :  { %v1890_v63 = vmul.f32 0.5, %v1858_v53  ;;  %v1770_v5 = vadd.f32 %v1769_v2, %v4163_v44  ;;  %v1771_v43 = vpop.f32.mrb[35].mxu1 }
 0x42a   :  { %v1891_v6 = vmul.f32 0.5, %v1859_v8  ;;  %v1772_v42 = vadd.f32 %v1771_v43, %v4166_v46 }
 0x42b   :  { %v1935_v41 = vmul.f32 %v4178_v0, %v1890_v63  ;;  %v1860_v4 = vadd.f32 %v1770_v5, %v4484_v24 }
 0x42c   :  { %v1936_v3 = vmul.f32 %v4182_v32, %v1891_v6  ;;  %v1861_v20 = vadd.f32 %v1772_v42, %v4485_v10  ;;  %v1775_v33 = vpop.f32.mrb[36].mxu1 }
 0x42d   :  { %v1979_v18 = vadd.f32 %v4185_v14, %v1935_v41  ;;  %v1892_v36 = vmul.f32 0.5, %v1860_v4  ;;  %v1776_v51 = vadd.f32 %v1775_v33, %v4163_v44  ;;  %v1777_v17 = vpop.f32.mrb[37].mxu1 }
 0x42e   :  { %v1893_v22 = vmul.f32 0.5, %v1861_v20  ;;  %v1778_v58 = vadd.f32 %v1777_v17, %v4166_v46  ;;  %v1980_v19 = vadd.f32 %v4190_v15, %v1936_v3 }
 0x42f   :  { %v1937_v59 = vmul.f32 %v4178_v0, %v1892_v36  ;;  %v1862_v48 = vadd.f32 %v1776_v51, %v3900_v27  ;;  %vm2011_vm7 = vcmp.gt.f32.partialorder %v1979_v18, 0.0  ;;  %v2044_v1 = vmul.f32 %v4196_v47, %v1979_v18 }
 0x430   :  { %v1938_v49 = vmul.f32 %v4182_v32, %v1893_v22  ;;  %v1863_v11 = vadd.f32 %v1778_v58, %v3904_v62  ;;  %v1781_v50 = vpop.f32.mrb[38].mxu1  ;;  %vm2012_vm8 = vcmp.gt.f32.partialorder %v1980_v19, 0.0  ;;  %v2045_v53 = vmul.f32 %v4196_v47, %v1980_v19 }
 0x431   :  { %v1894_v57 = vmul.f32 0.5, %v1862_v48  ;;  %v1782_v8 = vadd.f32 %v1781_v50, %v4163_v44  ;;  %v1783_v2 = vpop.f32.mrb[39].mxu1  ;;  %v2076_v63 = vsel %vm2011_vm7, %v1979_v18, %v2044_v1  ;;  %v1981_v5 = vadd.f32 %v4185_v14, %v1937_v59 }
 0x432   :  { %v1895_v43 = vmul.f32 0.5, %v1863_v11  ;;  %v1784_v27 = vadd.f32 %v1783_v2, %v4166_v46  ;;  %v2077_v6 = vsel %vm2012_vm8, %v1980_v19, %v2045_v53  ;;  %v1982_v42 = vadd.f32 %v4190_v15, %v1938_v49 }
 0x433   :  { %v1939_v41 = vmul.f32 %v4178_v0, %v1894_v57  ;;  %v1864_v62 = vadd.f32 %v1782_v8, %v3916_v40  ;;  %2211 = vmatprep.mubr.f32.mxu0 %v2077_v6  ;;  %vm2013_vm9 = vcmp.gt.f32.partialorder %v1981_v5, 0.0  ;;  %v2046_v24 = vmul.f32 %v4196_v47, %v1981_v5 }
 0x434   :  { %v1940_v4 = vmul.f32 %v4182_v32, %v1895_v43  ;;  %v1865_v3 = vadd.f32 %v1784_v27, %v3921_v56  ;;  %v1787_v10 = vpop.f32.mrb[40].mxu1  ;;  %2212 = vmatmul.mubr.f32.vlgmr.msra.gmra.mrb[64].mxu0 %v2076_v63  ;;  %vm2014_vm10 = vcmp.gt.f32.partialorder %v1982_v42, 0.0  ;;  %v2047_v20 = vmul.f32 %v4196_v47, %v1982_v42 }
 0x435   :  { %v1896_v33 = vmul.f32 0.5, %v1864_v62  ;;  %v1788_v18 = vadd.f32 %v1787_v10, %v4163_v44  ;;  %v1789_v36 = vpop.f32.mrb[41].mxu1  ;;  %v2078_v51 = vsel %vm2013_vm9, %v1981_v5, %v2046_v24  ;;  %v1983_v40 = vadd.f32 %v4185_v14, %v1939_v41 }
 0x436   :  { %v1897_v17 = vmul.f32 0.5, %v1865_v3  ;;  %v1790_v22 = vadd.f32 %v1789_v36, %v4166_v46  ;;  %v2079_v58 = vsel %vm2014_vm10, %v1982_v42, %v2047_v20  ;;  %v1984_v19 = vadd.f32 %v4190_v15, %v1940_v4 }
 0x437   :  { %v1941_v56 = vmul.f32 %v4178_v0, %v1896_v33  ;;  %v1866_v59 = vadd.f32 %v1788_v18, %v3934_v45  ;;  %2216 = vmatprep.mubr.f32.mxu0 %v2079_v58  ;;  %vm2015_vm11 = vcmp.gt.f32.partialorder %v1983_v40, 0.0  ;;  %v2048_v48 = vmul.f32 %v4196_v47, %v1983_v40 }
 0x438   :  { %v1942_v1 = vmul.f32 %v4182_v32, %v1897_v17  ;;  %v1867_v49 = vadd.f32 %v1790_v22, %v3939_v30  ;;  %v1793_v11 = vpop.f32.mrb[42].mxu1  ;;  %2217 = vmatmul.mubr.f32.gmra.mrb[66].mxu0 %v2078_v51  ;;  %vm2016_vm12 = vcmp.gt.f32.partialorder %v1984_v19, 0.0  ;;  %v2049_v50 = vmul.f32 %v4196_v47, %v1984_v19 }
 0x439   :  { %v1898_v53 = vmul.f32 0.5, %v1866_v59  ;;  %v1794_v57 = vadd.f32 %v1793_v11, %v4163_v44  ;;  %v1795_v8 = vpop.f32.mrb[43].mxu1  ;;  %v2080_v2 = vsel %vm2015_vm11, %v1983_v40, %v2048_v48  ;;  %v1985_v45 = vadd.f32 %v4185_v14, %v1941_v56 }
 0x43a   :  { %v1899_v63 = vmul.f32 0.5, %v1867_v49  ;;  %v1796_v5 = vadd.f32 %v1795_v8, %v4166_v46  ;;  %v2081_v43 = vsel %vm2016_vm12, %v1984_v19, %v2049_v50  ;;  %v1986_v27 = vadd.f32 %v4190_v15, %v1942_v1 }
 0x43b   :  { %v1943_v30 = vmul.f32 %v4178_v0, %v1898_v53  ;;  %v1868_v6 = vadd.f32 %v1794_v57, %v3952_v54  ;;  %2221 = vmatprep.mubr.f32.mxu0 %v2081_v43  ;;  %vm2017_vm13 = vcmp.gt.f32.partialorder %v1985_v45, 0.0  ;;  %v2050_v42 = vmul.f32 %v4196_v47, %v1985_v45 }
 0x43c   :  { %v1944_v41 = vmul.f32 %v4182_v32, %v1899_v63  ;;  %v1869_v62 = vadd.f32 %v1796_v5, %v3957_v31  ;;  %v1799_v24 = vpop.f32.mrb[44].mxu1  ;;  %2222 = vmatmul.mubr.f32.gmra.mrb[68].mxu0 %v2080_v2  ;;  %vm2018_vm14 = vcmp.gt.f32.partialorder %v1986_v27, 0.0  ;;  %v2051_v4 = vmul.f32 %v4196_v47, %v1986_v27 }
 0x43d   :  { %v1900_v3 = vmul.f32 0.5, %v1868_v6  ;;  %v1800_v10 = vadd.f32 %v1799_v24, %v4163_v44  ;;  %v1801_v20 = vpop.f32.mrb[45].mxu1  ;;  %v2082_v33 = vsel %vm2017_vm13, %v1985_v45, %v2050_v42  ;;  %v1987_v54 = vadd.f32 %v4185_v14, %v1943_v30 }
 0x43e   :  { %v1901_v18 = vmul.f32 0.5, %v1869_v62  ;;  %v1802_v36 = vadd.f32 %v1801_v20, %v4166_v46  ;;  %v2083_v51 = vsel %vm2018_vm14, %v1986_v27, %v2051_v4  ;;  %v1988_v40 = vadd.f32 %v4190_v15, %v1944_v41 }
 0x43f   :  { %v1945_v31 = vmul.f32 %v4178_v0, %v1900_v3  ;;  %v1870_v17 = vadd.f32 %v1800_v10, %v3970_v23  ;;  %2226 = vmatprep.mubr.f32.mxu0 %v2083_v51  ;;  %vm2019_vm15 = vcmp.gt.f32.partialorder %v1987_v54, 0.0  ;;  %v2052_v22 = vmul.f32 %v4196_v47, %v1987_v54 }
 0x440   :  { %v1946_v58 = vmul.f32 %v4182_v32, %v1901_v18  ;;  %v1871_v19 = vadd.f32 %v1802_v36, %v3975_v61  ;;  %v1805_v56 = vpop.f32.mrb[46].mxu1  ;;  %2227 = vmatmul.mubr.f32.gmra.mrb[70].mxu0 %v2082_v33  ;;  %vm2020_vm1 = vcmp.gt.f32.partialorder %v1988_v40, 0.0  ;;  %v2053_v59 = vmul.f32 %v4196_v47, %v1988_v40 }
 0x441   :  { %v1902_v48 = vmul.f32 0.5, %v1870_v17  ;;  %v1806_v1 = vadd.f32 %v1805_v56, %v4163_v44  ;;  %v1807_v49 = vpop.f32.mrb[47].mxu1  ;;  %v2084_v11 = vsel %vm2019_vm15, %v1987_v54, %v2052_v22  ;;  %v1989_v23 = vadd.f32 %v4185_v14, %v1945_v31 }
 0x442   :  { %v1903_v50 = vmul.f32 0.5, %v1871_v19  ;;  %v1808_v53 = vadd.f32 %v1807_v49, %v4166_v46  ;;  %v2085_v57 = vsel %vm2020_vm1, %v1988_v40, %v2053_v59  ;;  %v1990_v8 = vadd.f32 %v4190_v15, %v1946_v58 }
 0x443   :  { %v1947_v61 = vmul.f32 %v4178_v0, %v1902_v48  ;;  %v1872_v2 = vadd.f32 %v1806_v1, %v3988_v9  ;;  %2231 = vmatprep.mubr.f32.mxu0 %v2085_v57  ;;  %vm2021_vm2 = vcmp.gt.f32.partialorder %v1989_v23, 0.0  ;;  %v2054_v45 = vmul.f32 %v4196_v47, %v1989_v23 }
 0x444   :  { %v1948_v63 = vmul.f32 %v4182_v32, %v1903_v50  ;;  %v1873_v5 = vadd.f32 %v1808_v53, %v3993_v29  ;;  %v1811_v43 = vpop.f32.mrb[48].mxu1  ;;  %2232 = vmatmul.mubr.f32.gmra.mrb[72].mxu0 %v2084_v11  ;;  %vm2022_vm3 = vcmp.gt.f32.partialorder %v1990_v8, 0.0  ;;  %v2055_v27 = vmul.f32 %v4196_v47, %v1990_v8 }
 0x445   :  { %v1904_v30 = vmul.f32 0.5, %v1872_v2  ;;  %v1812_v6 = vadd.f32 %v1811_v43, %v4163_v44  ;;  %v1813_v42 = vpop.f32.mrb[49].mxu1  ;;  %v2086_v41 = vsel %vm2021_vm2, %v1989_v23, %v2054_v45  ;;  %v1991_v9 = vadd.f32 %v4185_v14, %v1947_v61 }
 0x446   :  { %v1905_v62 = vmul.f32 0.5, %v1873_v5  ;;  %v1814_v24 = vadd.f32 %v1813_v42, %v4166_v46  ;;  %v2087_v4 = vsel %vm2022_vm3, %v1990_v8, %v2055_v27  ;;  %v1992_v3 = vadd.f32 %v4190_v15, %v1948_v63 }
 0x447   :  { %v1949_v29 = vmul.f32 %v4178_v0, %v1904_v30  ;;  %v1874_v10 = vadd.f32 %v1812_v6, %v4006_v28  ;;  %2236 = vmatprep.mubr.f32.mxu0 %v2087_v4  ;;  %vm2023_vm4 = vcmp.gt.f32.partialorder %v1991_v9, 0.0  ;;  %v2056_v20 = vmul.f32 %v4196_v47, %v1991_v9 }
 0x448   :  { %v1950_v33 = vmul.f32 %v4182_v32, %v1905_v62  ;;  %v1875_v54 = vadd.f32 %v1814_v24, %v4011_v16  ;;  %v1817_v18 = vpop.f32.mrb[50].mxu1  ;;  %2237 = vmatmul.mubr.f32.gmra.mrb[74].mxu0 %v2086_v41  ;;  %vm2024_vm5 = vcmp.gt.f32.partialorder %v1992_v3, 0.0  ;;  %v2057_v36 = vmul.f32 %v4196_v47, %v1992_v3 }
 0x449   :  { %v1906_v51 = vmul.f32 0.5, %v1874_v10  ;;  %v1818_v40 = vadd.f32 %v1817_v18, %v4163_v44  ;;  %v1819_v31 = vpop.f32.mrb[51].mxu1  ;;  %v2088_v17 = vsel %vm2023_vm4, %v1991_v9, %v2056_v20  ;;  %v1993_v28 = vadd.f32 %v4185_v14, %v1949_v29 }
 0x44a   :  { %v1907_v22 = vmul.f32 0.5, %v1875_v54  ;;  %v1820_v58 = vadd.f32 %v1819_v31, %v4166_v46  ;;  %v2089_v19 = vsel %vm2024_vm5, %v1992_v3, %v2057_v36  ;;  %v1994_v56 = vadd.f32 %v4190_v15, %v1950_v33 }
 0x44b   :  { %v1951_v16 = vmul.f32 %v4178_v0, %v1906_v51  ;;  %v1876_v59 = vadd.f32 %v1818_v40, %v4023_v25  ;;  %2241 = vmatprep.mubr.f32.mxu0 %v2089_v19  ;;  %vm2025_vm6 = vcmp.gt.f32.partialorder %v1993_v28, 0.0  ;;  %v2058_v48 = vmul.f32 %v4196_v47, %v1993_v28 }
 0x44c   :  { %v1952_v1 = vmul.f32 %v4182_v32, %v1907_v22  ;;  %v1877_v49 = vadd.f32 %v1820_v58, %v4027_v35  ;;  %v1823_v11 = vpop.f32.mrb[52].mxu1  ;;  %2242 = vmatmul.mubr.f32.gmra.mrb[76].mxu0 %v2088_v17  ;;  %vm2026_vm7 = vcmp.gt.f32.partialorder %v1994_v56, 0.0  ;;  %v2059_v23 = vmul.f32 %v4196_v47, %v1994_v56 }
 0x44d   :  { %v1908_v50 = vmul.f32 0.5, %v1876_v59  ;;  %v1824_v53 = vadd.f32 %v1823_v11, %v4163_v44  ;;  %v1825_v57 = vpop.f32.mrb[53].mxu1  ;;  %v2090_v8 = vsel %vm2025_vm6, %v1993_v28, %v2058_v48  ;;  %v1995_v25 = vadd.f32 %v4185_v14, %v1951_v16 }
 0x44e   :  { %v1909_v61 = vmul.f32 0.5, %v1877_v49  ;;  %v1826_v2 = vadd.f32 %v1825_v57, %v4166_v46  ;;  %v2091_v45 = vsel %vm2026_vm7, %v1994_v56, %v2059_v23  ;;  %v1996_v63 = vadd.f32 %v4190_v15, %v1952_v1 }
 0x44f   :  { %v1953_v35 = vmul.f32 %v4178_v0, %v1908_v50  ;;  %v1878_v5 = vadd.f32 %v1824_v53, %v4039_v13  ;;  %2246 = vmatprep.mubr.f32.mxu0 %v2091_v45  ;;  %vm2027_vm8 = vcmp.gt.f32.partialorder %v1995_v25, 0.0  ;;  %v2060_v43 = vmul.f32 %v4196_v47, %v1995_v25 }
 0x450   :  { %v1954_v27 = vmul.f32 %v4182_v32, %v1909_v61  ;;  %v1879_v30 = vadd.f32 %v1826_v2, %v4043_v52  ;;  %v1829_v6 = vpop.f32.mrb[54].mxu1  ;;  %2247 = vmatmul.mubr.f32.gmra.mrb[78].mxu0 %v2090_v8  ;;  %vm2028_vm9 = vcmp.gt.f32.partialorder %v1996_v63, 0.0  ;;  %v2061_v42 = vmul.f32 %v4196_v47, %v1996_v63 }
 0x451   :  { %v1910_v41 = vmul.f32 0.5, %v1878_v5  ;;  %v1830_v9 = vadd.f32 %v1829_v6, %v4163_v44  ;;  %v1831_v62 = vpop.f32.mrb[55].mxu1  ;;  %v2092_v24 = vsel %vm2027_vm8, %v1995_v25, %v2060_v43  ;;  %v1997_v13 = vadd.f32 %v4185_v14, %v1953_v35 }
 0x452   :  { %v1911_v4 = vmul.f32 0.5, %v1879_v30  ;;  %v1832_v3 = vadd.f32 %v1831_v62, %v4166_v46  ;;  %v2093_v29 = vsel %vm2028_vm9, %v1996_v63, %v2061_v42  ;;  %v1998_v10 = vadd.f32 %v4190_v15, %v1954_v27 }
 0x453   :  { %v1955_v52 = vmul.f32 %v4178_v0, %v1910_v41  ;;  %v1880_v20 = vadd.f32 %v1830_v9, %v4055_v34  ;;  %2251 = vmatprep.mubr.f32.mxu0 %v2093_v29  ;;  %vm2029_vm10 = vcmp.gt.f32.partialorder %v1997_v13, 0.0  ;;  %v2062_v33 = vmul.f32 %v4196_v47, %v1997_v13 }
 0x454   :  { %v1956_v54 = vmul.f32 %v4182_v32, %v1911_v4  ;;  %v1881_v18 = vadd.f32 %v1832_v3, %v4059_v60  ;;  %v1835_v36 = vpop.f32.mrb[56].mxu1  ;;  %2252 = vmatmul.mubr.f32.gmra.mrb[80].mxu0 %v2092_v24  ;;  %vm2030_vm11 = vcmp.gt.f32.partialorder %v1998_v10, 0.0  ;;  %v2063_v51 = vmul.f32 %v4196_v47, %v1998_v10 }
 0x455   :  { %v1912_v40 = vmul.f32 0.5, %v1880_v20  ;;  %v1836_v31 = vadd.f32 %v1835_v36, %v4163_v44  ;;  %v1837_v17 = vpop.f32.mrb[57].mxu1  ;;  %v2094_v28 = vsel %vm2029_vm10, %v1997_v13, %v2062_v33  ;;  %v1999_v34 = vadd.f32 %v4185_v14, %v1955_v52 }
 0x456   :  { %v1913_v22 = vmul.f32 0.5, %v1881_v18  ;;  %v1838_v58 = vadd.f32 %v1837_v17, %v4166_v46  ;;  %v2095_v19 = vsel %vm2030_vm11, %v1998_v10, %v2063_v51  ;;  %v2000_v56 = vadd.f32 %v4190_v15, %v1956_v54 }
 0x457   :  { %v1957_v60 = vmul.f32 %v4178_v0, %v1912_v40  ;;  %v1882_v16 = vadd.f32 %v1836_v31, %v4071_v39  ;;  %2256 = vmatprep.mubr.f32.mxu0 %v2095_v19  ;;  %vm2031_vm12 = vcmp.gt.f32.partialorder %v1999_v34, 0.0  ;;  %v2064_v59 = vmul.f32 %v4196_v47, %v1999_v34 }
 0x458   :  { %v1958_v48 = vmul.f32 %v4182_v32, %v1913_v22  ;;  %v1883_v1 = vadd.f32 %v1838_v58, %v4075_v12  ;;  %v1841_v49 = vpop.f32.mrb[58].mxu1  ;;  %2257 = vmatmul.mubr.f32.gmra.mrb[82].mxu0 %v2094_v28  ;;  %vm2032_vm13 = vcmp.gt.f32.partialorder %v2000_v56, 0.0  ;;  %v2065_v11 = vmul.f32 %v4196_v47, %v2000_v56 }
 0x459   :  { %v1914_v23 = vmul.f32 0.5, %v1882_v16  ;;  %v1842_v50 = vadd.f32 %v1841_v49, %v4163_v44  ;;  %v1843_v53 = vpop.f32.mrb[59].mxu1  ;;  %v2096_v57 = vsel %vm2031_vm12, %v1999_v34, %v2064_v59  ;;  %v2001_v39 = vadd.f32 %v4185_v14, %v1957_v60 }
 0x45a   :  { %v1915_v8 = vmul.f32 0.5, %v1883_v1  ;;  %v1844_v25 = vadd.f32 %v1843_v53, %v4166_v46  ;;  %v2097_v61 = vsel %vm2032_vm13, %v2000_v56, %v2065_v11  ;;  %v2002_v2 = vadd.f32 %v4190_v15, %v1958_v48 }
 0x45b   :  { %v1959_v12 = vmul.f32 %v4178_v0, %v1914_v23  ;;  %v1884_v45 = vadd.f32 %v1842_v50, %v4087_v26  ;;  %2261 = vmatprep.mubr.f32.mxu0 %v2097_v61  ;;  %vm2033_vm14 = vcmp.gt.f32.partialorder %v2001_v39, 0.0  ;;  %v2066_v63 = vmul.f32 %v4196_v47, %v2001_v39 }
 0x45c   :  { %v1960_v35 = vmul.f32 %v4182_v32, %v1915_v8  ;;  %v1885_v5 = vadd.f32 %v1844_v25, %v4091_v37  ;;  %v1847_v43 = vpop.f32.mrb[60].mxu1  ;;  %2262 = vmatmul.mubr.f32.gmra.mrb[84].mxu0 %v2096_v57  ;;  %vm2034_vm15 = vcmp.gt.f32.partialorder %v2002_v2, 0.0  ;;  %v2067_v27 = vmul.f32 %v4196_v47, %v2002_v2 }
 0x45d   :  { %v1916_v30 = vmul.f32 0.5, %v1884_v45  ;;  %v1848_v6 = vadd.f32 %v1847_v43, %v4163_v44  ;;  %v1849_v42 = vpop.f32.mrb[61].mxu1  ;;  %v2098_v41 = vsel %vm2033_vm14, %v2001_v39, %v2066_v63  ;;  %v2003_v26 = vadd.f32 %v4185_v14, %v1959_v12 }
 0x45e   :  { %v1917_v9 = vmul.f32 0.5, %v1885_v5  ;;  %v1850_v62 = vadd.f32 %v1849_v42, %v4166_v46  ;;  %v2099_v24 = vsel %vm2034_vm15, %v2002_v2, %v2067_v27  ;;  %v2004_v13 = vadd.f32 %v4190_v15, %v1960_v35 }
 0x45f   :  { %v1961_v37 = vmul.f32 %v4178_v0, %v1916_v30  ;;  %v1886_v4 = vadd.f32 %v1848_v6, %v4103_v38  ;;  %2266 = vmatprep.mubr.f32.mxu0 %v2099_v24  ;;  %vm2035_vm1 = vcmp.gt.f32.partialorder %v2003_v26, 0.0  ;;  %v2068_v3 = vmul.f32 %v4196_v47, %v2003_v26 }
 0x460   :  { %v1962_v29 = vmul.f32 %v4182_v32, %v1917_v9  ;;  %v1887_v10 = vadd.f32 %v1850_v62, %v4107_v55  ;;  %v1853_v52 = vpop.f32.mrb[62].mxu1  ;;  %2267 = vmatmul.mubr.f32.gmra.mrb[86].mxu0 %v2098_v41  ;;  %vm2036_vm2 = vcmp.gt.f32.partialorder %v2004_v13, 0.0  ;;  %v2069_v20 = vmul.f32 %v4196_v47, %v2004_v13 }
 0x461   :  { %v1918_v33 = vmul.f32 0.5, %v1886_v4  ;;  %v1854_v54 = vadd.f32 %v1853_v52, %v4163_v44  ;;  %v1855_v18 = vpop.f32.mrb[63].mxu1  ;;  %v2100_v36 = vsel %vm2035_vm1, %v2003_v26, %v2068_v3  ;;  %v2005_v38 = vadd.f32 %v4185_v14, %v1961_v37 }
 0x462   :  { %v1919_v51 = vmul.f32 0.5, %v1887_v10  ;;  %v1856_v40 = vadd.f32 %v1855_v18, %v4166_v46  ;;  %v2101_v31 = vsel %vm2036_vm2, %v2004_v13, %v2069_v20  ;;  %v2006_v17 = vadd.f32 %v4190_v15, %v1962_v29 }
 0x463   :  { %v1963_v55 = vmul.f32 %v4178_v0, %v1918_v33  ;;  %v1888_v28 = vadd.f32 %v1854_v54, %v4119_v21  ;;  %2271 = vmatprep.mubr.f32.mxu0 %v2101_v31  ;;  %vm2037_vm3 = vcmp.gt.f32.partialorder %v2005_v38, 0.0  ;;  %v2070_v34 = vmul.f32 %v4196_v47, %v2005_v38 }
 0x464   :  { %v1964_v44 = vmul.f32 %v4182_v32, %v1919_v51  ;;  %v1889_v22 = vadd.f32 %v1856_v40, %v4122_v7  ;;  %2272 = vmatmul.mubr.f32.gmra.mrb[88].mxu0 %v2100_v36  ;;  %vm2038_vm4 = vcmp.gt.f32.partialorder %v2006_v17, 0.0  ;;  %v2071_v58 = vmul.f32 %v4196_v47, %v2006_v17 }
 0x465   :  { %v1920_v46 = vmul.f32 0.5, %v1888_v28  ;;  %v2007_v19 = vadd.f32 %v4185_v14, %v1963_v55  ;;  %v2102_v59 = vsel %vm2037_vm3, %v2005_v38, %v2070_v34 }
 0x466   :  { %v1921_v56 = vmul.f32 0.5, %v1889_v22  ;;  %v2103_v60 = vsel %vm2038_vm4, %v2006_v17, %v2071_v58  ;;  %v2008_v16 = vadd.f32 %v4190_v15, %v1964_v44 }
 0x467   :  { %v1965_v21 = vmul.f32 %v4178_v0, %v1920_v46  ;;  %2276 = vmatprep.mubr.f32.mxu0 %v2103_v60  ;;  %v2072_v48 = vmul.f32 %v4196_v47, %v2007_v19  ;;  %vm2039_vm6 = vcmp.gt.f32.partialorder %v2007_v19, 0.0 }
 0x468   :  { %v1966_v1 = vmul.f32 %v4182_v32, %v1921_v56  ;;  %2277 = vmatmul.mubr.f32.gmra.mrb[90].mxu0 %v2102_v59  ;;  %vm2040_vm5 = vcmp.gt.f32.partialorder %v2008_v16, 0.0  ;;  %v2073_v7 = vmul.f32 %v4196_v47, %v2008_v16 }
 0x469   :  { %v2009_v49 = vadd.f32 %v4185_v14, %v1965_v21  ;;  %v2104_v50 = vsel %vm2039_vm6, %v2007_v19, %v2072_v48  ;;  %v4351_v14 = vld [vmem:[%s4451_s18] ss:$0 sm:$0xff] }
 0x46a   :  { %v2105_v11 = vsel %vm2040_vm5, %v2008_v16, %v2073_v7  ;;  %v2010_v23 = vadd.f32 %v4190_v15, %v1966_v1 }
 0x46b   :  { %2281 = vmatprep.mubr.f32.mxu0 %v2105_v11  ;;  %v2074_v0 = vmul.f32 %v4196_v47, %v2009_v49  ;;  %vm2041_vm8 = vcmp.gt.f32.partialorder %v2009_v49, 0.0 }
 0x46c   :  { %2282 = vmatmul.mubr.f32.gmra.mrb[92].mxu0 %v2104_v50  ;;  %vm2042_vm7 = vcmp.gt.f32.partialorder %v2010_v23, 0.0  ;;  %v2075_v53 = vmul.f32 %v4196_v47, %v2010_v23 }
 0x46d   :  { %v2106_v57 = vsel %vm2041_vm8, %v2009_v49, %v2074_v0 }
 0x46e   :  { %v2107_v32 = vsel %vm2042_vm7, %v2010_v23, %v2075_v53 }
 0x46f   :  { %2286 = vmatprep.mubr.f32.mxu1 %v2107_v32 }
 0x470   :  { %2287 = vmatmul.mubr.f32.vlgmr.msra.gmra.mrb[64].mxu1 %v2106_v57 }
 0x507   :  { %v2369_v39 = vpop.f32.mrb[64].mxu0 }
 0x508   :  { %v2370_v15 = vpop.f32.mrb[65].mxu0 }
 0x509   :  { %v2371_v8 = vadd.f32 %v2370_v15, %v2369_v39 }
 0x50b   :  { %v2214_v25 = vadd.f32 %v2371_v8, %v4351_v14  ;;  %v2372_v61 = vpop.f32.mrb[66].mxu0 }
 0x50c   :  { %v2373_v2 = vpop.f32.mrb[67].mxu0 }
 0x50d   :  { %2292 = vst.msk [vmem:[%s4452_s19] sm:$0xff] %vm199_vm0, %v2214_v25  ;;  %v2374_v47 = vadd.f32 %v2373_v2, %v2372_v61 }
 0x50f   :  { %v2219_v12 = vadd.f32 %v2374_v47, %v4351_v14  ;;  %v2375_v45 = vpop.f32.mrb[68].mxu0 }
 0x510   :  { %v2376_v63 = vpop.f32.mrb[69].mxu0 }
 0x511   :  { %2293 = vst.msk [vmem:[%s4452_s19 + $0x8] sm:$0xff] %vm199_vm0, %v2219_v12  ;;  %v2377_v35 = vadd.f32 %v2376_v63, %v2375_v45 }
 0x513   :  { %v2224_v5 = vadd.f32 %v2377_v35, %v4351_v14  ;;  %v2378_v43 = vpop.f32.mrb[70].mxu0 }
 0x514   :  { %v2379_v27 = vpop.f32.mrb[71].mxu0 }
 0x515   :  { %2294 = vst.msk [vmem:[%s4452_s19 + $0x10] sm:$0xff] %vm199_vm0, %v2224_v5  ;;  %v2380_v30 = vadd.f32 %v2379_v27, %v2378_v43 }
 0x517   :  { %v2229_v6 = vadd.f32 %v2380_v30, %v4351_v14  ;;  %v2381_v42 = vpop.f32.mrb[72].mxu0 }
 0x518   :  { %v2382_v41 = vpop.f32.mrb[73].mxu0 }
 0x519   :  { %2295 = vst.msk [vmem:[%s4452_s19 + $0x18] sm:$0xff] %vm199_vm0, %v2229_v6  ;;  %v2383_v26 = vadd.f32 %v2382_v41, %v2381_v42 }
 0x51b   :  { %v2234_v9 = vadd.f32 %v2383_v26, %v4351_v14  ;;  %v2384_v62 = vpop.f32.mrb[74].mxu0 }
 0x51c   :  { %v2385_v24 = vpop.f32.mrb[75].mxu0 }
 0x51d   :  { %2296 = vst.msk [vmem:[%s4452_s19 + $0x20] sm:$0xff] %vm199_vm0, %v2234_v9  ;;  %v2386_v13 = vadd.f32 %v2385_v24, %v2384_v62 }
 0x51f   :  { %v2239_v37 = vadd.f32 %v2386_v13, %v4351_v14  ;;  %v2387_v4 = vpop.f32.mrb[76].mxu0 }
 0x520   :  { %v2388_v3 = vpop.f32.mrb[77].mxu0 }
 0x521   :  { %2297 = vst.msk [vmem:[%s4452_s19 + $0x28] sm:$0xff] %vm199_vm0, %v2239_v37  ;;  %v2389_v29 = vadd.f32 %v2388_v3, %v2387_v4 }
 0x523   :  { %v2244_v10 = vadd.f32 %v2389_v29, %v4351_v14  ;;  %v2390_v52 = vpop.f32.mrb[78].mxu0 }
 0x524   :  { %v2391_v20 = vpop.f32.mrb[79].mxu0 }
 0x525   :  { %2298 = vst.msk [vmem:[%s4452_s19 + $0x30] sm:$0xff] %vm199_vm0, %v2244_v10  ;;  %v2392_v33 = vadd.f32 %v2391_v20, %v2390_v52 }
 0x527   :  { %v2249_v54 = vadd.f32 %v2392_v33, %v4351_v14  ;;  %v2393_v18 = vpop.f32.mrb[80].mxu0 }
 0x528   :  { %v2394_v36 = vpop.f32.mrb[81].mxu0 }
 0x529   :  { %2299 = vst.msk [vmem:[%s4452_s19 + $0x38] sm:$0xff] %vm199_vm0, %v2249_v54  ;;  %v2395_v38 = vadd.f32 %v2394_v36, %v2393_v18 }
 0x52b   :  { %v2254_v51 = vadd.f32 %v2395_v38, %v4351_v14  ;;  %v2396_v40 = vpop.f32.mrb[82].mxu0 }
 0x52c   :  { %v2397_v31 = vpop.f32.mrb[83].mxu0 }
 0x52d   :  { %2300 = vst.msk [vmem:[%s4452_s19 + $0x40] sm:$0xff] %vm199_vm0, %v2254_v51  ;;  %v2398_v17 = vadd.f32 %v2397_v31, %v2396_v40 }
 0x52f   :  { %v2259_v55 = vadd.f32 %v2398_v17, %v4351_v14  ;;  %v2399_v28 = vpop.f32.mrb[84].mxu0 }
 0x530   :  { %v2400_v34 = vpop.f32.mrb[85].mxu0 }
 0x531   :  { %2301 = vst.msk [vmem:[%s4452_s19 + $0x48] sm:$0xff] %vm199_vm0, %v2259_v55  ;;  %v2401_v44 = vadd.f32 %v2400_v34, %v2399_v28 }
 0x533   :  { %v2264_v22 = vadd.f32 %v2401_v44, %v4351_v14  ;;  %v2402_v58 = vpop.f32.mrb[86].mxu0 }
 0x534   :  { %v2403_v46 = vpop.f32.mrb[87].mxu0 }
 0x535   :  { %2302 = vst.msk [vmem:[%s4452_s19 + $0x50] sm:$0xff] %vm199_vm0, %v2264_v22  ;;  %v2404_v19 = vadd.f32 %v2403_v46, %v2402_v58 }
 0x537   :  { %v2269_v56 = vadd.f32 %v2404_v19, %v4351_v14  ;;  %v2405_v60 = vpop.f32.mrb[88].mxu0 }
 0x538   :  { %v2406_v16 = vpop.f32.mrb[89].mxu0 }
 0x539   :  { %2303 = vst.msk [vmem:[%s4452_s19 + $0x58] sm:$0xff] %vm199_vm0, %v2269_v56  ;;  %v2407_v21 = vadd.f32 %v2406_v16, %v2405_v60 }
 0x53b   :  { %v2274_v59 = vadd.f32 %v2407_v21, %v4351_v14  ;;  %v2408_v48 = vpop.f32.mrb[90].mxu0 }
 0x53c   :  { %v2409_v1 = vpop.f32.mrb[91].mxu0 }
 0x53d   :  { %2304 = vst.msk [vmem:[%s4452_s19 + $0x60] sm:$0xff] %vm199_vm0, %v2274_v59  ;;  %v2410_v7 = vadd.f32 %v2409_v1, %v2408_v48 }
 0x53f   :  { %v2279_v49 = vadd.f32 %v2410_v7, %v4351_v14  ;;  %v2411_v11 = vpop.f32.mrb[92].mxu0 }
 0x540   :  { %v2412_v23 = vpop.f32.mrb[93].mxu0 }
 0x541   :  { %2305 = vst.msk [vmem:[%s4452_s19 + $0x68] sm:$0xff] %vm199_vm0, %v2279_v49  ;;  %v2413_v50 = vadd.f32 %v2412_v23, %v2411_v11 }
 0x543   :  { %v2284_v0 = vadd.f32 %v2413_v50, %v4351_v14  ;;  %v2414_v53 = vpop.f32.mrb[64].mxu1 }
 0x544   :  { %v2415_v32 = vpop.f32.mrb[65].mxu1 }
 0x545   :  { %2306 = vst.msk [vmem:[%s4452_s19 + $0x70] sm:$0xff] %vm199_vm0, %v2284_v0  ;;  %v2416_v57 = vadd.f32 %v2415_v32, %v2414_v53 }
 0x547   :  { %v2289_v39 = vadd.f32 %v2416_v57, %v4351_v14 }
 0x549   :  { %2307 = vst.msk [vmem:[%s4452_s19 + $0x78] sm:$0xff] %vm199_vm0, %v2289_v39 }
 0x54a   :  { %2312 = vsyncpa [#allocation6], 1 }
 0x54b   :  { %2313 = vsyncpa [#allocation8], 1 }
 0x54c   :  { %2314 = vsyncpa [#allocation11], 1 }
 0x54d   :  { %2315 = vsyncpa [#allocation14], 1 }
 0x54e   :  { %2316 = vsyncpa [#allocation17], 1 }

</bundles_post_ra>
